<compile_context>
chip_gen: v5e
topology: v5e:2x2
jax: 0.10.0
libtpu: 0.0.40
codegen_flags: <defaults>
</compile_context>

<pallas_src>
import functools

import jax
import jax.numpy as jnp
from jax.experimental import pallas as pl
from jax.experimental.pallas import tpu as pltpu


def _im2col3x3(xp, H, W):
    """im2col for a 3x3/SAME conv on a zero-padded (H+2, W+2, C) tile.

    Returns (H*W, 9*C) in xp.dtype; tap order ky-major, kx-minor, matching the
    (3,3,C,Ct) -> (9*C,Ct) row-major weight reshape done in the wrapper.
    """
    C = xp.shape[-1]
    cols = jnp.concatenate(
        [xp[ky:ky + H, kx:kx + W, :] for ky in range(3) for kx in range(3)],
        axis=-1)
    return cols.reshape(H * W, 9 * C)


def _conv3x3_bn_relu(xp, w_ref, s_ref, b_ref, H, W):
    """One fused 3x3 conv + BN(eval) + ReLU on a zero-padded VMEM tile.

    xp   : (H+2, W+2, C)  bf16 zero-padded activation
    w_ref: (9*C, Ct)      bf16 weights, taps flattened into K
    s_ref: (1, Ct)        f32 folded BN scale
    b_ref: (1, Ct)        f32 folded BN + conv bias
    returns (H, W, Ct) f32
    """
    cols = _im2col3x3(xp, H, W).astype(w_ref.dtype)
    acc = jnp.dot(cols, w_ref[...],
                  preferred_element_type=jnp.float32)          # (H*W, Ct) f32
    y = acc.reshape(H, W, -1) * s_ref[0] + b_ref[0]            # fused BN (eval)
    return jnp.maximum(y, 0.0)                                 # ReLU


def _bridge_kernel(x_ref, w1_ref, s1_ref, b1_ref, w2_ref, s2_ref, b2_ref,
                   o_ref, xp1_ref, xp2_ref, cols2_ref, *, H, W):
    """Grid = (N, C2 // TN). One batch element per n, one Cout tile per j.

    x_ref   : (1, H, W, Cin)    bf16 input tile
    w1_ref  : (9*Cin, C1)       bf16 conv1 weights (full)
    s1/b1   : (1, C1)           f32 folded BN params (full)
    w2_ref  : (9*C1, TN)        bf16 conv2 weight tile
    s2/b2   : (1, TN)           f32 folded BN param tiles
    o_ref   : (1, H, W, TN)     f32 output tile
    xp1_ref : (H+2, W+2, Cin)   bf16 scratch (padded input halo)
    xp2_ref : (H+2, W+2, C1)    bf16 scratch (padded intermediate activation)
    cols2_ref: (H*W, 9*C1)      bf16 scratch (cached conv2 im2col matrix)
    """
    # conv1 + conv2-im2col are shared by every Cout tile of conv2 -> compute
    # once per batch element; scratches persist across the (arbitrary) j axis.
    @pl.when(pl.program_id(1) == 0)
    def _():
        # zero halo built in VMEM (no HBM pad pass)
        xp1_ref[...] = jnp.zeros_like(xp1_ref)
        xp1_ref[pl.ds(1, H), pl.ds(1, W), :] = x_ref[0].astype(xp1_ref.dtype)
        y1 = _conv3x3_bn_relu(xp1_ref[...], w1_ref, s1_ref, b1_ref, H, W)
        # intermediate never touches HBM: staged (padded) straight into VMEM,
        # then its im2col matrix is cached so every Cout tile is matmul-only.
        xp2_ref[...] = jnp.zeros_like(xp2_ref)
        xp2_ref[pl.ds(1, H), pl.ds(1, W), :] = y1.astype(xp2_ref.dtype)
        cols2_ref[...] = _im2col3x3(xp2_ref[...], H, W)

    acc = jnp.dot(cols2_ref[...], w2_ref[...],
                  preferred_element_type=jnp.float32)          # (H*W, TN) f32
    y2 = acc.reshape(H, W, -1) * s2_ref[0] + b2_ref[0]
    o_ref[0] = jnp.maximum(y2, 0.0).astype(o_ref.dtype)


def _pick_cout_tile(c):
    for tn in (256, 128, 512):
        if c % tn == 0:
            return tn
    return c


def bridge_forward(x_nchw, params, compute_dtype=jnp.bfloat16):
    """Bridge.forward: two fused ConvBlocks in a single Pallas kernel.

    Input/output in NCHW (like PyTorch), f32 output, bf16 matmuls with f32
    accumulation.
    """
    (w1, s1, b1), (w2, s2, b2) = params
    N, Cin, H, W = x_nchw.shape
    C1 = w1.shape[-1]
    C2 = w2.shape[-1]

    x = jnp.transpose(x_nchw, (0, 2, 3, 1)).astype(compute_dtype)   # NHWC, bf16
    w1r = w1.reshape(9 * Cin, C1).astype(compute_dtype)             # taps -> K
    w2r = w2.reshape(9 * C1, C2).astype(compute_dtype)

    TN = _pick_cout_tile(C2)
    kernel = functools.partial(_bridge_kernel, H=H, W=W)

    flops = 2 * N * H * W * 9 * (Cin * C1 + C1 * C2)
    bytes_accessed = (N * H * W * Cin * 2                       # x (bf16)
                      + 9 * Cin * C1 * 2 + 9 * C1 * C2 * 2      # weights (bf16)
                      + 4 * 2 * (C1 + C2)                       # scales/biases
                      + N * H * W * C2 * 4)                     # output (f32)

    out = pl.pallas_call(
        kernel,
        out_shape=jax.ShapeDtypeStruct((N, H, W, C2), jnp.float32),
        grid=(N, C2 // TN),
        in_specs=[
            pl.BlockSpec((1, H, W, Cin), lambda n, j: (n, 0, 0, 0)),
            pl.BlockSpec((9 * Cin, C1), lambda n, j: (0, 0)),
            pl.BlockSpec((1, C1), lambda n, j: (0, 0)),
            pl.BlockSpec((1, C1), lambda n, j: (0, 0)),
            pl.BlockSpec((9 * C1, TN), lambda n, j: (0, j)),
            pl.BlockSpec((1, TN), lambda n, j: (0, j)),
            pl.BlockSpec((1, TN), lambda n, j: (0, j)),
        ],
        out_specs=pl.BlockSpec((1, H, W, TN), lambda n, j: (n, 0, 0, j)),
        scratch_shapes=[
            pltpu.VMEM((H + 2, W + 2, Cin), compute_dtype),
            pltpu.VMEM((H + 2, W + 2, C1), compute_dtype),
            pltpu.VMEM((H * W, 9 * C1), compute_dtype),
        ],
        compiler_params=pltpu.CompilerParams(
            dimension_semantics=("parallel", "arbitrary")),
        cost_estimate=pl.CostEstimate(
            flops=flops, transcendentals=0, bytes_accessed=bytes_accessed),
    )(x, w1r, s1, b1, w2r, s2, b2)

    return jnp.transpose(out, (0, 3, 1, 2))    # NHWC -> NCHW


def make_conv_block_params(key, cin, cout, eps=1e-5):
    """Deterministic Conv+BN params; BN (eval mode) folded into (scale, bias)."""
    k1, k2, k3, k4, k5, k6 = jax.random.split(key, 6)
    fan_in = cin * 3 * 3
    bound = 1.0 / jnp.sqrt(fan_in)
    w = jax.random.uniform(k1, (3, 3, cin, cout), jnp.float32, -bound, bound)
    conv_b = jax.random.uniform(k2, (cout,), jnp.float32, -bound, bound)
    gamma = 1.0 + 0.1 * jax.random.normal(k3, (cout,), jnp.float32)
    beta = 0.1 * jax.random.normal(k4, (cout,), jnp.float32)
    run_mean = 0.1 * jax.random.normal(k5, (cout,), jnp.float32)
    run_var = jnp.abs(jax.random.normal(k6, (cout,), jnp.float32)) + 0.5
    scale = gamma / jnp.sqrt(run_var + eps)
    bias = (conv_b - run_mean) * scale + beta
    return w, scale.reshape(1, cout), bias.reshape(1, cout)


def _reference_conv_block(x_nhwc, w_hwio, scale, bias):
    y = jax.lax.conv_general_dilated(
        x_nhwc, w_hwio, window_strides=(1, 1), padding="SAME",
        dimension_numbers=("NHWC", "HWIO", "NHWC"))
    return jnp.maximum(y * scale[0] + bias[0], 0.0)


if __name__ == "__main__":
    N, Cin, Cout, H, W = 2, 4, 8, 16, 16
    key = jax.random.PRNGKey(0)
    kx_, kp1, kp2 = jax.random.split(key, 3)
    x = jax.random.normal(kx_, (N, Cin, H, W), jnp.float32)  # NCHW like PyTorch

    p1 = make_conv_block_params(kp1, Cin, Cout)
    p2 = make_conv_block_params(kp2, Cout, Cout)

    out = bridge_forward(x, (p1, p2))
    out = jax.block_until_ready(out)
    assert out.shape == (N, Cout, H, W), out.shape

    # Pure-JAX reference using the same bf16-rounded activations/weights
    # (f32 conv), so the check isolates kernel arithmetic from the bf16
    # quantization choice; accumulation in the kernel stays f32.
    def rnd(a):
        return a.astype(jnp.bfloat16).astype(jnp.float32)

    xr = jnp.transpose(rnd(x), (0, 2, 3, 1))
    r = _reference_conv_block(xr, rnd(p1[0]), p1[1], p1[2])
    r = _reference_conv_block(rnd(r), rnd(p2[0]), p2[1], p2[2])
    r = jnp.transpose(r, (0, 3, 1, 2))
    err = float(jnp.max(jnp.abs(out - r)))
    assert jnp.allclose(out, r, atol=3e-2, rtol=3e-2), err

    print("KERNEL_OK")
</pallas_src>

<mosaic_0001>
module attributes {stable_mosaic.version = 11 : i64} {
  func.func @_bridge_kernel(%arg0: i32, %arg1: i32, %arg2: memref<1x16x16x4xbf16, #tpu.memory_space<vmem>>, %arg3: memref<36x8xbf16, #tpu.memory_space<vmem>>, %arg4: memref<1x8xf32, #tpu.memory_space<vmem>>, %arg5: memref<1x8xf32, #tpu.memory_space<vmem>>, %arg6: memref<72x8xbf16, #tpu.memory_space<vmem>>, %arg7: memref<1x8xf32, #tpu.memory_space<vmem>>, %arg8: memref<1x8xf32, #tpu.memory_space<vmem>>, %arg9: memref<1x16x16x8xf32, #tpu.memory_space<vmem>>, %arg10: memref<18x18x4xbf16, #tpu.memory_space<vmem>>, %arg11: memref<18x18x8xbf16, #tpu.memory_space<vmem>>, %arg12: memref<256x72xbf16, #tpu.memory_space<vmem>>) attributes {dimension_semantics = [#tpu.dimension_semantics<parallel>, #tpu.dimension_semantics<arbitrary>], iteration_bounds = array<i64: 2, 1>, scalar_prefetch = 0 : i64, scratch_operands = 3 : i64, tpu.core_type = #tpu.core_type<tc>, window_params = [{transform_indices = @transform_0, window_bounds = array<i64: 1, 16, 16, 4>}, {pipeline_mode = #tpu.pipeline_mode<synchronous>, transform_indices = @transform_1, window_bounds = array<i64: 36, 8>}, {pipeline_mode = #tpu.pipeline_mode<synchronous>, transform_indices = @transform_2, window_bounds = array<i64: 1, 8>}, {pipeline_mode = #tpu.pipeline_mode<synchronous>, transform_indices = @transform_3, window_bounds = array<i64: 1, 8>}, {transform_indices = @transform_4, window_bounds = array<i64: 72, 8>}, {transform_indices = @transform_5, window_bounds = array<i64: 1, 8>}, {transform_indices = @transform_6, window_bounds = array<i64: 1, 8>}, {transform_indices = @transform_7, window_bounds = array<i64: 1, 16, 16, 8>}]} {
    %c0_i32 = arith.constant 0 : i32
    %0 = arith.cmpi eq, %arg1, %c0_i32 : i32
    %1 = arith.extui %0 : i1 to i32
    %c0_i32_0 = arith.constant 0 : i32
    %2 = arith.cmpi ne, %1, %c0_i32_0 : i32
    scf.if %2 {
      %cst_13 = arith.constant 0.000000e+00 : bf16
      %22 = vector.broadcast %cst_13 : bf16 to vector<18x18x4xbf16>
      %c0_14 = arith.constant 0 : index
      %c0_15 = arith.constant 0 : index
      %c0_16 = arith.constant 0 : index
      %23 = vector.load %arg10[%c0_14, %c0_15, %c0_16] : memref<18x18x4xbf16, #tpu.memory_space<vmem>>, vector<18x18x4xbf16>
      tpu.vector_store %arg10[%c0_14, %c0_15, %c0_16], %22 {strides = array<i32>} : memref<18x18x4xbf16, #tpu.memory_space<vmem>>, vector<18x18x4xbf16>,
      %c0_17 = arith.constant 0 : index
      %c0_18 = arith.constant 0 : index
      %c0_19 = arith.constant 0 : index
      %c0_20 = arith.constant 0 : index
      %24 = vector.load %arg2[%c0_17, %c0_18, %c0_19, %c0_20] : memref<1x16x16x4xbf16, #tpu.memory_space<vmem>>, vector<1x16x16x4xbf16>
      %25 = vector.shape_cast %24 : vector<1x16x16x4xbf16> to vector<16x16x4xbf16>
      %c1 = arith.constant 1 : index
      %c1_21 = arith.constant 1 : index
      %c0_22 = arith.constant 0 : index
      %26 = vector.load %arg10[%c1, %c1_21, %c0_22] : memref<18x18x4xbf16, #tpu.memory_space<vmem>>, vector<16x16x4xbf16>
      tpu.vector_store %arg10[%c1, %c1_21, %c0_22], %25 {strides = array<i32>} : memref<18x18x4xbf16, #tpu.memory_space<vmem>>, vector<16x16x4xbf16>,
      %c0_23 = arith.constant 0 : index
      %c0_24 = arith.constant 0 : index
      %c0_25 = arith.constant 0 : index
      %27 = vector.load %arg10[%c0_23, %c0_24, %c0_25] : memref<18x18x4xbf16, #tpu.memory_space<vmem>>, vector<18x18x4xbf16>
      %28 = vector.extract_strided_slice %27 {offsets = [0, 0, 0], sizes = [16, 16, 4], strides = [1, 1, 1]} : vector<18x18x4xbf16> to vector<16x16x4xbf16>
      %29 = vector.extract_strided_slice %27 {offsets = [0, 1, 0], sizes = [16, 16, 4], strides = [1, 1, 1]} : vector<18x18x4xbf16> to vector<16x16x4xbf16>
      %30 = vector.extract_strided_slice %27 {offsets = [0, 2, 0], sizes = [16, 16, 4], strides = [1, 1, 1]} : vector<18x18x4xbf16> to vector<16x16x4xbf16>
      %31 = vector.extract_strided_slice %27 {offsets = [1, 0, 0], sizes = [16, 16, 4], strides = [1, 1, 1]} : vector<18x18x4xbf16> to vector<16x16x4xbf16>
      %32 = vector.extract_strided_slice %27 {offsets = [1, 1, 0], sizes = [16, 16, 4], strides = [1, 1, 1]} : vector<18x18x4xbf16> to vector<16x16x4xbf16>
      %33 = vector.extract_strided_slice %27 {offsets = [1, 2, 0], sizes = [16, 16, 4], strides = [1, 1, 1]} : vector<18x18x4xbf16> to vector<16x16x4xbf16>
      %34 = vector.extract_strided_slice %27 {offsets = [2, 0, 0], sizes = [16, 16, 4], strides = [1, 1, 1]} : vector<18x18x4xbf16> to vector<16x16x4xbf16>
      %35 = vector.extract_strided_slice %27 {offsets = [2, 1, 0], sizes = [16, 16, 4], strides = [1, 1, 1]} : vector<18x18x4xbf16> to vector<16x16x4xbf16>
      %36 = vector.extract_strided_slice %27 {offsets = [2, 2, 0], sizes = [16, 16, 4], strides = [1, 1, 1]} : vector<18x18x4xbf16> to vector<16x16x4xbf16>
      %37 = tpu.concatenate %28, %29, %30, %31, %32, %33, %34, %35, %36 in 2 : vector<16x16x4xbf16>, vector<16x16x4xbf16>, vector<16x16x4xbf16>, vector<16x16x4xbf16>, vector<16x16x4xbf16>, vector<16x16x4xbf16>, vector<16x16x4xbf16>, vector<16x16x4xbf16>, vector<16x16x4xbf16> -> vector<16x16x36xbf16>
      %38 = vector.shape_cast %37 : vector<16x16x36xbf16> to vector<256x36xbf16>
      %c0_26 = arith.constant 0 : index
      %c0_27 = arith.constant 0 : index
      %39 = vector.load %arg3[%c0_26, %c0_27] : memref<36x8xbf16, #tpu.memory_space<vmem>>, vector<36x8xbf16>
      %cst_28 = arith.constant dense<0.000000e+00> : vector<256x8xf32>
      %40 = tpu.matmul %38, %39, %cst_28 {dimension_numbers = #tpu.dot_dimension_numbers<[1], [0], [0], [1], [0, 0, 1, 1], [], []>} : vector<256x36xbf16>, vector<36x8xbf16>, vector<256x8xf32> -> vector<256x8xf32>
      %41 = vector.shape_cast %40 : vector<256x8xf32> to vector<16x16x8xf32>
      %c0_29 = arith.constant 0 : index
      %c0_30 = arith.constant 0 : index
      %42 = vector.load %arg4[%c0_29, %c0_30] : memref<1x8xf32, #tpu.memory_space<vmem>>, vector<1x8xf32>
      %43 = vector.shape_cast %42 : vector<1x8xf32> to vector<8xf32>
      %44 = vector.shape_cast %43 : vector<8xf32> to vector<1x1x8xf32>
      %45 = vector.broadcast %44 : vector<1x1x8xf32> to vector<16x16x8xf32>
      %46 = arith.mulf %41, %45 : vector<16x16x8xf32>
      %c0_31 = arith.constant 0 : index
      %c0_32 = arith.constant 0 : index
      %47 = vector.load %arg5[%c0_31, %c0_32] : memref<1x8xf32, #tpu.memory_space<vmem>>, vector<1x8xf32>
      %48 = vector.shape_cast %47 : vector<1x8xf32> to vector<8xf32>
      %49 = vector.shape_cast %48 : vector<8xf32> to vector<1x1x8xf32>
      %50 = vector.broadcast %49 : vector<1x1x8xf32> to vector<16x16x8xf32>
      %51 = arith.addf %46, %50 : vector<16x16x8xf32>
      %cst_33 = arith.constant 0.000000e+00 : f32
      %52 = vector.broadcast %cst_33 : f32 to vector<16x16x8xf32>
      %53 = arith.maximumf %51, %52 : vector<16x16x8xf32>
      %cst_34 = arith.constant 0.000000e+00 : bf16
      %54 = vector.broadcast %cst_34 : bf16 to vector<18x18x8xbf16>
      %c0_35 = arith.constant 0 : index
      %c0_36 = arith.constant 0 : index
      %c0_37 = arith.constant 0 : index
      %55 = vector.load %arg11[%c0_35, %c0_36, %c0_37] : memref<18x18x8xbf16, #tpu.memory_space<vmem>>, vector<18x18x8xbf16>
      tpu.vector_store %arg11[%c0_35, %c0_36, %c0_37], %54 {strides = array<i32>} : memref<18x18x8xbf16, #tpu.memory_space<vmem>>, vector<18x18x8xbf16>,
      %56 = arith.truncf %53 : vector<16x16x8xf32> to vector<16x16x8xbf16>
      %c1_38 = arith.constant 1 : index
      %c1_39 = arith.constant 1 : index
      %c0_40 = arith.constant 0 : index
      %57 = vector.load %arg11[%c1_38, %c1_39, %c0_40] : memref<18x18x8xbf16, #tpu.memory_space<vmem>>, vector<16x16x8xbf16>
      tpu.vector_store %arg11[%c1_38, %c1_39, %c0_40], %56 {strides = array<i32>} : memref<18x18x8xbf16, #tpu.memory_space<vmem>>, vector<16x16x8xbf16>,
      %c0_41 = arith.constant 0 : index
      %c0_42 = arith.constant 0 : index
      %c0_43 = arith.constant 0 : index
      %58 = vector.load %arg11[%c0_41, %c0_42, %c0_43] : memref<18x18x8xbf16, #tpu.memory_space<vmem>>, vector<18x18x8xbf16>
      %59 = vector.extract_strided_slice %58 {offsets = [0, 0, 0], sizes = [16, 16, 8], strides = [1, 1, 1]} : vector<18x18x8xbf16> to vector<16x16x8xbf16>
      %60 = vector.extract_strided_slice %58 {offsets = [0, 1, 0], sizes = [16, 16, 8], strides = [1, 1, 1]} : vector<18x18x8xbf16> to vector<16x16x8xbf16>
      %61 = vector.extract_strided_slice %58 {offsets = [0, 2, 0], sizes = [16, 16, 8], strides = [1, 1, 1]} : vector<18x18x8xbf16> to vector<16x16x8xbf16>
      %62 = vector.extract_strided_slice %58 {offsets = [1, 0, 0], sizes = [16, 16, 8], strides = [1, 1, 1]} : vector<18x18x8xbf16> to vector<16x16x8xbf16>
      %63 = vector.extract_strided_slice %58 {offsets = [1, 1, 0], sizes = [16, 16, 8], strides = [1, 1, 1]} : vector<18x18x8xbf16> to vector<16x16x8xbf16>
      %64 = vector.extract_strided_slice %58 {offsets = [1, 2, 0], sizes = [16, 16, 8], strides = [1, 1, 1]} : vector<18x18x8xbf16> to vector<16x16x8xbf16>
      %65 = vector.extract_strided_slice %58 {offsets = [2, 0, 0], sizes = [16, 16, 8], strides = [1, 1, 1]} : vector<18x18x8xbf16> to vector<16x16x8xbf16>
      %66 = vector.extract_strided_slice %58 {offsets = [2, 1, 0], sizes = [16, 16, 8], strides = [1, 1, 1]} : vector<18x18x8xbf16> to vector<16x16x8xbf16>
      %67 = vector.extract_strided_slice %58 {offsets = [2, 2, 0], sizes = [16, 16, 8], strides = [1, 1, 1]} : vector<18x18x8xbf16> to vector<16x16x8xbf16>
      %68 = tpu.concatenate %59, %60, %61, %62, %63, %64, %65, %66, %67 in 2 : vector<16x16x8xbf16>, vector<16x16x8xbf16>, vector<16x16x8xbf16>, vector<16x16x8xbf16>, vector<16x16x8xbf16>, vector<16x16x8xbf16>, vector<16x16x8xbf16>, vector<16x16x8xbf16>, vector<16x16x8xbf16> -> vector<16x16x72xbf16>
      %69 = vector.shape_cast %68 : vector<16x16x72xbf16> to vector<256x72xbf16>
      %c0_44 = arith.constant 0 : index
      %c0_45 = arith.constant 0 : index
      %70 = vector.load %arg12[%c0_44, %c0_45] : memref<256x72xbf16, #tpu.memory_space<vmem>>, vector<256x72xbf16>
      tpu.vector_store %arg12[%c0_44, %c0_45], %69 {strides = array<i32>} : memref<256x72xbf16, #tpu.memory_space<vmem>>, vector<256x72xbf16>,
    } else {
    }
    %c0 = arith.constant 0 : index
    %c0_1 = arith.constant 0 : index
    %3 = vector.load %arg12[%c0, %c0_1] : memref<256x72xbf16, #tpu.memory_space<vmem>>, vector<256x72xbf16>
    %c0_2 = arith.constant 0 : index
    %c0_3 = arith.constant 0 : index
    %4 = vector.load %arg6[%c0_2, %c0_3] : memref<72x8xbf16, #tpu.memory_space<vmem>>, vector<72x8xbf16>
    %cst = arith.constant dense<0.000000e+00> : vector<256x8xf32>
    %5 = tpu.matmul %3, %4, %cst {dimension_numbers = #tpu.dot_dimension_numbers<[1], [0], [0], [1], [0, 0, 1, 1], [], []>} : vector<256x72xbf16>, vector<72x8xbf16>, vector<256x8xf32> -> vector<256x8xf32>
    %6 = vector.shape_cast %5 : vector<256x8xf32> to vector<16x16x8xf32>
    %c0_4 = arith.constant 0 : index
    %c0_5 = arith.constant 0 : index
    %7 = vector.load %arg7[%c0_4, %c0_5] : memref<1x8xf32, #tpu.memory_space<vmem>>, vector<1x8xf32>
    %8 = vector.shape_cast %7 : vector<1x8xf32> to vector<8xf32>
    %9 = vector.shape_cast %8 : vector<8xf32> to vector<1x1x8xf32>
    %10 = vector.broadcast %9 : vector<1x1x8xf32> to vector<16x16x8xf32>
    %11 = arith.mulf %6, %10 : vector<16x16x8xf32>
    %c0_6 = arith.constant 0 : index
    %c0_7 = arith.constant 0 : index
    %12 = vector.load %arg8[%c0_6, %c0_7] : memref<1x8xf32, #tpu.memory_space<vmem>>, vector<1x8xf32>
    %13 = vector.shape_cast %12 : vector<1x8xf32> to vector<8xf32>
    %14 = vector.shape_cast %13 : vector<8xf32> to vector<1x1x8xf32>
    %15 = vector.broadcast %14 : vector<1x1x8xf32> to vector<16x16x8xf32>
    %16 = arith.addf %11, %15 : vector<16x16x8xf32>
    %cst_8 = arith.constant 0.000000e+00 : f32
    %17 = vector.broadcast %cst_8 : f32 to vector<16x16x8xf32>
    %18 = arith.maximumf %16, %17 : vector<16x16x8xf32>
    %c0_9 = arith.constant 0 : index
    %c0_10 = arith.constant 0 : index
    %c0_11 = arith.constant 0 : index
    %c0_12 = arith.constant 0 : index
    %19 = vector.load %arg9[%c0_9, %c0_10, %c0_11, %c0_12] : memref<1x16x16x8xf32, #tpu.memory_space<vmem>>, vector<1x16x16x8xf32>
    %20 = vector.shape_cast %19 : vector<1x16x16x8xf32> to vector<16x16x8xf32>
    %21 = vector.shape_cast %18 : vector<16x16x8xf32> to vector<1x16x16x8xf32>
    tpu.vector_store %arg9[%c0_9, %c0_10, %c0_11, %c0_12], %21 {strides = array<i32>} : memref<1x16x16x8xf32, #tpu.memory_space<vmem>>, vector<1x16x16x8xf32>,
    return
  }
  func.func @transform_0(%arg0: i32, %arg1: i32) -> (i32, i32, i32, i32) {
    %c0_i32 = arith.constant 0 : i32
    %c0_i32_0 = arith.constant 0 : i32
    %c0_i32_1 = arith.constant 0 : i32
    %c0_i32_2 = arith.constant 0 : i32
    return %arg0, %c0_i32, %c0_i32_0, %c0_i32_1 : i32, i32, i32, i32
  }
  func.func @transform_1(%arg0: i32, %arg1: i32) -> (i32, i32) {
    %c0_i32 = arith.constant 0 : i32
    %c0_i32_0 = arith.constant 0 : i32
    %c0_i32_1 = arith.constant 0 : i32
    return %c0_i32, %c0_i32_0 : i32, i32
  }
  func.func @transform_2(%arg0: i32, %arg1: i32) -> (i32, i32) {
    %c0_i32 = arith.constant 0 : i32
    %c0_i32_0 = arith.constant 0 : i32
    %c0_i32_1 = arith.constant 0 : i32
    return %c0_i32, %c0_i32_0 : i32, i32
  }
  func.func @transform_3(%arg0: i32, %arg1: i32) -> (i32, i32) {
    %c0_i32 = arith.constant 0 : i32
    %c0_i32_0 = arith.constant 0 : i32
    %c0_i32_1 = arith.constant 0 : i32
    return %c0_i32, %c0_i32_0 : i32, i32
  }
  func.func @transform_4(%arg0: i32, %arg1: i32) -> (i32, i32) {
    %c0_i32 = arith.constant 0 : i32
    %c0_i32_0 = arith.constant 0 : i32
    return %c0_i32, %arg1 : i32, i32
  }
  func.func @transform_5(%arg0: i32, %arg1: i32) -> (i32, i32) {
    %c0_i32 = arith.constant 0 : i32
    %c0_i32_0 = arith.constant 0 : i32
    return %c0_i32, %arg1 : i32, i32
  }
  func.func @transform_6(%arg0: i32, %arg1: i32) -> (i32, i32) {
    %c0_i32 = arith.constant 0 : i32
    %c0_i32_0 = arith.constant 0 : i32
    return %c0_i32, %arg1 : i32, i32
  }
  func.func @transform_7(%arg0: i32, %arg1: i32) -> (i32, i32, i32, i32) {
    %c0_i32 = arith.constant 0 : i32
    %c0_i32_0 = arith.constant 0 : i32
    %c0_i32_1 = arith.constant 0 : i32
    return %arg0, %c0_i32, %c0_i32_0, %arg1 : i32, i32, i32, i32
  }
}

</mosaic_0001>

<bundles_post_ra>
// kernel: tpu_custom_call.1
= control target key start
LH: loop header
LB: loop body
LE: loop exit
PB: predicated region body
PF: predicated region fallthrough
CT: control target
= control target key end

     0   :  { %s4808_s24 = smov 0   ;;  %s4810_s25 = smov 0   ;;  %s7437_s0 = inlined_call_operand.vmem [shape: bf16[2,16,16,4], index: 0, kind: input, shape index: {}]   ;;  %s7438_s1 = inlined_call_operand.vmem [shape: bf16[36,8], index: 1, kind: input, shape index: {}]   ;;  %s7439_s2 = inlined_call_operand.vmem [shape: f32[1,8], index: 2, kind: input, shape index: {}]   ;;  %s7440_s3 = inlined_call_operand.vmem [shape: f32[1,8], index: 3, kind: input, shape index: {}]   ;;  %s7441_s4 = inlined_call_operand.vmem [shape: bf16[72,8], index: 4, kind: input, shape index: {}]   ;;  %s7442_s5 = inlined_call_operand.vmem [shape: f32[1,8], index: 5, kind: input, shape index: {}]   ;;  %s7443_s6 = inlined_call_operand.vmem [shape: f32[1,8], index: 6, kind: input, shape index: {}]   ;;  %s7444_s7 = inlined_call_operand.vmem [shape: f32[2,16,16,8], index: 7, kind: output, shape index: {}]  }
   0x1   :  { %s4812_s26 = smov 0  }
   0x2 LB: > { %s29_s27 = sadd.s32 1, %s4749_s25  ;;  %p4323_p0 = scmp.ge.s32.totalorder %s4753_s26, 1  ;;  %s4753_s26 = sphi %s4812_s26, %s17_s26   ;;  %s4749_s25 = sphi %s4810_s25, %s7501_s25   ;;  %s4745_s24 = sphi %s4808_s24, %s7500_s24  }
   0x3   : > { %p31_p1 = scmp.ge.s32.totalorder %s29_s27, 2  ;;  %p276_p2 = scmp.lt.s32.totalorder %s4753_s26, 3 }
   0x5   : > { %s7503_s27 = smov (%p31_p1, %s29_s27), 0  ;;  %p277_p3 = pnand %p4323_p0, %p276_p2 }
   0x7   : > { %280 = sbr.rel (%p277_p3) target bundleno = 1266 (0x4f2), region = 48 }
   0xc   : > { %vm349_vm0 = vcmask 27648   ;;  %vm352_vm1 = vcmask 24576   ;;  %v7445_v0 = vmov 0   ;;  %p321_p4 = scmp.lt.s32.totalorder %s4745_s24, 1  ;;  %vm1060_vm2 = vsmask.f32 7424 }
   0xd   : > { %350 = vst.msk [vmem:[#allocation2] sm:$0xf] %vm349_vm0, %v7445_v0  ;;  %s4756_s9 = smov 4   ;;  %vm7447_vm3 = vsmask.f32 256  ;;  %vm7448_vm9 = vcmask 1046528  }
   0xe   : > { %351 = vst.msk [vmem:[#allocation2 + $0x4] sm:$0xf] %vm349_vm0, %v7445_v0  ;;  %s7505_s24 = smov (!%p321_p4, %s4745_s24), 1  ;;  %vm438_vm4 = vsmask.f32 4368  ;;  %vm4963_vm7 = vmand %vm352_vm1, %vm7447_vm3  ;;  %s4757_s10 = smov 8  }
   0xf   : > { %353 = vst.msk [vmem:[#allocation2 + $0x8] sm:$0x1] %vm352_vm1, %v7445_v0  ;;  %s4594_s28 = sshll.u32 %s7505_s24, 7  ;;  %vm762_vm5 = vsmask.f32 7938  ;;  %vm4942_vm6 = vmor %vm7447_vm3, %vm438_vm4  ;;  %s4758_s11 = smov 12  }
  0x10   : > { %354 = vst.msk [vmem:[#allocation2 + $0xc] sm:$0xf] %vm349_vm0, %v7445_v0  ;;  %s4875_s8 = scalar_lea.vmem %s7437_s0, %s4594_s28  ;;  %vm4978_vm8 = vmand %vm349_vm0, %vm762_vm5  ;;  %s4759_s12 = smov 16   ;;  %vm1921_vm10 = vcmask 1041408   ;;  %vm1604_vm11 = vcmask 31744   ;;  %vm1670_vm12 = vcmask 97280  }
  0x11   : > { %355 = vst.msk [vmem:[#allocation2 + $0x10] sm:$0xf] %vm349_vm0, %v7445_v0  ;;  %v411_v12 = vld [vmem:[%s4875_s8 + $0x18] sm:$0xf]  ;;  %v412_v13 = vld [vmem:[%s4875_s8 + $0x1c] sm:$0xf] }
  0x12   : > { %356 = vst.msk [vmem:[#allocation2 + $0x14] sm:$0x1] %vm352_vm1, %v7445_v0  ;;  %v492_v14 = vshrl.u32 %v411_v12, 16  ;;  %v407_v15 = vld [vmem:[%s4875_s8 + $0x8] sm:$0xf]  ;;  %v500_v17 = vshrl.u32 %v412_v13, 16 }
  0x13   : > { %357 = vst.msk [vmem:[#allocation2 + $0x18] sm:$0xf] %vm349_vm0, %v7445_v0  ;;  %v408_v16 = vld [vmem:[%s4875_s8 + $0xc] sm:$0xf]  ;;  %v458_v19 = vshrl.u32 %v407_v15, 16  ;;  %v503_v24 = vshll.u32 %v412_v13, 16 }
  0x14   : > { %358 = vst.msk [vmem:[#allocation2 + $0x1c] sm:$0xf] %vm349_vm0, %v7445_v0  ;;  %v494_v18 = vrot.slane %v492_v14, 7  ;;  %v466_v20 = vshrl.u32 %v408_v16, 16  ;;  %v405_v21 = vld [vmem:[%s4875_s8] sm:$0xf] }
  0x15   : > { %v4596_v1 = vld [vmem:[#allocation2] sm:$0xff]  ;;  %359 = vst.msk [vmem:[#allocation2 + $0x20] sm:$0x1] %vm352_vm1, %v7445_v0  ;;  %v4911_v23 = vrot.slane %v500_v17, 7  ;;  %v495_v25 = vshll.u32 %v411_v12, 16  ;;  %v441_v26 = vshrl.u32 %v405_v21, 16 }
  0x16   : > { %v880_v2 = vld [vmem:[#allocation2 + $0x8] sm:$0x1]  ;;  %360 = vst.msk [vmem:[#allocation2 + $0x24] sm:$0xf] %vm349_vm0, %v7445_v0  ;;  %v1062_v4 = vshrl.u32 %v4596_v1, 16  ;;  %v1064_v5 = vshll.u32 %v4596_v1, 16 }
  0x17   : > { %v1028_v3 = vunpack.c.l.b16 %v880_v2  ;;  %361 = vst.msk [vmem:[#allocation2 + $0x28] sm:$0xf] %vm349_vm0, %v7445_v0  ;;  %v406_v22 = vld [vmem:[%s4875_s8 + $0x4] sm:$0xf]  ;;  %v498_v27 = vrot.slane %v494_v18, 4  ;;  %v460_v28 = vrot.slane %v458_v19, 7  ;;  %v505_v33 = vor.u32 %v503_v24, %v4911_v23 }
  0x18   : > { %362 = vst.msk [vmem:[#allocation2 + $0x2c] sm:$0x1] %vm352_vm1, %v7445_v0  ;;  %v1066_v7 = vrot.slane %v1064_v5, 1  ;;  %v4917_v29 = vrot.slane %v466_v20, 7  ;;  %v449_v30 = vshrl.u32 %v406_v22, 16  ;;  %v461_v36 = vshll.u32 %v407_v15, 16 }
  0x19   : > { %v4856_v6 = vpack.c.b16 %v1028_v3, %v1028_v3  ;;  %363 = vst.msk [vmem:[#allocation2 + $0x30] sm:$0xf] %vm349_vm0, %v7445_v0  ;;  %v4922_v31 = vld [vmem:[%s4875_s8 + $0x24] sm:$0xf]  ;;  %v4925_v32 = vld [vmem:[%s4875_s8 + $0x14] sm:$0xf]  ;;  %v4959_v50 = vor.u32 %v495_v25, %v494_v18  ;;  %v4974_v55 = vsel %vm4942_vm6, %v498_v27, %v505_v33 }
  0x1a   : > { %364 = vst.msk [vmem:[#allocation2 + $0x34] sm:$0xf] %vm349_vm0, %v7445_v0  ;;  %v1067_v8 = vor.u32 %v1066_v7, %v1062_v4  ;;  %v4931_v34 = vld [vmem:[%s4875_s8 + $0x20] sm:$0xf]  ;;  %v4934_v35 = vld [vmem:[%s4875_s8 + $0x10] sm:$0xf]  ;;  %v4982_v57 = vor.u32 %v461_v36, %v460_v28 }
  0x1b   : > { %v1069_v9 = vshll.u32 %v4856_v6, 16  ;;  %365 = vst.msk [vmem:[#allocation2 + $0x38] sm:$0x1] %vm352_vm1, %v7445_v0  ;;  %v469_v37 = vshll.u32 %v408_v16, 16  ;;  %v443_v38 = vrot.slane %v441_v26, 7  ;;  %v444_v39 = vshll.u32 %v405_v21, 16 }
  0x1c   : > { %366 = vst.msk [vmem:[#allocation2 + $0x3c] sm:$0xf] %vm349_vm0, %v7445_v0  ;;  %v4946_v41 = vrot.slane %v449_v30, 7  ;;  %v452_v42 = vshll.u32 %v406_v22, 16  ;;  %v517_v43 = vshrl.u32 %v4922_v31, 16  ;;  %v507_v44 = vrot.slane %v4911_v23, 4 }
  0x1d   : > { %v1071_v10 = vrot.slane %v1069_v9, 1  ;;  %367 = vst.msk [vmem:[#allocation2 + $0x40] sm:$0xf] %vm349_vm0, %v7445_v0  ;;  %v509_v47 = vshrl.u32 %v4931_v34, 16  ;;  %v475_v48 = vshrl.u32 %v4934_v35, 16  ;;  %v483_v49 = vshrl.u32 %v4925_v32, 16 }
  0x1e   : > { %368 = vst.msk [vmem:[#allocation2 + $0x44] sm:$0x1] %vm352_vm1, %v7445_v0  ;;  %v464_v52 = vrot.slane %v460_v28, 4  ;;  %v473_v53 = vrot.slane %v4917_v29, 4  ;;  %v4968_v54 = vld [vmem:[#allocation2 + $0x18] sm:$0xf]  ;;  %v471_v58 = vor.u32 %v469_v37, %v4917_v29  ;;  %v4985_v60 = vor.u32 %v444_v39, %v443_v38 }
  0x1f   : > { %v1072_v11 = vsel %vm1060_vm2, %v1067_v8, %v1071_v10  ;;  %369 = vst.msk [vmem:[#allocation2 + $0x48] sm:$0xf] %vm349_vm0, %v7445_v0  ;;  %v777_v59 = vld [vmem:[#allocation2 + $0x20] sm:$0x1]  ;;  %v4987_v61 = vld [vmem:[#allocation2 + $0xc] sm:$0xf]  ;;  %v454_v2 = vor.u32 %v452_v42, %v4946_v41  ;;  %v774_v16 = vsel %vm4978_vm8, %v4982_v57, %v4968_v54 }
  0x20   : > { %1253 = vrot.lane.b32.xlu0 %v1072_v11, %s4756_s9  ;;  %370 = vst.msk [vmem:[#allocation2 + $0x4c] sm:$0xf] %vm349_vm0, %v7445_v0  ;;  %v4952_v45 = vld [vmem:[#allocation2 + $0x30] sm:$0xf]  ;;  %v4990_v62 = vld [vmem:[%s4875_s8 + $0x28] sm:$0xf]  ;;  %v5023_v15 = vsel %vm4942_vm6, %v464_v52, %v471_v58  ;;  %v5038_v21 = vsel %vm4963_vm7, %v473_v53, %v777_v59  ;;  %v765_v22 = vsel %vm4978_vm8, %v4985_v60, %v4987_v61 }
  0x21   : > { %371 = vst.msk [vmem:[#allocation2 + $0x50] sm:$0x1] %vm352_vm1, %v7445_v0  ;;  %v4993_v63 = vld [vmem:[%s4875_s8 + $0x2c] sm:$0xf]  ;;  %v447_v1 = vrot.slane %v443_v38, 4  ;;  %v456_v3 = vrot.slane %v4946_v41, 4  ;;  %v788_v10 = vsel %vm4978_vm8, %v4959_v50, %v4952_v45 }
  0x22   : > { %372 = vst.msk [vmem:[#allocation2 + $0x54] sm:$0xf] %vm349_vm0, %v7445_v0  ;;  %v791_v46 = vld [vmem:[#allocation2 + $0x38] sm:$0x1]  ;;  %v519_v4 = vrot.slane %v517_v43, 7  ;;  %v511_v5 = vrot.slane %v509_v47, 7 }
  0x23   : > { %373 = vst.msk [vmem:[#allocation2 + $0x58] sm:$0xf] %vm349_vm0, %v7445_v0  ;;  %v520_v7 = vshll.u32 %v4922_v31, 16  ;;  %v477_v8 = vrot.slane %v475_v48, 7  ;;  %v5002_v9 = vrot.slane %v483_v49, 7  ;;  %v5012_v11 = vsel %vm4963_vm7, %v507_v44, %v791_v46  ;;  %s4760_s13 = smov 28  }
  0x24   : > { %374 = vst.msk [vmem:[#allocation2 + $0x5c] sm:$0x1] %vm352_vm1, %v7445_v0  ;;  %v526_v12 = vshrl.u32 %v4990_v62, 16  ;;  %v534_v13 = vshrl.u32 %v4993_v63, 16  ;;  %v5017_v14 = vld [vmem:[%s4875_s8 + $0x38] sm:$0xf]  ;;  %v5049_v26 = vsel %vm4942_vm6, %v447_v1, %v454_v2 }
  0x25   : > { %375 = vst.msk [vmem:[#allocation2 + $0x60] sm:$0xf] %vm349_vm0, %v7445_v0  ;;  %v770_v17 = vld [vmem:[#allocation2 + $0x14] sm:$0x1]  ;;  %v512_v18 = vshll.u32 %v4931_v34, 16  ;;  %v486_v19 = vshll.u32 %v4925_v32, 16  ;;  %v522_v28 = vor.u32 %v520_v7, %v519_v4 }
  0x26   : > { %376 = vst.msk [vmem:[#allocation2 + $0x64] sm:$0xf] %vm349_vm0, %v7445_v0  ;;  %v5032_v20 = vld [vmem:[%s4875_s8 + $0x3c] sm:$0xf]  ;;  %v524_v23 = vrot.slane %v519_v4, 4  ;;  %v478_v25 = vshll.u32 %v4934_v35, 16  ;;  %v5072_v41 = vsel %vm4963_vm7, %v456_v3, %v770_v17 }
  0x27   : > { %377 = vst.msk [vmem:[#allocation2 + $0x68] sm:$0x1] %vm352_vm1, %v7445_v0  ;;  %v798_v24 = vld [vmem:[#allocation2 + $0x44] sm:$0x1]  ;;  %v515_v27 = vrot.slane %v511_v5, 4  ;;  %v560_v29 = vshrl.u32 %v5017_v14, 16  ;;  %v5062_v35 = vor.u32 %v512_v18, %v511_v5  ;;  %v488_v36 = vor.u32 %v486_v19, %v5002_v9 }
  0x28   : > { %378 = vst.msk [vmem:[#allocation2 + $0x6c] sm:$0xf] %vm349_vm0, %v7445_v0  ;;  %v5053_v30 = vld [vmem:[%s4875_s8 + $0x30] sm:$0xf]  ;;  %v481_v31 = vrot.slane %v477_v8, 4  ;;  %v528_v32 = vrot.slane %v526_v12, 7  ;;  %v5078_v43 = vsel %vm4963_vm7, %v524_v23, %v798_v24  ;;  %v5084_v47 = vor.u32 %v478_v25, %v477_v8 }
  0x29   : > { %379 = vst.msk [vmem:[#allocation2 + $0x70] sm:$0xf] %vm349_vm0, %v7445_v0  ;;  %v5057_v33 = vrot.slane %v534_v13, 7  ;;  %v568_v34 = vshrl.u32 %v5032_v20, 16  ;;  %v529_v37 = vshll.u32 %v4990_v62, 16  ;;  %v537_v38 = vshll.u32 %v4993_v63, 16 }
  0x2a   : > { %380 = vst.msk [vmem:[#allocation2 + $0x74] sm:$0x1] %vm352_vm1, %v7445_v0  ;;  %v418_v39 = vld [vmem:[%s4875_s8 + $0x34] sm:$0xf]  ;;  %v5074_v42 = vld [vmem:[#allocation2 + $0x3c] sm:$0xf]  ;;  %v5093_v53 = vsel %vm4942_vm6, %v515_v27, %v522_v28  ;;  %v5108_v4 = vsel %vm4942_vm6, %v481_v31, %v488_v36 }
  0x2b   : > { %381 = vst.msk [vmem:[#allocation2 + $0x78] sm:$0xf] %vm349_vm0, %v7445_v0  ;;  %v490_v44 = vrot.slane %v5002_v9, 4  ;;  %v543_v46 = vshrl.u32 %v5053_v30, 16  ;;  %v5086_v48 = vrot.slane %v560_v29, 7  ;;  %v563_v49 = vshll.u32 %v5017_v14, 16 }
  0x2c   : > { %382 = vst.msk [vmem:[#allocation2 + $0x7c] sm:$0xf] %vm349_vm0, %v7445_v0  ;;  %v551_v52 = vshrl.u32 %v418_v39, 16  ;;  %v5095_v58 = vld [vmem:[#allocation2 + $0x24] sm:$0xf]  ;;  %v532_v62 = vrot.slane %v528_v32, 4  ;;  %v795_v3 = vsel %vm4978_vm8, %v5062_v35, %v5074_v42  ;;  %v5110_v5 = vor.u32 %v529_v37, %v528_v32 }
  0x2d   : > { %383 = vst.msk [vmem:[#allocation2 + $0x80] sm:$0x1] %vm352_vm1, %v7445_v0  ;;  %v784_v59 = vld [vmem:[#allocation2 + $0x2c] sm:$0x1]  ;;  %v541_v63 = vrot.slane %v5057_v33, 4  ;;  %v570_v2 = vrot.slane %v568_v34, 7  ;;  %v539_v7 = vor.u32 %v537_v38, %v5057_v33  ;;  %v5122_v19 = vor.u32 %v563_v49, %v5086_v48 }
  0x2e   : > { %384 = vst.msk [vmem:[#allocation2 + $0x84] sm:$0xf] %vm349_vm0, %v7445_v0  ;;  %v5098_v1 = vld [vmem:[#allocation2 + $0x48] sm:$0xf]  ;;  %v421_v8 = vld [vmem:[%s4875_s8 + $0x40] sm:$0xf]  ;;  %v781_v31 = vsel %vm4978_vm8, %v5084_v47, %v5095_v58  ;;  %v5142_v32 = vsel %vm4963_vm7, %v490_v44, %v784_v59 }
  0x2f   : > { %385 = vst.msk [vmem:[#allocation2 + $0x88] sm:$0xf] %vm349_vm0, %v7445_v0  ;;  %v422_v9 = vld [vmem:[%s4875_s8 + $0x44] sm:$0xf]  ;;  %v571_v12 = vshll.u32 %v5032_v20, 16  ;;  %v545_v13 = vrot.slane %v543_v46, 7  ;;  %v5146_v45 = vsel %vm4942_vm6, %v532_v62, %v539_v7  ;;  %v802_v50 = vsel %vm4978_vm8, %v5110_v5, %v5098_v1 }
  0x30   : > { %386 = vst.msk [vmem:[#allocation2 + $0x8c] sm:$0x1] %vm352_vm1, %v7445_v0  ;;  %v546_v14 = vshll.u32 %v5053_v30, 16  ;;  %v577_v17 = vshrl.u32 %v421_v8, 16  ;;  %v805_v18 = vld [vmem:[#allocation2 + $0x50] sm:$0x1] }
  0x31   : > { %387 = vst.msk [vmem:[#allocation2 + $0x90] sm:$0xf] %vm349_vm0, %v7445_v0  ;;  %v5124_v23 = vld [vmem:[#allocation2 + $0x60] sm:$0xf]  ;;  %v553_v24 = vrot.slane %v551_v52, 7  ;;  %v554_v25 = vshll.u32 %v418_v39, 16  ;;  %v573_v34 = vor.u32 %v571_v12, %v570_v2 }
  0x32   : > { %388 = vst.msk [vmem:[#allocation2 + $0x94] sm:$0xf] %vm349_vm0, %v7445_v0  ;;  %v585_v27 = vshrl.u32 %v422_v9, 16  ;;  %v566_v20 = vrot.slane %v5086_v48, 4  ;;  %v575_v28 = vrot.slane %v570_v2, 4  ;;  %v5132_v29 = vrot.slane %v577_v17, 7 }
  0x33   : > { %389 = vst.msk [vmem:[#allocation2 + $0x98] sm:$0x1] %vm352_vm1, %v7445_v0  ;;  %v580_v30 = vshll.u32 %v421_v8, 16  ;;  %v425_v33 = vld [vmem:[%s4875_s8 + $0x50] sm:$0xf]  ;;  %v5156_v36 = vor.u32 %v546_v14, %v545_v13  ;;  %v549_v37 = vrot.slane %v545_v13, 4  ;;  %v556_v44 = vor.u32 %v554_v25, %v553_v24 }
  0x34   : > { %390 = vst.msk [vmem:[#allocation2 + $0x9c] sm:$0xf] %vm349_vm0, %v7445_v0  ;;  %v426_v38 = vld [vmem:[%s4875_s8 + $0x54] sm:$0xf]  ;;  %v611_v39 = vshrl.u32 %v425_v33, 16  ;;  %v587_v48 = vrot.slane %v585_v27, 7  ;;  %v816_v59 = vsel %vm4978_vm8, %v5122_v19, %v5124_v23  ;;  %v5189_v7 = vsel %vm4942_vm6, %v566_v20, %v573_v34 }
  0x35   : > { %391 = vst.msk [vmem:[#allocation2 + $0xa0] sm:$0xf] %vm349_vm0, %v7445_v0  ;;  %v812_v46 = vld [vmem:[#allocation2 + $0x5c] sm:$0x1]  ;;  %v588_v49 = vshll.u32 %v422_v9, 16  ;;  %v619_v52 = vshrl.u32 %v426_v38, 16  ;;  %v5175_v57 = vor.u32 %v580_v30, %v5132_v29  ;;  %v5205_v60 = vsel %vm4942_vm6, %v549_v37, %v556_v44 }
  0x36   : > { %392 = vst.msk [vmem:[#allocation2 + $0xa4] sm:$0x1] %vm352_vm1, %v7445_v0  ;;  %v558_v54 = vrot.slane %v553_v24, 4  ;;  %v614_v62 = vshll.u32 %v425_v33, 16  ;;  %v583_v9 = vrot.slane %v5132_v29, 4  ;;  %s4761_s14 = smov 20  }
  0x37   : > { %393 = vst.msk [vmem:[#allocation2 + $0xa8] sm:$0xf] %vm349_vm0, %v7445_v0  ;;  %v5180_v2 = vrot.slane %v619_v52, 7  ;;  %v826_v12 = vld [vmem:[#allocation2 + $0x74] sm:$0x1]  ;;  %v590_v61 = vor.u32 %v588_v49, %v587_v48  ;;  %s4762_s15 = smov 24  }
  0x38   : > { %394 = vst.msk [vmem:[#allocation2 + $0xac] sm:$0xf] %vm349_vm0, %v7445_v0  ;;  %v423_v13 = vld [vmem:[%s4875_s8 + $0x48] sm:$0xf]  ;;  %v424_v14 = vld [vmem:[%s4875_s8 + $0x4c] sm:$0xf]  ;;  %v5213_v24 = vsel %vm4963_vm7, %v558_v54, %v812_v46 }
  0x39   : > { %395 = vst.msk [vmem:[#allocation2 + $0xb0] sm:$0x1] %vm352_vm1, %v7445_v0  ;;  %v594_v17 = vshrl.u32 %v423_v13, 16  ;;  %v597_v25 = vshll.u32 %v423_v13, 16  ;;  %v602_v27 = vshrl.u32 %v424_v14, 16  ;;  %v5242_v42 = vsel %vm4942_vm6, %v583_v9, %v590_v61  ;;  %s4763_s16 = smov 32  }
  0x3a   : > { %396 = vst.msk [vmem:[#allocation2 + $0xb4] sm:$0xf] %vm349_vm0, %v7445_v0  ;;  %v5227_v30 = vld [vmem:[#allocation2 + $0x84] sm:$0xf]  ;;  %v605_v44 = vshll.u32 %v424_v14, 16  ;;  %vm1637_vm13 = vcmask 64512  }
  0x3b   : > { %397 = vst.msk [vmem:[#allocation2 + $0xb8] sm:$0xf] %vm349_vm0, %v7445_v0  ;;  %v5260_v54 = vld [vmem:[#allocation2 + $0x78] sm:$0xf]  ;;  %vm1703_vm14 = vcmask 130048   ;;  %vm1736_vm15 = vcmask 162816  }
  0x3c   : > { %398 = vst.msk [vmem:[#allocation2 + $0xbc] sm:$0x1] %vm352_vm1, %v7445_v0  ;;  %v5280_v13 = vld [vmem:[%s4875_s8 + $0x58] sm:$0xf]  ;;  %vm1802_vm4 = vcmask 228352   ;;  %vm1888_vm3 = vcmask 293888  }
  0x3d   : > { %399 = vst.msk [vmem:[#allocation2 + $0xc0] sm:$0xf] %vm349_vm0, %v7445_v0  ;;  %v628_v14 = vshrl.u32 %v5280_v13, 16  ;;  %v631_v23 = vshll.u32 %v5280_v13, 16  ;;  %s4765_s17 = smov 64   ;;  %s4766_s18 = smov 48  }
  0x3e   : > { %400 = vst.msk [vmem:[#allocation2 + $0xc4] sm:$0xf] %vm349_vm0, %v7445_v0  ;;  %s4767_s19 = smov 40  }
  0x3f   : > { %401 = vst.msk [vmem:[#allocation2 + $0xc8] sm:$0x1] %vm352_vm1, %v7445_v0 }
  0x40   : > { %402 = vst.msk [vmem:[#allocation2 + $0xcc] sm:$0xf] %vm349_vm0, %v7445_v0 }
  0x41   : > { %403 = vst.msk [vmem:[#allocation2 + $0xd0] sm:$0xf] %vm349_vm0, %v7445_v0 }
  0x42   : > { %404 = vst.msk [vmem:[#allocation2 + $0xd4] sm:$0x1] %vm352_vm1, %v7445_v0  ;;  %vm1769_vm1 = vcmask 195584  }
  0x43   : > { %789 = vst [vmem:[#allocation2 + $0x30] sm:$0xf] %v788_v10  ;;  %v819_v10 = vld [vmem:[#allocation2 + $0x68] sm:$0x1] }
  0x44   : > { %790 = vst.msk [vmem:[#allocation2 + $0x34] sm:$0xf] %vm349_vm0, %v4974_v55  ;;  %v5152_v55 = vld [vmem:[#allocation2 + $0x54] sm:$0xf]  ;;  %v5193_v8 = vsel %vm4963_vm7, %v575_v28, %v819_v10  ;;  %v5229_v10 = vrot.slane %v594_v17, 7 }
  0x45   : > { %793 = vst [vmem:[#allocation2 + $0x38] sm:$0x1] %v5012_v11  ;;  %v5168_v11 = vsel %vm4963_vm7, %v541_v63, %v805_v18  ;;  %v622_v63 = vshll.u32 %v426_v38, 16  ;;  %v5235_v38 = vrot.slane %v602_v27, 7 }
  0x46   : > { %775 = vst [vmem:[#allocation2 + $0x18] sm:$0xf] %v774_v16  ;;  %v5177_v16 = vld [vmem:[#allocation2 + $0x6c] sm:$0xf]  ;;  %v5257_v49 = vor.u32 %v597_v25, %v5229_v10  ;;  %v600_v52 = vrot.slane %v5229_v10, 4 }
  0x47   : > { %776 = vst.msk [vmem:[#allocation2 + $0x1c] sm:$0xf] %vm349_vm0, %v5023_v15  ;;  %v613_v15 = vrot.slane %v611_v39, 7  ;;  %v624_v29 = vor.u32 %v622_v63, %v5180_v2  ;;  %v626_v39 = vrot.slane %v5180_v2, 4  ;;  %v609_v47 = vrot.slane %v5235_v38, 4 }
  0x48   : > { %779 = vst [vmem:[#allocation2 + $0x20] sm:$0x1] %v5038_v21  ;;  %v809_v21 = vsel %vm4978_vm8, %v5156_v36, %v5152_v55  ;;  %v830_v5 = vsel %vm4978_vm8, %v5257_v49, %v5260_v54  ;;  %v847_v54 = vld [vmem:[#allocation2 + $0x98] sm:$0x1] }
  0x49   : > { %766 = vst [vmem:[#allocation2 + $0xc] sm:$0xf] %v765_v22  ;;  %v592_v22 = vrot.slane %v587_v48, 4  ;;  %v5224_v28 = vor.u32 %v614_v62, %v613_v15 }
  0x4a   : > { %767 = vst.msk [vmem:[#allocation2 + $0x10] sm:$0xf] %vm349_vm0, %v5049_v26  ;;  %v823_v26 = vsel %vm4978_vm8, %v5175_v57, %v5177_v16  ;;  %v833_v57 = vld [vmem:[#allocation2 + $0x80] sm:$0x1] }
  0x4b   : > { %v5208_v18 = vld [vmem:[#allocation2 + $0x30] sm:$0xff]  ;;  %772 = vst [vmem:[#allocation2 + $0x14] sm:$0x1] %v5072_v41  ;;  %v617_v41 = vrot.slane %v613_v15, 4 }
  0x4c   : > { %v892_v20 = vld [vmem:[#allocation2 + $0x38] sm:$0x1]  ;;  %796 = vst [vmem:[#allocation2 + $0x3c] sm:$0xf] %v795_v3  ;;  %v1110_v34 = vshrl.u32 %v5208_v18, 16  ;;  %v1112_v37 = vshll.u32 %v5208_v18, 16  ;;  %v5246_v3 = vsel %vm4963_vm7, %v592_v22, %v826_v12  ;;  %v837_v12 = vsel %vm4978_vm8, %v5224_v28, %v5227_v30 }
  0x4d   : > { %v1032_v33 = vunpack.c.l.b16 %v892_v20  ;;  %797 = vst.msk [vmem:[#allocation2 + $0x40] sm:$0xf] %vm349_vm0, %v5093_v53  ;;  %v5273_v9 = vsel %vm4942_vm6, %v617_v41, %v624_v29  ;;  %v834_v28 = vsel %vm4963_vm7, %v609_v47, %v833_v57 }
  0x4e   : > { %v5237_v35 = vld [vmem:[#allocation2 + $0x18] sm:$0xff]  ;;  %800 = vst [vmem:[#allocation2 + $0x44] sm:$0x1] %v5078_v43  ;;  %v1114_v53 = vrot.slane %v1112_v37, 1  ;;  %v840_v43 = vld [vmem:[#allocation2 + $0x8c] sm:$0x1] }
  0x4f   : > { %v5249_v46 = vpack.c.b16 %v1032_v33, %v1032_v33  ;;  %v886_v48 = vld [vmem:[#allocation2 + $0x20] sm:$0x1]  ;;  %782 = vst [vmem:[#allocation2 + $0x24] sm:$0xf] %v781_v31  ;;  %v1086_v62 = vshrl.u32 %v5237_v35, 16  ;;  %v1088_v2 = vshll.u32 %v5237_v35, 16  ;;  %v5301_v1 = vsel %vm4963_vm7, %v626_v39, %v840_v43 }
  0x50   : > { %v1030_v15 = vunpack.c.l.b16 %v886_v48  ;;  %783 = vst.msk [vmem:[#allocation2 + $0x28] sm:$0xf] %vm349_vm0, %v5108_v4  ;;  %v1115_v58 = vor.u32 %v1114_v53, %v1110_v34 }
  0x51   : > { %v1117_v31 = vshll.u32 %v5249_v46, 16  ;;  %v5268_v63 = vld [vmem:[#allocation2 + $0xc] sm:$0xff]  ;;  %786 = vst [vmem:[#allocation2 + $0x2c] sm:$0x1] %v5142_v32  ;;  %v1090_v61 = vrot.slane %v1088_v2, 1  ;;  %v607_v32 = vor.u32 %v605_v44, %v5235_v38 }
  0x52   : > { %v5282_v4 = vpack.c.b16 %v1030_v15, %v1030_v15  ;;  %v883_v22 = vld [vmem:[#allocation2 + $0x14] sm:$0x1]  ;;  %803 = vst [vmem:[#allocation2 + $0x48] sm:$0xf] %v802_v50  ;;  %v1074_v27 = vshrl.u32 %v5268_v63, 16  ;;  %v1076_v20 = vshll.u32 %v5268_v63, 16 }
  0x53   : > { %v1119_v17 = vrot.slane %v1117_v31, 1  ;;  %v1029_v25 = vunpack.c.l.b16 %v883_v22  ;;  %804 = vst.msk [vmem:[#allocation2 + $0x4c] sm:$0xf] %vm349_vm0, %v5146_v45  ;;  %v1091_v41 = vor.u32 %v1090_v61, %v1086_v62  ;;  %v428_v50 = vld [vmem:[%s4875_s8 + $0x5c] sm:$0xf]  ;;  %v5332_v19 = vsel %vm4942_vm6, %v600_v52, %v607_v32 }
  0x54   : > { %v1093_v29 = vshll.u32 %v5282_v4, 16  ;;  %v5296_v10 = vld [vmem:[#allocation2 + $0x3c] sm:$0xff]  ;;  %807 = vst [vmem:[#allocation2 + $0x50] sm:$0x1] %v5168_v11  ;;  %v1078_v34 = vrot.slane %v1076_v20, 1  ;;  %v5318_v11 = vrot.slane %v628_v14, 7 }
  0x55   : > { %v5309_v33 = vsel %vm1060_vm2, %v1115_v58, %v1119_v17  ;;  %v5311_v45 = vpack.c.b16 %v1029_v25, %v1029_v25  ;;  %v895_v37 = vld [vmem:[#allocation2 + $0x44] sm:$0x1]  ;;  %817 = vst [vmem:[#allocation2 + $0x60] sm:$0xf] %v816_v59  ;;  %v1122_v53 = vshrl.u32 %v5296_v10, 16  ;;  %v1124_v48 = vshll.u32 %v5296_v10, 16 }
  0x56   : > { %1261 = vrot.lane.b32.xlu2 %v5309_v33, %s4756_s9  ;;  %v1095_v39 = vrot.slane %v1093_v29, 1  ;;  %v1033_v44 = vunpack.c.l.b16 %v895_v37  ;;  %818 = vst.msk [vmem:[#allocation2 + $0x64] sm:$0xf] %vm349_vm0, %v5189_v7  ;;  %v1079_v43 = vor.u32 %v1078_v34, %v1074_v27  ;;  %v634_v55 = vrot.slane %v5318_v11, 4 }
  0x57   : > { %v1081_v15 = vshll.u32 %v5311_v45, 16  ;;  %v5327_v62 = vld [vmem:[#allocation2 + $0x24] sm:$0xff]  ;;  %821 = vst [vmem:[#allocation2 + $0x68] sm:$0x1] %v5193_v8  ;;  %v1126_v58 = vrot.slane %v1124_v48, 1  ;;  %v636_v8 = vshrl.u32 %v428_v50, 16  ;;  %v633_v16 = vor.u32 %v631_v23, %v5318_v11 }
  0x58   : > { %v5336_v59 = vsel %vm1060_vm2, %v1091_v41, %v1095_v39  ;;  %v5338_v2 = vpack.c.b16 %v1033_v44, %v1033_v44  ;;  %v889_v7 = vld [vmem:[#allocation2 + $0x2c] sm:$0x1]  ;;  %810 = vst [vmem:[#allocation2 + $0x54] sm:$0xf] %v809_v21  ;;  %v1098_v13 = vshrl.u32 %v5327_v62, 16  ;;  %v1100_v61 = vshll.u32 %v5327_v62, 16 }
  0x59   : > { %1257 = vrot.lane.b32.xlu1 %v5336_v59, %s4756_s9  ;;  %v1083_v52 = vrot.slane %v1081_v15, 1  ;;  %v1031_v31 = vunpack.c.l.b16 %v889_v7  ;;  %811 = vst.msk [vmem:[#allocation2 + $0x58] sm:$0xf] %vm349_vm0, %v5205_v60  ;;  %v1127_v22 = vor.u32 %v1126_v58, %v1122_v53  ;;  %v5356_v36 = vrot.slane %v636_v8, 7 }
  0x5a   : > { %v1129_v32 = vshll.u32 %v5338_v2, 16  ;;  %v5352_v14 = vld [vmem:[#allocation2 + $0x48] sm:$0xff]  ;;  %814 = vst [vmem:[#allocation2 + $0x5c] sm:$0x1] %v5213_v24  ;;  %v1102_v25 = vrot.slane %v1100_v61, 1  ;;  %v639_v60 = vshll.u32 %v428_v50, 16 }
  0x5b   : > { %v5359_v21 = vsel %vm1060_vm2, %v1079_v43, %v1083_v52  ;;  %v5361_v17 = vpack.c.b16 %v1031_v31, %v1031_v31  ;;  %v898_v27 = vld [vmem:[#allocation2 + $0x50] sm:$0x1]  ;;  %824 = vst [vmem:[#allocation2 + $0x6c] sm:$0xf] %v823_v26  ;;  %v1134_v41 = vshrl.u32 %v5352_v14, 16  ;;  %v1136_v29 = vshll.u32 %v5352_v14, 16 }
  0x5c   : > { %1255 = vrot.lane.b32.xlu0 %v5359_v21, %s4756_s9  ;;  %v1131_v24 = vrot.slane %v1129_v32, 1  ;;  %v1034_v20 = vunpack.c.l.b16 %v898_v27  ;;  %825 = vst.msk [vmem:[#allocation2 + $0x70] sm:$0xf] %vm349_vm0, %v5242_v42  ;;  %v1103_v34 = vor.u32 %v1102_v25, %v1098_v13  ;;  %v641_v26 = vor.u32 %v639_v60, %v5356_v36 }
  0x5d   : > { %v1105_v37 = vshll.u32 %v5361_v17, 16  ;;  %v5375_v39 = vld [vmem:[#allocation2 + $0x60] sm:$0xff]  ;;  %828 = vst [vmem:[#allocation2 + $0x74] sm:$0x1] %v5246_v3  ;;  %v1138_v53 = vrot.slane %v1136_v29, 1  ;;  %v643_v42 = vrot.slane %v5356_v36, 4 }
  0x5e   : > { %v5381_v50 = vsel %vm1060_vm2, %v1127_v22, %v1131_v24  ;;  %v5383_v44 = vpack.c.b16 %v1034_v20, %v1034_v20  ;;  %v904_v48 = vld [vmem:[#allocation2 + $0x68] sm:$0x1]  ;;  %838 = vst [vmem:[#allocation2 + $0x84] sm:$0xf] %v837_v12  ;;  %v1158_v43 = vshrl.u32 %v5375_v39, 16  ;;  %v1160_v15 = vshll.u32 %v5375_v39, 16 }
  0x5f   : > { %1263 = vrot.lane.b32.xlu2 %v5381_v50, %s4756_s9  ;;  %v1107_v3 = vrot.slane %v1105_v37, 1  ;;  %v1036_v11 = vunpack.c.l.b16 %v904_v48  ;;  %839 = vst.msk [vmem:[#allocation2 + $0x88] sm:$0xf] %vm349_vm0, %v5273_v9  ;;  %v1139_v23 = vor.u32 %v1138_v53, %v1134_v41  ;;  %v642_v30 = vsel %vm4942_vm6, %v634_v55, %v641_v26  ;;  %v843_v12 = vld [vmem:[#allocation2 + $0x90] sm:$0xf] }
  0x60   : > { %v1141_v58 = vshll.u32 %v5383_v44, 16  ;;  %v5398_v7 = vld [vmem:[#allocation2 + $0x54] sm:$0xff]  ;;  %842 = vst [vmem:[#allocation2 + $0x8c] sm:$0x1] %v5301_v1  ;;  %v1162_v52 = vrot.slane %v1160_v15, 1  ;;  %v844_v38 = vsel %vm4978_vm8, %v633_v16, %v843_v12  ;;  %v848_v27 = vsel %vm4963_vm7, %v643_v42, %v847_v54 }
  0x61   : > { %v5408_v8 = vsel %vm1060_vm2, %v1103_v34, %v1107_v3  ;;  %v5410_v9 = vpack.c.b16 %v1036_v11, %v1036_v11  ;;  %v901_v31 = vld [vmem:[#allocation2 + $0x5c] sm:$0x1]  ;;  %831 = vst [vmem:[#allocation2 + $0x78] sm:$0xf] %v830_v5  ;;  %v1146_v13 = vshrl.u32 %v5398_v7, 16  ;;  %v1148_v61 = vshll.u32 %v5398_v7, 16 }
  0x62   : > { %1259 = vrot.lane.b32.xlu1 %v5408_v8, %s4756_s9  ;;  %v1143_v47 = vrot.slane %v1141_v58, 1  ;;  %v1035_v1 = vunpack.c.l.b16 %v901_v31  ;;  %832 = vst.msk [vmem:[#allocation2 + $0x7c] sm:$0xf] %vm349_vm0, %v5332_v19  ;;  %v1163_v22 = vor.u32 %v1162_v52, %v1158_v43  ;;  %v431_v37 = vld [vmem:[%s4875_s8 + $0x68] sm:$0xf] }
  0x63   : > { %v1165_v32 = vshll.u32 %v5410_v9, 16  ;;  %v5426_v49 = vld [vmem:[#allocation2 + $0x6c] sm:$0xff]  ;;  %835 = vst [vmem:[#allocation2 + $0x80] sm:$0x1] %v834_v28  ;;  %v1150_v36 = vrot.slane %v1148_v61, 1  ;;  %v662_v42 = vshrl.u32 %v431_v37, 16 }
  0x64   : > { %v5429_v5 = vsel %vm1060_vm2, %v1139_v23, %v1143_v47  ;;  %v5431_v55 = vpack.c.b16 %v1035_v1, %v1035_v1  ;;  %v907_v25 = vld [vmem:[#allocation2 + $0x74] sm:$0x1]  ;;  %845 = vst [vmem:[#allocation2 + $0x90] sm:$0xf] %v844_v38  ;;  %v1170_v24 = vshrl.u32 %v5426_v49, 16  ;;  %v1172_v20 = vshll.u32 %v5426_v49, 16 }
  0x65   : > { %1265 = vrot.lane.b32.xlu0 %v5429_v5, %s4756_s9  ;;  %v1167_v19 = vrot.slane %v1165_v32, 1  ;;  %v1037_v60 = vunpack.c.l.b16 %v907_v25  ;;  %846 = vst.msk [vmem:[#allocation2 + $0x94] sm:$0xf] %vm349_vm0, %v642_v30  ;;  %v1151_v41 = vor.u32 %v1150_v36, %v1146_v13  ;;  %v432_v48 = vld [vmem:[%s4875_s8 + $0x6c] sm:$0xf]  ;;  %v664_v30 = vrot.slane %v662_v42, 7 }
  0x66   : > { %v1153_v29 = vshll.u32 %v5431_v55, 16  ;;  %v5441_v34 = vld [vmem:[#allocation2 + $0x84] sm:$0xff]  ;;  %849 = vst [vmem:[#allocation2 + $0x98] sm:$0x1] %v848_v27  ;;  %v1174_v26 = vrot.slane %v1172_v20, 1  ;;  %v665_v12 = vshll.u32 %v431_v37, 16 }
  0x67   : > { %v5445_v57 = vsel %vm1060_vm2, %v1163_v22, %v1167_v19  ;;  %v5447_v16 = vpack.c.b16 %v1037_v60, %v1037_v60  ;;  %v913_v53 = vld [vmem:[#allocation2 + $0x8c] sm:$0x1]  ;;  %v1194_v43 = vshrl.u32 %v5441_v34, 16  ;;  %v1196_v15 = vshll.u32 %v5441_v34, 16  ;;  %v857_v60 = vld [vmem:[#allocation2 + $0xa8] sm:$0xf] }
  0x68   : > { %1269 = vrot.lane.b32.xlu2 %v5445_v57, %s4756_s9  ;;  %v1155_v3 = vrot.slane %v1153_v29, 1  ;;  %v1039_v11 = vunpack.c.l.b16 %v913_v53  ;;  %v1175_v23 = vor.u32 %v1174_v26, %v1170_v24  ;;  %v670_v1 = vshrl.u32 %v432_v48, 16  ;;  %v861_v26 = vld [vmem:[#allocation2 + $0xb0] sm:$0x1] }
  0x69   : > { %v1177_v58 = vshll.u32 %v5447_v16, 16  ;;  %v5455_v28 = vld [vmem:[#allocation2 + $0x78] sm:$0xff]  ;;  %v1198_v38 = vrot.slane %v1196_v15, 1  ;;  %v667_v27 = vor.u32 %v665_v12, %v664_v30  ;;  %v668_v19 = vrot.slane %v664_v30, 4  ;;  %v430_v12 = vld [vmem:[%s4875_s8 + $0x64] sm:$0xf] }
  0x6a   : > { %v5458_v52 = vsel %vm1060_vm2, %v1151_v41, %v1155_v3  ;;  %v5460_v31 = vpack.c.b16 %v1039_v11, %v1039_v11  ;;  %v910_v47 = vld [vmem:[#allocation2 + $0x80] sm:$0x1]  ;;  %v1182_v22 = vshrl.u32 %v5455_v28, 16  ;;  %v1184_v32 = vshll.u32 %v5455_v28, 16 }
  0x6b   : > { %1267 = vrot.lane.b32.xlu1 %v5458_v52, %s4756_s9  ;;  %v1179_v13 = vrot.slane %v1177_v58, 1  ;;  %v1038_v61 = vunpack.c.l.b16 %v910_v47  ;;  %v1199_v54 = vor.u32 %v1198_v38, %v1194_v43  ;;  %v672_v37 = vrot.slane %v670_v1, 7  ;;  %v429_v43 = vld [vmem:[%s4875_s8 + $0x60] sm:$0xf] }
  0x6c   : > { %v1201_v36 = vshll.u32 %v5460_v31, 16  ;;  %v5467_v25 = vld [vmem:[#allocation2 + $0x90] sm:$0xff]  ;;  %v1186_v41 = vrot.slane %v1184_v32, 1  ;;  %v673_v58 = vshll.u32 %v432_v48, 16 }
  0x6d   : > { %v5470_v24 = vsel %vm1060_vm2, %v1175_v23, %v1179_v13  ;;  %v5472_v20 = vpack.c.b16 %v1038_v61, %v1038_v61  ;;  %v916_v29 = vld [vmem:[#allocation2 + $0x98] sm:$0x1]  ;;  %v1206_v3 = vshrl.u32 %v5467_v25, 16  ;;  %v1208_v11 = vshll.u32 %v5467_v25, 16  ;;  %v433_v61 = vld [vmem:[%s4875_s8 + $0x70] sm:$0xf] }
  0x6e   : > { %1271 = vrot.lane.b32.xlu0 %v5470_v24, %s4756_s9  ;;  %v1203_v53 = vrot.slane %v1201_v36, 1  ;;  %v1040_v42 = vunpack.c.l.b16 %v916_v29  ;;  %v1187_v15 = vor.u32 %v1186_v41, %v1182_v22  ;;  %v677_v30 = vrot.slane %v672_v37, 4  ;;  %v434_v41 = vld [vmem:[%s4875_s8 + $0x74] sm:$0xf] }
  0x6f   : > { %v1189_v23 = vshll.u32 %v5472_v20, 16  ;;  %v1210_v1 = vrot.slane %v1208_v11, 1  ;;  %v858_v13 = vsel %vm4978_vm8, %v667_v27, %v857_v60  ;;  %v675_v32 = vor.u32 %v673_v58, %v672_v37 }
  0x70   : > { %v5482_v38 = vsel %vm1060_vm2, %v1199_v54, %v1203_v53  ;;  %v5484_v47 = vpack.c.b16 %v1040_v42, %v1040_v42  ;;  %859 = vst [vmem:[#allocation2 + $0xa8] sm:$0xf] %v858_v13  ;;  %v862_v48 = vsel %vm4963_vm7, %v677_v30, %v861_v26  ;;  %v645_v36 = vshrl.u32 %v429_v43, 16  ;;  %v854_v13 = vld [vmem:[#allocation2 + $0xa4] sm:$0x1] }
  0x71   : > { %1275 = vrot.lane.b32.xlu2 %v5482_v38, %s4756_s9  ;;  %v1191_v22 = vrot.slane %v1189_v23, 1  ;;  %v1211_v54 = vor.u32 %v1210_v1, %v1206_v3  ;;  %863 = vst [vmem:[#allocation2 + $0xb0] sm:$0x1] %v862_v48  ;;  %v648_v53 = vshll.u32 %v429_v43, 16  ;;  %v653_v42 = vshrl.u32 %v430_v12, 16 }
  0x72   : > { %v1213_v29 = vshll.u32 %v5484_v47, 16  ;;  %v676_v60 = vsel %vm4942_vm6, %v668_v19, %v675_v32  ;;  %v647_v11 = vrot.slane %v645_v36, 7  ;;  %v656_v37 = vshll.u32 %v430_v12, 16  ;;  %v850_v23 = vld [vmem:[#allocation2 + $0x9c] sm:$0xf] }
  0x73   : > { %v5496_v27 = vsel %vm1060_vm2, %v1187_v15, %v1191_v22  ;;  %860 = vst.msk [vmem:[#allocation2 + $0xac] sm:$0xf] %vm349_vm0, %v676_v60  ;;  %v655_v3 = vrot.slane %v653_v42, 7  ;;  %v679_v58 = vshrl.u32 %v433_v61, 16  ;;  %v682_v30 = vshll.u32 %v433_v61, 16 }
  0x74   : > { %1273 = vrot.lane.b32.xlu1 %v5496_v27, %s4756_s9  ;;  %v1215_v26 = vrot.slane %v1213_v29, 1  ;;  %v650_v43 = vor.u32 %v648_v53, %v647_v11  ;;  %v651_v1 = vrot.slane %v647_v11, 4  ;;  %v687_v15 = vshrl.u32 %v434_v41, 16  ;;  %v864_v42 = vld [vmem:[#allocation2 + $0xb4] sm:$0xf] }
  0x75   : > { %v690_v22 = vshll.u32 %v434_v41, 16  ;;  %v658_v19 = vor.u32 %v656_v37, %v655_v3  ;;  %v660_v12 = vrot.slane %v655_v3, 4  ;;  %v681_v32 = vrot.slane %v679_v58, 7  ;;  %v868_v60 = vld [vmem:[#allocation2 + $0xbc] sm:$0x1] }
  0x76   : > { %v5504_v48 = vsel %vm1060_vm2, %v1211_v54, %v1215_v26  ;;  %v851_v36 = vsel %vm4978_vm8, %v650_v43, %v850_v23  ;;  %v689_v29 = vrot.slane %v687_v15, 7 }
  0x77   : > { %1277 = vrot.lane.b32.xlu0 %v5504_v48, %s4756_s9  ;;  %v659_v61 = vsel %vm4942_vm6, %v651_v1, %v658_v19  ;;  %852 = vst [vmem:[#allocation2 + $0x9c] sm:$0xf] %v851_v36  ;;  %v855_v41 = vsel %vm4963_vm7, %v660_v12, %v854_v13  ;;  %v684_v54 = vor.u32 %v682_v30, %v681_v32  ;;  %v685_v53 = vrot.slane %v681_v32, 4 }
  0x78   : > { %v922_v11 = vld [vmem:[#allocation2 + $0xb0] sm:$0x1]  ;;  %853 = vst.msk [vmem:[#allocation2 + $0xa0] sm:$0xf] %vm349_vm0, %v659_v61  ;;  %v692_v37 = vor.u32 %v690_v22, %v689_v29  ;;  %v694_v26 = vrot.slane %v689_v29, 4 }
  0x79   : > { %v1042_v3 = vunpack.c.l.b16 %v922_v11  ;;  %856 = vst [vmem:[#allocation2 + $0xa4] sm:$0x1] %v855_v41  ;;  %v865_v23 = vsel %vm4978_vm8, %v684_v54, %v864_v42 }
  0x7a   : > { %v5517_v58 = vld [vmem:[#allocation2 + $0xa8] sm:$0xff]  ;;  %v693_v43 = vsel %vm4942_vm6, %v685_v53, %v692_v37  ;;  %866 = vst [vmem:[#allocation2 + $0xb4] sm:$0xf] %v865_v23  ;;  %v869_v30 = vsel %vm4963_vm7, %v694_v26, %v868_v60  ;;  %v1289_v26 = vrot.slane %v5268_v63, 1 }
  0x7b   : > { %v5523_v1 = vpack.c.b16 %v1042_v3, %v1042_v3  ;;  %867 = vst.msk [vmem:[#allocation2 + $0xb8] sm:$0xf] %vm349_vm0, %v693_v43  ;;  %v1230_v13 = vshrl.u32 %v5517_v58, 16  ;;  %v1232_v15 = vshll.u32 %v5517_v58, 16 }
  0x7c   : > { %870 = vst [vmem:[#allocation2 + $0xbc] sm:$0x1] %v869_v30  ;;  %v1290_v30 = vrot.slane %v5311_v45, 1 }
  0x7d   : > { %v1237_v22 = vshll.u32 %v5523_v1, 16  ;;  %v1234_v19 = vrot.slane %v1232_v15, 1 }
  0x7f   : > { %v1239_v12 = vrot.slane %v1237_v22, 1  ;;  %v5529_v32 = vld [vmem:[#allocation2 + $0x9c] sm:$0xff]  ;;  %v1235_v36 = vor.u32 %v1234_v19, %v1230_v13 }
  0x80   : > { %v919_v29 = vld [vmem:[#allocation2 + $0xa4] sm:$0x1]  ;;  %v1218_v61 = vshrl.u32 %v5529_v32, 16  ;;  %v1220_v41 = vshll.u32 %v5529_v32, 16 }
  0x81   : > { %v1041_v42 = vunpack.c.l.b16 %v919_v29  ;;  %v5534_v54 = vsel %vm1060_vm2, %v1235_v36, %v1239_v12 }
  0x82   : > { %v5536_v53 = vld [vmem:[#allocation2 + $0xb4] sm:$0xff]  ;;  %1281 = vrot.lane.b32.xlu2 %v5534_v54, %s4756_s9  ;;  %v1222_v11 = vrot.slane %v1220_v41, 1 }
  0x83   : > { %v5540_v60 = vpack.c.b16 %v1041_v42, %v1041_v42  ;;  %v925_v37 = vld [vmem:[#allocation2 + $0xbc] sm:$0x1]  ;;  %v1242_v23 = vshrl.u32 %v5536_v53, 16  ;;  %v1244_v43 = vshll.u32 %v5536_v53, 16  ;;  %v5551_v42 = vsel %vm7448_vm9, %v1289_v26, %v1290_v30 }
  0x84   : > { %v1043_v3 = vunpack.c.l.b16 %v925_v37  ;;  %v1223_v13 = vor.u32 %v1222_v11, %v1218_v61  ;;  %v5558_v61 = vld [vmem:[#allocation2] sm:$0xff]  ;;  %v1287_v37 = vrot.slane %v4856_v6, 1  ;;  %v1293_v30 = vrot.slane %v5282_v4, 1 }
  0x85   : > { %v1225_v15 = vshll.u32 %v5540_v60, 16  ;;  %v1246_v19 = vrot.slane %v1244_v43, 1  ;;  %v1286_v11 = vrot.slane %v5558_v61, 1  ;;  %v1292_v43 = vrot.slane %v5237_v35, 1 }
  0x86   : > { %v5547_v22 = vpack.c.b16 %v1043_v3, %v1043_v3  ;;  %v1298_v3 = vrot.slane %v5208_v18, 1  ;;  %v1308_v4 = vrot.slane %v5431_v55, 1  ;;  %v1304_v55 = vrot.slane %v5352_v14, 1 }
  0x87   : > { %v1227_v12 = vrot.slane %v1225_v15, 1  ;;  %v1247_v36 = vor.u32 %v1246_v19, %v1242_v23  ;;  %v1299_v23 = vrot.slane %v5249_v46, 1  ;;  %v1288_v6 = vsel %vm7448_vm9, %v1286_v11, %v1287_v37 }
  0x88   : > { %v1249_v29 = vshll.u32 %v5547_v22, 16  ;;  %v5579_v15 = vsel %vm7448_vm9, %v1292_v43, %v1293_v30  ;;  %v1295_v19 = vrot.slane %v5327_v62, 1  ;;  %v1296_v46 = vrot.slane %v5361_v17, 1 }
  0x89   : > { %v5554_v41 = vsel %vm1060_vm2, %v1223_v13, %v1227_v12  ;;  %v5575_v13 = vsel %vm7448_vm9, %v1298_v3, %v1299_v23  ;;  %v1307_v12 = vrot.slane %v5398_v7, 1  ;;  %v1305_v37 = vrot.slane %v5383_v44, 1 }
  0x8a   : > { %1279 = vrot.lane.b32.xlu1 %v5554_v41, %s4756_s9  ;;  %v1251_v45 = vrot.slane %v1249_v29, 1  ;;  %1336 = vrot.lane.b32.xlu2 %v5551_v42, %s4757_s10  ;;  %v1302_v29 = vrot.slane %v5338_v2, 1  ;;  %v1316_v2 = vrot.slane %v5455_v28, 1  ;;  %v1317_v3 = vrot.slane %v5472_v20, 1 }
  0x8b   : > { %v5595_v11 = vsel %vm7448_vm9, %v1307_v12, %v1308_v4  ;;  %v1310_v23 = vrot.slane %v5375_v39, 1  ;;  %v1311_v43 = vrot.slane %v5410_v9, 1  ;;  %v5613_v30 = vsel %vm7448_vm9, %v1304_v55, %v1305_v37 }
  0x8c   : > { %v5565_v26 = vsel %vm1060_vm2, %v1247_v36, %v1251_v45  ;;  %v1301_v36 = vrot.slane %v5296_v10, 1  ;;  %v5592_v45 = vsel %vm7448_vm9, %v1295_v19, %v1296_v46  ;;  %v1313_v20 = vrot.slane %v5426_v49, 1 }
  0x8d   : > { %1283 = vrot.lane.b32.xlu0 %v5565_v26, %s4756_s9  ;;  %v5621_v44 = vsel %vm7448_vm9, %v1310_v23, %v1311_v43  ;;  %v1314_v19 = vrot.slane %v5447_v16, 1  ;;  %v1325_v9 = vrot.slane %v5529_v32, 1  ;;  %v1326_v46 = vrot.slane %v5540_v60, 1 }
  0x8e   : > { %v5600_v17 = vsel %vm7448_vm9, %v1301_v36, %v1302_v29  ;;  %v1319_v12 = vrot.slane %v5441_v34, 1  ;;  %v1320_v4 = vrot.slane %v5460_v31, 1  ;;  %v1322_v60 = vrot.slane %v5467_v25, 1 }
  0x8f   : > { %v5634_v36 = vsel %vm7448_vm9, %v1313_v20, %v1314_v19  ;;  %v5637_v29 = vsel %vm7448_vm9, %v1325_v9, %v1326_v46  ;;  %v1323_v55 = vrot.slane %v5484_v47, 1  ;;  %v1328_v31 = vrot.slane %v5517_v58, 1 }
  0x90   : > { %v5642_v16 = vsel %vm7448_vm9, %v1319_v12, %v1320_v4  ;;  %v1329_v37 = vrot.slane %v5523_v1, 1  ;;  %v1331_v47 = vrot.slane %v5536_v53, 1  ;;  %v1332_v23 = vrot.slane %v5547_v22, 1 }
  0x92   : > { %1334 = vrot.lane.b32.xlu1 %v1288_v6, %s4757_s10  ;;  %1342 = vrot.lane.b32.xlu2 %v5575_v13, %s4757_s10  ;;  %v5616_v6 = vsel %vm7448_vm9, %v1316_v2, %v1317_v3  ;;  %v5653_v2 = vsel %vm7448_vm9, %v1322_v60, %v1323_v55  ;;  %v5658_v3 = vsel %vm7448_vm9, %v1328_v31, %v1329_v37  ;;  %v5693_v19 = vpop.permute.xlu0 %1253 }
  0x93   : > { %v5669_v43 = vsel %vm7448_vm9, %v1331_v47, %v1332_v23 }
  0x95   : > { %1338 = vrot.lane.b32.xlu0 %v5579_v15, %s4757_s10 }
  0x9a   : > { %1340 = vrot.lane.b32.xlu1 %v5592_v45, %s4757_s10  ;;  %1348 = vrot.lane.b32.xlu2 %v5595_v11, %s4757_s10 }
  0x9d   : > { %1344 = vrot.lane.b32.xlu0 %v5600_v17, %s4757_s10 }
  0xa2   : > { %1346 = vrot.lane.b32.xlu1 %v5613_v30, %s4757_s10  ;;  %1354 = vrot.lane.b32.xlu2 %v5616_v6, %s4757_s10 }
  0xa5   : > { %1350 = vrot.lane.b32.xlu0 %v5621_v44, %s4757_s10 }
  0xaa   : > { %1352 = vrot.lane.b32.xlu1 %v5634_v36, %s4757_s10  ;;  %1360 = vrot.lane.b32.xlu2 %v5637_v29, %s4757_s10 }
  0xad   : > { %1356 = vrot.lane.b32.xlu0 %v5642_v16, %s4757_s10 }
  0xb0   : > { %v5666_v1 = vpop.permute.xlu2 %1261 }
  0xb2   : > { %1358 = vrot.lane.b32.xlu1 %v5653_v2, %s4757_s10  ;;  %1371 = vrot.lane.b32.xlu2 %v5268_v63, %s4758_s11 }
  0xb5   : > { %1362 = vrot.lane.b32.xlu0 %v5658_v3, %s4757_s10 }
  0xb9   : > { %v5677_v22 = vpop.permute.xlu2 %1263 }
  0xba   : > { %1364 = vrot.lane.b32.xlu1 %v5669_v43, %s4757_s10  ;;  %1377 = vrot.lane.b32.xlu2 %v5208_v18, %s4758_s11 }
  0xbd   : > { %1373 = vrot.lane.b32.xlu0 %v5237_v35, %s4758_s11 }
  0xc2   : > { %1375 = vrot.lane.b32.xlu1 %v5327_v62, %s4758_s11  ;;  %1418 = vrot.lane.b32.xlu2 %v5359_v21, %s4759_s12  ;;  %v5685_v20 = vpop.permute.xlu2 %1269 }
  0xc5   : > { %1379 = vrot.lane.b32.xlu0 %v5296_v10, %s4758_s11 }
  0xca   : > { %1381 = vrot.lane.b32.xlu1 %v5352_v14, %s4758_s11  ;;  %1537 = vrot.lane.b32.xlu2 %v5336_v59, %s4760_s13 }
  0xcb   : > { %v5699_v21 = vpop.permute.xlu2 %1275  ;;  %v5701_v9 = vpop.permute.xlu1 %1257 }
  0xcc   : > { %7455 = vst [vmem:[#allocation5_spill] sm:$0xff] %v5699_v21 }
  0xcd   : > { %1453 = vrot.lane.b32.xlu0 %v5551_v42, %s4761_s14 }
  0xce   : > { %v5705_v46 = vpop.permute.xlu0 %1255 }
  0xd2   : > { %1490 = vrot.lane.b32.xlu1 %v5237_v35, %s4762_s15  ;;  %1420 = vrot.lane.b32.xlu2 %v5336_v59, %s4759_s12 }
  0xd4   : > { %v5715_v59 = vpop.permute.xlu1 %1259 }
  0xd5   : > { %1572 = vrot.lane.b32.xlu0 %v5579_v15, %s4763_s16 }
  0xd7   : > { %v5717_v42 = vpop.permute.xlu0 %1265 }
  0xda   : > { %1383 = vrot.lane.b32.xlu1 %v5398_v7, %s4758_s11  ;;  %1539 = vrot.lane.b32.xlu2 %v5408_v8, %s4760_s13 }
  0xdc   : > { %v5713_v35 = vpop.permute.xlu2 %1281 }
  0xdd   : > { %1455 = vrot.lane.b32.xlu0 %v5579_v15, %s4761_s14  ;;  %7456 = vst [vmem:[#allocation6_spill] sm:$0xff] %v5713_v35  ;;  %v5727_v4 = vpop.permute.xlu1 %1267 }
  0xe0   : > { %v5731_v15 = vpop.permute.xlu0 %1271 }
  0xe2   : > { %1492 = vrot.lane.b32.xlu1 %v5327_v62, %s4762_s15  ;;  %1457 = vrot.lane.b32.xlu2 %v5592_v45, %s4761_s14 }
  0xe4   : > { %v5725_v12 = vpop.permute.xlu2 %1336 }
  0xe5   : > { %1574 = vrot.lane.b32.xlu0 %v5592_v45, %s4763_s16 }
  0xe6   : > { %v5741_v45 = vpop.permute.xlu1 %1273 }
  0xea   : > { %1422 = vrot.lane.b32.xlu1 %v5408_v8, %s4759_s12  ;;  %1576 = vrot.lane.b32.xlu2 %v5575_v13, %s4763_s16  ;;  %v5747_v8 = vpop.permute.xlu0 %1277 }
  0xeb   : > { %7457 = vst [vmem:[#allocation7_spill] sm:$0xff] %v5747_v8 }
  0xec   : > { %v5737_v60 = vpop.permute.xlu2 %1342 }
  0xed   : > { %1494 = vrot.lane.b32.xlu0 %v5208_v18, %s4762_s15 }
  0xf2   : > { %1541 = vrot.lane.b32.xlu1 %v5309_v33, %s4760_s13  ;;  %1496 = vrot.lane.b32.xlu2 %v5296_v10, %s4762_s15 }
  0xf4   : > { %v5749_v55 = vpop.permute.xlu2 %1348 }
  0xf5   : > { %1424 = vrot.lane.b32.xlu0 %v5309_v33, %s4759_s12 }
  0xfa   : > { %1459 = vrot.lane.b32.xlu1 %v5575_v13, %s4761_s14  ;;  %1385 = vrot.lane.b32.xlu2 %v5375_v39, %s4758_s11 }
  0xfc   : > { %v5755_v18 = vpop.permute.xlu1 %1279  ;;  %v5759_v31 = vpop.permute.xlu2 %1354 }
  0xfd   : > { %7458 = vst [vmem:[#allocation8_spill] sm:$0xff] %v5755_v18  ;;  %1543 = vrot.lane.b32.xlu0 %v5381_v50, %s4760_s13 }
  0xff   : > { %v5761_v10 = vpop.permute.xlu0 %1283 }
 0x100   : > { %7459 = vst [vmem:[#allocation9_spill] sm:$0xff] %v5761_v10 }
 0x102   : > { %1578 = vrot.lane.b32.xlu1 %v5600_v17, %s4763_s16  ;;  %1498 = vrot.lane.b32.xlu2 %v5352_v14, %s4762_s15 }
 0x104   : > { %v5767_v33 = vpop.permute.xlu1 %1334  ;;  %v5771_v13 = vpop.permute.xlu2 %1360 }
 0x105   : > { %1426 = vrot.lane.b32.xlu0 %v5381_v50, %s4759_s12  ;;  %7460 = vst [vmem:[#allocation10_spill] sm:$0xff] %v5771_v13 }
 0x107   : > { %v5773_v37 = vpop.permute.xlu0 %1338 }
 0x10a   : > { %1461 = vrot.lane.b32.xlu1 %v5600_v17, %s4761_s14  ;;  %1428 = vrot.lane.b32.xlu2 %v5429_v5, %s4759_s12 }
 0x10c   : > { %v5779_v47 = vpop.permute.xlu1 %1340  ;;  %v1372_v14 = vpop.permute.xlu2 %1371 }
 0x10d   : > { %1545 = vrot.lane.b32.xlu0 %v5429_v5, %s4760_s13  ;;  %v1872_v5 = vld [vmem:[%s7438_s1 + $0x10] sm:$0x3] }
 0x10e   : > { %v1882_v10 = vunpack.c.l.b16 %v1872_v5 }
 0x10f   : > { %v5783_v23 = vpop.permute.xlu0 %1344 }
 0x110   : > { %v1885_v13 = vpack.c.b16 %v1882_v10, %v1882_v10  ;;  %v4614_v10 = vld [vmem:[%s7438_s1] sm:$0xff] }
 0x112   : > { %1580 = vrot.lane.b32.xlu1 %v5613_v30, %s4763_s16  ;;  %1547 = vrot.lane.b32.xlu2 %v5458_v52, %s4760_s13  ;;  %v1923_v8 = vsel %vm1921_vm10, %v1885_v13, 0  ;;  %vm1835_vm10 = vcmask 261120  }
 0x113   : > { %1930 = vmatpush.bf16.msra.mxu0 %v1923_v8  ;;  %4654 = vmatpush.bf16.msra.mxu3 %v1923_v8 }
 0x114   : > { %v5789_v50 = vpop.permute.xlu1 %1346  ;;  %v5793_v17 = vpop.permute.xlu2 %1377 }
 0x115   : > { %1463 = vrot.lane.b32.xlu0 %v5613_v30, %s4761_s14 }
 0x117   : > { %v5795_v0 = vpop.permute.xlu0 %1350 }
 0x11a   : > { %1500 = vrot.lane.b32.xlu1 %v5398_v7, %s4762_s15  ;;  %1465 = vrot.lane.b32.xlu2 %v5595_v11, %s4761_s14  ;;  %v4615_v7 = vld [vmem:[%s7438_s1 + $0x8] sm:$0xff] }
 0x11b   : > { %1931 = vmatpush.bf16.msra.mxu0 %v4615_v7  ;;  %4655 = vmatpush.bf16.msra.mxu3 %v4615_v7 }
 0x11c   : > { %v5804_v35 = vpop.permute.xlu1 %1352  ;;  %v1419_v30 = vpop.permute.xlu2 %1418 }
 0x11d   : > { %1582 = vrot.lane.b32.xlu0 %v5595_v11, %s4763_s16 }
 0x11f   : > { %v5808_v18 = vpop.permute.xlu0 %1356  ;;  %1932 = vmatpush.bf16.msra.mxu0 %v4614_v10  ;;  %4656 = vmatpush.bf16.msra.mxu3 %v4614_v10 }
 0x120   : > { %7461 = vst [vmem:[#allocation11_spill] sm:$0xff] %v5808_v18 }
 0x122   : > { %1430 = vrot.lane.b32.xlu1 %v5458_v52, %s4759_s12  ;;  %1584 = vrot.lane.b32.xlu2 %v5621_v44, %s4763_s16 }
 0x124   : > { %v5817_v5 = vpop.permute.xlu1 %1358  ;;  %v1538_v11 = vpop.permute.xlu2 %1537 }
 0x125   : > { %7462 = vst [vmem:[#allocation12_spill] sm:$0xff] %v5817_v5  ;;  %1502 = vrot.lane.b32.xlu0 %v5375_v39, %s4762_s15 }
 0x127   : > { %v5824_v13 = vpop.permute.xlu0 %1362 }
 0x128   : > { %7463 = vst [vmem:[#allocation13_spill] sm:$0xff] %v5824_v13 }
 0x12a   : > { %1549 = vrot.lane.b32.xlu1 %v5445_v57, %s4760_s13  ;;  %1467 = vrot.lane.b32.xlu2 %v5621_v44, %s4761_s14 }
 0x12c   : > { %v5830_v52 = vpop.permute.xlu1 %1364  ;;  %v1421_v39 = vpop.permute.xlu2 %1420 }
 0x12d   : > { %7464 = vst [vmem:[#allocation14_spill] sm:$0xff] %v5830_v52  ;;  %1387 = vrot.lane.b32.xlu0 %v5426_v49, %s4758_s11 }
 0x12f   : > { %v1374_v8 = vpop.permute.xlu0 %1373 }
 0x132   : > { %1432 = vrot.lane.b32.xlu1 %v5445_v57, %s4759_s12  ;;  %1586 = vrot.lane.b32.xlu2 %v5634_v36, %s4763_s16 }
 0x134   : > { %v1376_v7 = vpop.permute.xlu1 %1375  ;;  %v1540_v10 = vpop.permute.xlu2 %1539 }
 0x135   : > { %1504 = vrot.lane.b32.xlu0 %v5426_v49, %s4762_s15  ;;  %v1606_v49 = vsel %vm1604_vm11, %v5558_v61, %v5693_v19 }
 0x136   : > { %v1639_v5 = vsel %vm1637_vm13, %v1606_v49, %v5767_v33 }
 0x137   : > { %v5840_v13 = vpop.permute.xlu0 %1379  ;;  %v1672_v18 = vsel %vm1670_vm12, %v1639_v5, %v1372_v14 }
 0x138   : > { %v1705_v21 = vsel %vm1703_vm14, %v1672_v18, %v1419_v30 }
 0x13a   : > { %1551 = vrot.lane.b32.xlu1 %v5470_v24, %s4760_s13  ;;  %1471 = vrot.lane.b32.xlu2 %v5616_v6, %s4761_s14 }
 0x13c   : > { %v5846_v44 = vpop.permute.xlu1 %1381  ;;  %v1458_v57 = vpop.permute.xlu2 %1457 }
 0x13d   : > { %1389 = vrot.lane.b32.xlu0 %v5455_v28, %s4758_s11 }
 0x13f   : > { %v1454_v52 = vpop.permute.xlu0 %1453 }
 0x140   : > { %v1738_v61 = vsel %vm1736_vm15, %v1705_v21, %v1454_v52  ;;  %v1608_v52 = vsel %vm1604_vm11, %v5268_v63, %v5705_v46 }
 0x142   : > { %1436 = vrot.lane.b32.xlu1 %v5496_v27, %s4759_s12  ;;  %1555 = vrot.lane.b32.xlu2 %v5482_v38, %s4760_s13 }
 0x144   : > { %v1491_v19 = vpop.permute.xlu1 %1490  ;;  %v1577_v14 = vpop.permute.xlu2 %1576 }
 0x145   : > { %1508 = vrot.lane.b32.xlu0 %v5441_v34, %s4762_s15  ;;  %v1771_v33 = vsel %vm1769_vm1, %v1738_v61, %v1491_v19  ;;  %v1641_v61 = vsel %vm1637_vm13, %v1608_v52, %v5725_v12 }
 0x146   : > { %v1804_v5 = vsel %vm1802_vm4, %v1771_v33, %v1538_v11 }
 0x147   : > { %v1573_v49 = vpop.permute.xlu0 %1572 }
 0x148   : > { %v1837_v18 = vsel %vm1835_vm10, %v1804_v5, %v1573_v49 }
 0x149   : > { %4408 = vmatmul.msk.bf16.vlgmr.msra.gmra.mxu0 %vm1888_vm3, %v1837_v18 }
 0x14a   : > { %1434 = vrot.lane.b32.xlu1 %v5470_v24, %s4759_s12  ;;  %1506 = vrot.lane.b32.xlu2 %v5455_v28, %s4762_s15  ;;  %v1674_v24 = vsel %vm1670_vm12, %v1641_v61, %v1374_v8  ;;  %v1612_v61 = vsel %vm1604_vm11, %v5327_v62, %v5715_v59 }
 0x14b   : > { %v1707_v28 = vsel %vm1703_vm14, %v1674_v24, %v1421_v39 }
 0x14c   : > { %v5872_v21 = vpop.permute.xlu1 %1383  ;;  %v5876_v30 = vpop.permute.xlu2 %1496 }
 0x14d   : > { %1469 = vrot.lane.b32.xlu0 %v5634_v36, %s4761_s14 }
 0x14f   : > { %v1456_v11 = vpop.permute.xlu0 %1455 }
 0x150   : > { %v1740_v36 = vsel %vm1736_vm15, %v1707_v28, %v1456_v11 }
 0x152   : > { %1590 = vrot.lane.b32.xlu1 %v5642_v16, %s4763_s16  ;;  %1391 = vrot.lane.b32.xlu2 %v5441_v34, %s4758_s11  ;;  %v4704_v34 = vld [vmem:[#allocation2 + $0x18] sm:$0xff] }
 0x153   : > { %v1610_v39 = vsel %vm1604_vm11, %v4704_v34, %v5701_v9 }
 0x154   : > { %v1493_v19 = vpop.permute.xlu1 %1492  ;;  %v5893_v46 = vpop.permute.xlu2 %1385 }
 0x155   : > { %1553 = vrot.lane.b32.xlu0 %v5496_v27, %s4760_s13  ;;  %v1773_v63 = vsel %vm1769_vm1, %v1740_v36, %v1493_v19  ;;  %v1643_v27 = vsel %vm1637_vm13, %v1610_v39, %v5773_v37  ;;  %v1645_v36 = vsel %vm1637_vm13, %v1612_v61, %v5779_v47 }
 0x156   : > { %v1806_v12 = vsel %vm1802_vm4, %v1773_v63, %v1540_v10  ;;  %v1676_v10 = vsel %vm1670_vm12, %v1643_v27, %v1376_v7  ;;  %v1678_v63 = vsel %vm1670_vm12, %v1645_v36, %v5793_v17  ;;  %v871_v17 = vld [vmem:[#allocation2 + $0xc0] sm:$0xf] }
 0x157   : > { %v1575_v8 = vpop.permute.xlu0 %1574 }
 0x158   : > { %v1839_v33 = vsel %vm1835_vm10, %v1806_v12, %v1575_v8 }
 0x159   : > { %4409 = vmatmul.msk.bf16.gmra.mxu0 %vm1888_vm3, %v1839_v33 }
 0x15a   : > { %1588 = vrot.lane.b32.xlu1 %v5616_v6, %s4763_s16  ;;  %1510 = vrot.lane.b32.xlu2 %v5467_v25, %s4762_s15 }
 0x15c   : > { %v1423_v5 = vpop.permute.xlu1 %1422  ;;  %v5909_v49 = vpop.permute.xlu2 %1498 }
 0x15d   : > { %1438 = vrot.lane.b32.xlu0 %v5482_v38, %s4759_s12  ;;  %v1709_v6 = vsel %vm1703_vm14, %v1676_v10, %v1423_v5  ;;  %v875_v10 = vld [vmem:[#allocation2 + $0xc8] sm:$0x1] }
 0x15e   : > { %v1742_v9 = vsel %vm1736_vm15, %v1709_v6, %v1458_v57 }
 0x15f   : > { %v1495_v18 = vpop.permute.xlu0 %1494 }
 0x160   : > { %v1775_v37 = vsel %vm1769_vm1, %v1742_v9, %v1495_v18 }
 0x162   : > { %1473 = vrot.lane.b32.xlu1 %v5642_v16, %s4761_s14  ;;  %1393 = vrot.lane.b32.xlu2 %v5467_v25, %s4758_s11  ;;  %v436_v16 = vld [vmem:[%s4875_s8 + $0x7c] sm:$0xf] }
 0x163   : > { %v704_v28 = vshrl.u32 %v436_v16, 16  ;;  %v707_v59 = vshll.u32 %v436_v16, 16 }
 0x164   : > { %v1542_v7 = vpop.permute.xlu1 %1541  ;;  %v5921_v11 = vpop.permute.xlu2 %1428 }
 0x165   : > { %1557 = vrot.lane.b32.xlu0 %v5504_v48, %s4760_s13  ;;  %v1808_v38 = vsel %vm1802_vm4, %v1775_v37, %v1542_v7  ;;  %v706_v8 = vrot.slane %v704_v28, 7 }
 0x166   : > { %v1841_v52 = vsel %vm1835_vm10, %v1808_v38, %v1577_v14  ;;  %v435_v14 = vld [vmem:[%s4875_s8 + $0x78] sm:$0xf]  ;;  %v4705_v38 = vld [vmem:[#allocation2 + $0x30] sm:$0xff] }
 0x167   : > { %v1425_v57 = vpop.permute.xlu0 %1424  ;;  %v696_v19 = vshrl.u32 %v435_v14, 16  ;;  %v699_v62 = vshll.u32 %v435_v14, 16  ;;  %v711_v39 = vrot.slane %v706_v8, 4  ;;  %v709_v47 = vor.u32 %v707_v59, %v706_v8 }
 0x168   : > { %v1711_v33 = vsel %vm1703_vm14, %v1678_v63, %v1425_v57 }
 0x169   : > { %4410 = vmatmul.msk.bf16.gmra.mxu0 %vm1888_vm3, %v1841_v52  ;;  %v698_v34 = vrot.slane %v696_v19, 7  ;;  %v876_v6 = vsel %vm4963_vm7, %v711_v39, %v875_v10  ;;  %v1614_v52 = vsel %vm1604_vm11, %v4705_v38, %v5666_v1  ;;  %v4707_v10 = vld [vmem:[#allocation2 + $0x48] sm:$0xff]  ;;  %vm2121_vm7 = vcmask 57344  }
 0x16a   : > { %1592 = vrot.lane.b32.xlu1 %v5653_v2, %s4763_s16  ;;  %1512 = vrot.lane.b32.xlu2 %v5529_v32, %s4762_s15  ;;  %877 = vst [vmem:[#allocation2 + $0xc8] sm:$0x1] %v876_v6  ;;  %v1647_v57 = vsel %vm1637_vm13, %v1614_v52, %v5737_v60 }
 0x16b   : > { %v701_v27 = vor.u32 %v699_v62, %v698_v34  ;;  %v702_v5 = vrot.slane %v698_v34, 4  ;;  %v1680_v16 = vsel %vm1670_vm12, %v1647_v57, %v5840_v13 }
 0x16c   : > { %v1460_v25 = vpop.permute.xlu1 %1459  ;;  %v5935_v24 = vpop.permute.xlu2 %1547 }
 0x16d   : > { %1440 = vrot.lane.b32.xlu0 %v5504_v48, %s4759_s12  ;;  %v1744_v48 = vsel %vm1736_vm15, %v1711_v33, %v1460_v25  ;;  %v710_v37 = vsel %vm4942_vm6, %v702_v5, %v709_v47 }
 0x16e   : > { %v1777_v18 = vsel %vm1769_vm1, %v1744_v48, %v5876_v30  ;;  %874 = vst.msk [vmem:[#allocation2 + $0xc4] sm:$0xf] %vm349_vm0, %v710_v37  ;;  %vm2118_vm0 = vcmask 60416  }
 0x16f   : > { %v1544_v12 = vpop.permute.xlu0 %1543 }
 0x170   : > { %v1810_v51 = vsel %vm1802_vm4, %v1777_v18, %v1544_v12 }
 0x171   : > { %v928_v33 = vld [vmem:[#allocation2 + $0xc8] sm:$0x1] }
 0x172   : > { %1475 = vrot.lane.b32.xlu1 %v5653_v2, %s4761_s14  ;;  %1395 = vrot.lane.b32.xlu2 %v5529_v32, %s4758_s11  ;;  %v872_v2 = vsel %vm4978_vm8, %v701_v27, %v871_v17  ;;  %v1404_v48 = vunpack.c.l.b16 %v928_v33  ;;  %v1618_v17 = vsel %vm1604_vm11, %v4707_v10, %v5717_v42  ;;  %v931_v42 = vld [vmem:[#allocation2 + $0xd4] sm:$0x1]  ;;  %vm6202_vm8 = vmand %vm2118_vm0, %vm762_vm5  ;;  %vm7468_vm5 = vsmask.f32 256 }
 0x173   : > { %873 = vst [vmem:[#allocation2 + $0xc0] sm:$0xf] %v872_v2 }
 0x174   : > { %v1579_v9 = vpop.permute.xlu1 %1578  ;;  %v5958_v7 = vpop.permute.xlu2 %1465 }
 0x175   : > { %1559 = vrot.lane.b32.xlu0 %v5554_v41, %s4760_s13  ;;  %v1843_v30 = vsel %vm1835_vm10, %v1810_v51, %v1579_v9 }
 0x177   : > { %v1427_v32 = vpop.permute.xlu0 %1426 }
 0x178   : > { %v1713_v14 = vsel %vm1703_vm14, %v1680_v16, %v1427_v32 }
 0x179   : > { %4411 = vmatmul.msk.bf16.gmra.mxu0 %vm1888_vm3, %v1843_v30 }
 0x17a   : > { %1594 = vrot.lane.b32.xlu1 %v5637_v29, %s4763_s16  ;;  %1514 = vrot.lane.b32.xlu2 %v5517_v58, %s4762_s15 }
 0x17c   : > { %v1462_v56 = vpop.permute.xlu1 %1461  ;;  %v5974_v25 = vpop.permute.xlu2 %1584 }
 0x17d   : > { %1442 = vrot.lane.b32.xlu0 %v5554_v41, %s4759_s12  ;;  %v1746_v28 = vsel %vm1736_vm15, %v1713_v14, %v1462_v56  ;;  %v4613_v56 = vld [vmem:[#allocation2 + $0xcc] sm:$0xff] }
 0x17e   : > { %v1779_v41 = vsel %vm1769_vm1, %v1746_v28, %v5909_v49  ;;  %v1528_v14 = vshll.u32 %v4613_v56, 16 }
 0x17f   : > { %v1546_v61 = vpop.permute.xlu0 %1545 }
 0x180   : > { %v1812_v60 = vsel %vm1802_vm4, %v1779_v41, %v1546_v61 }
 0x182   : > { %1477 = vrot.lane.b32.xlu1 %v5637_v29, %s4761_s14  ;;  %1397 = vrot.lane.b32.xlu2 %v5517_v58, %s4758_s11  ;;  %v4706_v29 = vld [vmem:[#allocation2 + $0x3c] sm:$0xff] }
 0x183   : > { %v1616_v49 = vsel %vm1604_vm11, %v4706_v29, %v5677_v22 }
 0x184   : > { %v1581_v1 = vpop.permute.xlu1 %1580  ;;  %v5990_v19 = vpop.permute.xlu2 %1467  ;;  %v1649_v63 = vsel %vm1637_vm13, %v1616_v49, %v5783_v23 }
 0x185   : > { %1561 = vrot.lane.b32.xlu0 %v5534_v54, %s4760_s13  ;;  %v1845_v36 = vsel %vm1835_vm10, %v1812_v60, %v1581_v1  ;;  %v1682_v12 = vsel %vm1670_vm12, %v1649_v63, %v5846_v44  ;;  %v1526_v1 = vshrl.u32 %v4613_v56, 16  ;;  %v1530_v60 = vrot.slane %v1528_v14, 1 }
 0x186   : > { %v1715_v34 = vsel %vm1703_vm14, %v1682_v12, %v5921_v11  ;;  %v1405_v11 = vpack.c.b16 %v1404_v48, %v1404_v48  ;;  %v7465_v63 = vmov 0  }
 0x187   : > { %v1464_v13 = vpop.permute.xlu0 %1463  ;;  %2123 = vst.msk [vmem:[#allocation3 + $0xc] sm:$0xf] %vm2118_vm0, %v7465_v63  ;;  %v1531_v12 = vor.u32 %v1530_v60, %v1526_v1 }
 0x188   : > { %v1748_v62 = vsel %vm1736_vm15, %v1715_v34, %v1464_v13  ;;  %v1451_v52 = vrot.slane %v1405_v11, 1  ;;  %2119 = vst.msk [vmem:[#allocation3] sm:$0xf] %vm2118_vm0, %v7465_v63 }
 0x189   : > { %4412 = vmatmul.msk.bf16.gmra.mxu0 %vm1888_vm3, %v1845_v36  ;;  %v4708_v36 = vld [vmem:[#allocation2 + $0x54] sm:$0xff]  ;;  %2120 = vst.msk [vmem:[#allocation3 + $0x4] sm:$0xf] %vm2118_vm0, %v7465_v63 }
 0x18a   : > { %1596 = vrot.lane.b32.xlu1 %v5658_v3, %s4763_s16  ;;  %1516 = vrot.lane.b32.xlu2 %v5536_v53, %s4762_s15  ;;  %2124 = vst.msk [vmem:[#allocation3 + $0x10] sm:$0xf] %vm2118_vm0, %v7465_v63 }
 0x18b   : > { %2126 = vst.msk [vmem:[#allocation3 + $0x18] sm:$0xf] %vm2118_vm0, %v7465_v63 }
 0x18c   : > { %v1501_v58 = vpop.permute.xlu1 %1500  ;;  %v6011_v22 = vpop.permute.xlu2 %1586  ;;  %2127 = vst.msk [vmem:[#allocation3 + $0x1c] sm:$0xf] %vm2118_vm0, %v7465_v63 }
 0x18d   : > { %1444 = vrot.lane.b32.xlu0 %v5534_v54, %s4759_s12  ;;  %v1781_v59 = vsel %vm1769_vm1, %v1748_v62, %v1501_v58  ;;  %v4612_v54 = vld [vmem:[#allocation2 + $0xc0] sm:$0xff]  ;;  %v1620_v58 = vsel %vm1604_vm11, %v4708_v36, %v5727_v4  ;;  %2129 = vst.msk [vmem:[#allocation3 + $0x24] sm:$0xf] %vm2118_vm0, %v7465_v63  ;;  %v1569_v62 = vrot.slane %v4613_v56, 1  ;;  %v4711_v36 = vld [vmem:[#allocation2 + $0x78] sm:$0xff] }
 0x18e   : > { %v1814_v44 = vsel %vm1802_vm4, %v1781_v59, %v5935_v24  ;;  %v1409_v39 = vshll.u32 %v4612_v54, 16  ;;  %v1651_v24 = vsel %vm1637_vm13, %v1618_v17, %v5789_v50  ;;  %v1450_v38 = vrot.slane %v4612_v54, 1  ;;  %2130 = vst.msk [vmem:[#allocation3 + $0x28] sm:$0xf] %vm2118_vm0, %v7465_v63  ;;  %v4710_v17 = vld [vmem:[#allocation2 + $0x60] sm:$0xff] }
 0x18f   : > { %v1583_v8 = vpop.permute.xlu0 %1582  ;;  %v1684_v9 = vsel %vm1670_vm12, %v1651_v24, %v5872_v21  ;;  %v1523_v21 = vunpack.c.l.b16 %v931_v42  ;;  %v1653_v29 = vsel %vm1637_vm13, %v1620_v58, %v5749_v55  ;;  %2132 = vst.msk [vmem:[#allocation3 + $0x30] sm:$0xf] %vm2118_vm0, %v7465_v63  ;;  %v1622_v24 = vsel %vm1604_vm11, %v4710_v17, %v5685_v20 }
 0x190   : > { %v1847_v5 = vsel %vm1835_vm10, %v1814_v44, %v1583_v8  ;;  %v1411_v47 = vrot.slane %v1409_v39, 1  ;;  %v1452_v28 = vsel %vm7448_vm9, %v1450_v38, %v1451_v52  ;;  %2133 = vst.msk [vmem:[#allocation3 + $0x34] sm:$0xf] %vm2118_vm0, %v7465_v63  ;;  %v1626_v58 = vsel %vm1604_vm11, %v4711_v36, %v5741_v45 }
 0x191   : > { %2135 = vst.msk [vmem:[#allocation3 + $0x3c] sm:$0xf] %vm2118_vm0, %v7465_v63 }
 0x192   : > { %1479 = vrot.lane.b32.xlu1 %v5658_v3, %s4761_s14  ;;  %1399 = vrot.lane.b32.xlu2 %v5536_v53, %s4758_s11  ;;  %v1407_v3 = vshrl.u32 %v4612_v54, 16  ;;  %v1414_v53 = vshll.u32 %v1405_v11, 16  ;;  %2136 = vst.msk [vmem:[#allocation3 + $0x40] sm:$0xf] %vm2118_vm0, %v7465_v63  ;;  %v4709_v11 = vld [vmem:[#allocation2 + $0x6c] sm:$0xff] }
 0x193   : > { %v1624_v39 = vsel %vm1604_vm11, %v4709_v11, %v5731_v15  ;;  %2138 = vst.msk [vmem:[#allocation3 + $0x48] sm:$0xf] %vm2118_vm0, %v7465_v63 }
 0x194   : > { %v1431_v23 = vpop.permute.xlu1 %1430  ;;  %v6028_v18 = vpop.permute.xlu2 %1471  ;;  %v1412_v2 = vor.u32 %v1411_v47, %v1407_v3  ;;  %v1416_v51 = vrot.slane %v1414_v53, 1  ;;  %2139 = vst.msk [vmem:[#allocation3 + $0x4c] sm:$0xf] %vm2118_vm0, %v7465_v63 }
 0x195   : > { %1563 = vrot.lane.b32.xlu0 %v5565_v26, %s4760_s13  ;;  %v1717_v37 = vsel %vm1703_vm14, %v1684_v9, %v1431_v23  ;;  %2141 = vst.msk [vmem:[#allocation3 + $0x54] sm:$0xf] %vm2118_vm0, %v7465_v63 }
 0x196   : > { %v1750_v30 = vsel %vm1736_vm15, %v1717_v37, %v5958_v7  ;;  %v1417_v50 = vsel %vm1060_vm2, %v1412_v2, %v1416_v51  ;;  %v1524_v7 = vpack.c.b16 %v1523_v21, %v1523_v21  ;;  %2142 = vst.msk [vmem:[#allocation3 + $0x58] sm:$0xf] %vm2118_vm0, %v7465_v63  ;;  %v6156_v51 = vld [vmem:[%s7440_s3] ss:$0 sm:$0xff] }
 0x197   : > { %v1503_v27 = vpop.permute.xlu0 %1502  ;;  %2144 = vst.msk [vmem:[#allocation3 + $0x60] sm:$0xf] %vm2118_vm0, %v7465_v63 }
 0x198   : > { %v1533_v13 = vshll.u32 %v1524_v7, 16  ;;  %v1570_v59 = vrot.slane %v1524_v7, 1  ;;  %2145 = vst.msk [vmem:[#allocation3 + $0x64] sm:$0xf] %vm2118_vm0, %v7465_v63 }
 0x199   : > { %4413 = vmatmul.msk.bf16.gmra.mxu0 %vm1888_vm3, %v1847_v5  ;;  %v1657_v5 = vsel %vm1637_vm13, %v1624_v39, %v5804_v35  ;;  %2147 = vst.msk [vmem:[#allocation3 + $0x6c] sm:$0xf] %vm2118_vm0, %v7465_v63 }
 0x19a   : > { %1598 = vrot.lane.b32.xlu1 %v5669_v43, %s4763_s16  ;;  %1518 = vrot.lane.b32.xlu2 %v4612_v54, %s4762_s15  ;;  %v1535_v8 = vrot.slane %v1533_v13, 1  ;;  %v1571_v44 = vsel %vm7448_vm9, %v1569_v62, %v1570_v59  ;;  %2148 = vst.msk [vmem:[#allocation3 + $0x70] sm:$0xf] %vm2118_vm0, %v7465_v63  ;;  %vm6236_vm9 = vmand %vm2121_vm7, %vm7468_vm5 }
 0x19b   : > { %2150 = vst.msk [vmem:[#allocation3 + $0x78] sm:$0xf] %vm2118_vm0, %v7465_v63 }
 0x19c   : > { %v1550_v6 = vpop.permute.xlu1 %1549  ;;  %v6046_v61 = vpop.permute.xlu2 %1555  ;;  %v1536_v34 = vsel %vm1060_vm2, %v1531_v12, %v1535_v8  ;;  %2151 = vst.msk [vmem:[#allocation3 + $0x7c] sm:$0xf] %vm2118_vm0, %v7465_v63 }
 0x19d   : > { %1446 = vrot.lane.b32.xlu0 %v5565_v26, %s4759_s12  ;;  %v1783_v26 = vsel %vm1769_vm1, %v1750_v30, %v1503_v27  ;;  %2153 = vst.msk [vmem:[#allocation3 + $0x84] sm:$0xf] %vm2118_vm0, %v7465_v63 }
 0x19e   : > { %v1816_v16 = vsel %vm1802_vm4, %v1783_v26, %v1550_v6  ;;  %v1655_v6 = vsel %vm1637_vm13, %v1622_v24, %v5795_v0  ;;  %2154 = vst.msk [vmem:[#allocation3 + $0x88] sm:$0xf] %vm2118_vm0, %v7465_v63 }
 0x19f   : > { %v6035_v32 = vpop.permute.xlu0 %1387  ;;  %v1849_v41 = vsel %vm1835_vm10, %v1816_v16, %v5974_v25  ;;  %v1686_v25 = vsel %vm1670_vm12, %v1653_v29, %v5893_v46  ;;  %2156 = vst.msk [vmem:[#allocation3 + $0x90] sm:$0xf] %vm2118_vm0, %v7465_v63 }
 0x1a0   : > { %v1688_v9 = vsel %vm1670_vm12, %v1655_v6, %v6035_v32  ;;  %2157 = vst.msk [vmem:[#allocation3 + $0x94] sm:$0xf] %vm2118_vm0, %v7465_v63 }
 0x1a1   : > { %2159 = vst.msk [vmem:[#allocation3 + $0x9c] sm:$0xf] %vm2118_vm0, %v7465_v63 }
 0x1a2   : > { %1481 = vrot.lane.b32.xlu1 %v5669_v43, %s4761_s14  ;;  %1401 = vrot.lane.b32.xlu2 %v4612_v54, %s4758_s11  ;;  %2160 = vst.msk [vmem:[#allocation3 + $0xa0] sm:$0xf] %vm2118_vm0, %v7465_v63 }
 0x1a3   : > { %2162 = vst.msk [vmem:[#allocation3 + $0xa8] sm:$0xf] %vm2118_vm0, %v7465_v63 }
 0x1a4   : > { %v1433_v57 = vpop.permute.xlu1 %1432  ;;  %v6070_v33 = vpop.permute.xlu2 %1506  ;;  %2163 = vst.msk [vmem:[#allocation3 + $0xac] sm:$0xf] %vm2118_vm0, %v7465_v63 }
 0x1a5   : > { %1565 = vrot.lane.b32.xlu0 %v1417_v50, %s4760_s13  ;;  %v1719_v4 = vsel %vm1703_vm14, %v1686_v25, %v1433_v57  ;;  %2165 = vst.msk [vmem:[#allocation3 + $0xb4] sm:$0xf] %vm2118_vm0, %v7465_v63  ;;  %v1659_v25 = vsel %vm1637_vm13, %v1626_v58, %v5759_v31 }
 0x1a6   : > { %v1752_v46 = vsel %vm1736_vm15, %v1719_v4, %v5990_v19  ;;  %2166 = vst.msk [vmem:[#allocation3 + $0xb8] sm:$0xf] %vm2118_vm0, %v7465_v63 }
 0x1a7   : > { %v1505_v43 = vpop.permute.xlu0 %1504  ;;  %2168 = vst.msk [vmem:[#allocation3 + $0xc0] sm:$0xf] %vm2118_vm0, %v7465_v63 }
 0x1a8   : > { %v1785_v54 = vsel %vm1769_vm1, %v1752_v46, %v1505_v43  ;;  %2169 = vst.msk [vmem:[#allocation3 + $0xc4] sm:$0xf] %vm2118_vm0, %v7465_v63 }
 0x1a9   : > { %4414 = vmatmul.msk.bf16.gmra.mxu0 %vm1888_vm3, %v1849_v41  ;;  %2171 = vst.msk [vmem:[#allocation3 + $0xcc] sm:$0xf] %vm2118_vm0, %v7465_v63 }
 0x1aa   : > { %1600 = vrot.lane.b32.xlu1 %v1452_v28, %s4763_s16  ;;  %1520 = vrot.lane.b32.xlu2 %v4613_v56, %s4762_s15  ;;  %2172 = vst.msk [vmem:[#allocation3 + $0xd0] sm:$0xf] %vm2118_vm0, %v7465_v63 }
 0x1ab   : > { %2125 = vst.msk [vmem:[#allocation3 + $0x14] sm:$0x1] %vm2121_vm7, %v7465_v63 }
 0x1ac   : > { %v1552_v49 = vpop.permute.xlu1 %1551  ;;  %v6108_v47 = vpop.permute.xlu2 %1391  ;;  %2122 = vst.msk [vmem:[#allocation3 + $0x8] sm:$0x1] %vm2121_vm7, %v7465_v63 }
 0x1ad   : > { %1448 = vrot.lane.b32.xlu0 %v1417_v50, %s4759_s12  ;;  %v1818_v19 = vsel %vm1802_vm4, %v1785_v54, %v1552_v49  ;;  %v2529_v49 = vld [vmem:[#allocation3 + $0xc] sm:$0xf]  ;;  %2128 = vst.msk [vmem:[#allocation3 + $0x20] sm:$0x1] %vm2121_vm7, %v7465_v63  ;;  %v1692_v45 = vsel %vm1670_vm12, %v1659_v25, %v6108_v47 }
 0x1ae   : > { %v1851_v27 = vsel %vm1835_vm10, %v1818_v19, %v6011_v22  ;;  %2131 = vst.msk [vmem:[#allocation3 + $0x2c] sm:$0x1] %vm2121_vm7, %v7465_v63 }
 0x1af   : > { %v1390_v55 = vpop.permute.xlu0 %1389  ;;  %2134 = vst.msk [vmem:[#allocation3 + $0x38] sm:$0x1] %vm2121_vm7, %v7465_v63 }
 0x1b0   : > { %v1690_v3 = vsel %vm1670_vm12, %v1657_v5, %v1390_v55  ;;  %2137 = vst.msk [vmem:[#allocation3 + $0x44] sm:$0x1] %vm2121_vm7, %v7465_v63 }
 0x1b1   : > { %2140 = vst.msk [vmem:[#allocation3 + $0x50] sm:$0x1] %vm2121_vm7, %v7465_v63 }
 0x1b2   : > { %1483 = vrot.lane.b32.xlu1 %v1452_v28, %s4761_s14  ;;  %2143 = vst.msk [vmem:[#allocation3 + $0x5c] sm:$0x1] %vm2121_vm7, %v7465_v63  ;;  %s4764_s14 = smov 56  }
 0x1b3   : > { %2146 = vst.msk [vmem:[#allocation3 + $0x68] sm:$0x1] %vm2121_vm7, %v7465_v63 }
 0x1b4   : > { %v1437_v48 = vpop.permute.xlu1 %1436  ;;  %v6146_v37 = vpop.permute.xlu2 %1510  ;;  %2149 = vst.msk [vmem:[#allocation3 + $0x74] sm:$0x1] %vm2121_vm7, %v7465_v63 }
 0x1b5   : > { %1567 = vrot.lane.b32.xlu0 %v1536_v34, %s4760_s13  ;;  %v1723_v15 = vsel %vm1703_vm14, %v1690_v3, %v1437_v48  ;;  %2152 = vst.msk [vmem:[#allocation3 + $0x80] sm:$0x1] %vm2121_vm7, %v7465_v63  ;;  %s4595_s13 = sshll.u32 %s7505_s24, 8 }
 0x1b6   : > { %v1756_v22 = vsel %vm1736_vm15, %v1723_v15, %v6028_v18  ;;  %v6140_v18 = vld [vmem:[%s7439_s2] ss:$0 sm:$0xff]  ;;  %2155 = vst.msk [vmem:[#allocation3 + $0x8c] sm:$0x1] %vm2121_vm7, %v7465_v63 }
 0x1b7   : > { %v1509_v23 = vpop.permute.xlu0 %1508  ;;  %2158 = vst.msk [vmem:[#allocation3 + $0x98] sm:$0x1] %vm2121_vm7, %v7465_v63 }
 0x1b8   : > { %v1789_v10 = vsel %vm1769_vm1, %v1756_v22, %v1509_v23  ;;  %2161 = vst.msk [vmem:[#allocation3 + $0xa4] sm:$0x1] %vm2121_vm7, %v7465_v63 }
 0x1b9   : > { %4415 = vmatmul.msk.bf16.gmra.mxu0 %vm1888_vm3, %v1851_v27  ;;  %v1822_v0 = vsel %vm1802_vm4, %v1789_v10, %v6046_v61  ;;  %v2535_v27 = vld [vmem:[#allocation3 + $0x14] sm:$0x1]  ;;  %2164 = vst.msk [vmem:[#allocation3 + $0xb0] sm:$0x1] %vm2121_vm7, %v7465_v63 }
 0x1ba   : > { %1602 = vrot.lane.b32.xlu1 %v1571_v44, %s4763_s16  ;;  %2167 = vst.msk [vmem:[#allocation3 + $0xbc] sm:$0x1] %vm2121_vm7, %v7465_v63 }
 0x1bb   : > { %2170 = vst.msk [vmem:[#allocation3 + $0xc8] sm:$0x1] %vm2121_vm7, %v7465_v63 }
 0x1bc   : > { %v1435_v35 = vpop.permute.xlu1 %1434  ;;  %v6185_v7 = vpop.permute.xlu2 %1393  ;;  %2173 = vst.msk [vmem:[#allocation3 + $0xd4] sm:$0x1] %vm2121_vm7, %v7465_v63 }
 0x1bd   : > { %v1721_v2 = vsel %vm1703_vm14, %v1688_v9, %v1435_v35 }
 0x1bf   : > { %v1470_v53 = vpop.permute.xlu0 %1469 }
 0x1c0   : > { %v1754_v56 = vsel %vm1736_vm15, %v1721_v2, %v1470_v53  ;;  %v4616_v2 = vld [vmem:[#allocation3] sm:$0xff] }
 0x1c1   : > { %v1787_v38 = vsel %vm1769_vm1, %v1754_v56, %v6070_v33 }
 0x1c4   : > { %v1591_v20 = vpop.permute.xlu1 %1590  ;;  %v6225_v48 = vpop.permute.xlu2 %1512 }
 0x1c5   : > { %v1855_v32 = vsel %vm1835_vm10, %v1822_v0, %v1591_v20  ;;  %v2645_v0 = vld [vmem:[#allocation3 + $0x8] sm:$0x1] }
 0x1c6   : > { %v1934_v42 = vpop.f32.mrf.mxu0  ;;  %4417 = vmatmul.msk.bf16.vlgmr.msra.gmra.mxu3 %vm1888_vm3, %v1855_v32  ;;  %v2793_v32 = vunpack.c.l.b16 %v2645_v0 }
 0x1c7   : > { %v1554_v30 = vpop.permute.xlu0 %1553  ;;  %v2018_v50 = vmul.f32 %v6140_v18, %v1934_v42  ;;  %v4712_v42 = vld [vmem:[#allocation2 + $0x84] sm:$0xff] }
 0x1c8   : > { %v1820_v26 = vsel %vm1802_vm4, %v1787_v38, %v1554_v30  ;;  %v7471_v30 = vld [vmem:[#allocation5_spill] sm:$0xff] }
 0x1c9   : > { %v2054_v21 = vadd.f32 %v6156_v51, %v2018_v50  ;;  %v1628_v50 = vsel %vm1604_vm11, %v4712_v42, %v7471_v30 }
 0x1cb   : > { %v2086_v52 = vmax.f32 %v2054_v21, 0.0 }
 0x1cc   : > { %v1589_v57 = vpop.permute.xlu1 %1588 }
 0x1cd   : > { %v2174_v16 = vpack.c.bf16 %v2086_v52, %v2086_v52  ;;  %v1853_v61 = vsel %vm1835_vm10, %v1820_v26, %v1589_v57  ;;  %v7472_v52 = vld [vmem:[#allocation11_spill] sm:$0xff]  ;;  %v6268_v57 = vpop.permute.xlu2 %1395 }
 0x1ce   : > { %v1936_v14 = vpop.f32.mrf.mxu0  ;;  %4416 = vmatmul.msk.bf16.gmra.mxu0 %vm1888_vm3, %v1853_v61  ;;  %v1661_v26 = vsel %vm1637_vm13, %v1628_v50, %v7472_v52  ;;  %v6270_v61 = vpack.c.b16 %v2793_v32, %v2793_v32  ;;  %v4713_v50 = vld [vmem:[#allocation2 + $0x90] sm:$0xff] }
 0x1cf   : > { %v2207_v43 = vshrl.u32 %v2174_v16, 16  ;;  %v1439_v28 = vpop.permute.xlu0 %1438  ;;  %v2019_v41 = vmul.f32 %v6140_v18, %v1936_v14  ;;  %v2210_v60 = vshll.u32 %v2174_v16, 16  ;;  %v2538_v16 = vld [vmem:[#allocation3 + $0x18] sm:$0xf]  ;;  %v2828_v14 = vshll.u32 %v4616_v2, 16 }
 0x1d0   : > { %v1725_v33 = vsel %vm1703_vm14, %v1692_v45, %v1439_v28  ;;  %v2833_v58 = vshll.u32 %v6270_v61, 16 }
 0x1d1   : > { %v2209_v1 = vrot.slane %v2207_v43, 7  ;;  %v2055_v13 = vadd.f32 %v6156_v51, %v2019_v41  ;;  %v1694_v43 = vsel %vm1670_vm12, %v1661_v26, %v6185_v7  ;;  %v2830_v36 = vrot.slane %v2828_v14, 1 }
 0x1d2   : > { %v2835_v63 = vrot.slane %v2833_v58, 1 }
 0x1d3   : > { %v2212_v4 = vor.u32 %v2210_v60, %v2209_v1  ;;  %v2087_v12 = vmax.f32 %v2055_v13, 0.0  ;;  %v2213_v5 = vrot.slane %v2209_v1, 4  ;;  %v2826_v13 = vshrl.u32 %v4616_v2, 16 }
 0x1d4   : > { %v1474_v8 = vpop.permute.xlu1 %1473 }
 0x1d5   : > { %v2530_v55 = vsel %vm6202_vm8, %v2212_v4, %v2529_v49  ;;  %v2175_v46 = vpack.c.bf16 %v2087_v12, %v2087_v12  ;;  %v1758_v31 = vsel %vm1736_vm15, %v1725_v33, %v1474_v8  ;;  %v2831_v8 = vor.u32 %v2830_v36, %v2826_v13 }
 0x1d6   : > { %2531 = vst [vmem:[#allocation3 + $0xc] sm:$0xf] %v2530_v55  ;;  %v1939_v34 = vpop.f32.mrf.mxu0  ;;  %v1791_v44 = vsel %vm1769_vm1, %v1758_v31, %v6146_v37 }
 0x1d7   : > { %v2215_v62 = vshrl.u32 %v2175_v46, 16  ;;  %v1558_v59 = vpop.permute.xlu0 %1557  ;;  %v2020_v54 = vmul.f32 %v6140_v18, %v1939_v34  ;;  %v2218_v23 = vshll.u32 %v2175_v46, 16 }
 0x1d8   : > { %v1824_v35 = vsel %vm1802_vm4, %v1791_v44, %v1558_v59  ;;  %v2836_v59 = vsel %vm1060_vm2, %v2831_v8, %v2835_v63 }
 0x1d9   : > { %v2217_v19 = vrot.slane %v2215_v62, 7  ;;  %v2056_v11 = vadd.f32 %v6156_v51, %v2020_v54  ;;  %3017 = vrot.lane.b32.xlu2 %v2836_v59, %s4757_s10 }
 0x1db   : > { %v2220_v3 = vor.u32 %v2218_v23, %v2217_v19  ;;  %v2222_v47 = vrot.slane %v2217_v19, 4  ;;  %v2088_v15 = vmax.f32 %v2056_v11, 0.0 }
 0x1dc   : > { %v1593_v22 = vpop.permute.xlu1 %1592 }
 0x1dd   : > { %v2221_v53 = vsel %vm4942_vm6, %v2213_v5, %v2220_v3  ;;  %v2536_v10 = vsel %vm6236_vm9, %v2222_v47, %v2535_v27  ;;  %v2176_v17 = vpack.c.bf16 %v2088_v15, %v2088_v15  ;;  %v1857_v24 = vsel %vm1835_vm10, %v1824_v35, %v1593_v22  ;;  %v2542_v27 = vld [vmem:[#allocation3 + $0x20] sm:$0x1]  ;;  %v1515_v22 = vpop.permute.xlu2 %1514 }
 0x1de   : > { %2532 = vst.msk [vmem:[#allocation3 + $0x10] sm:$0xf] %vm2118_vm0, %v2221_v53  ;;  %v1941_v6 = vpop.f32.mrf.mxu0  ;;  %4418 = vmatmul.msk.bf16.gmra.mxu3 %vm1888_vm3, %v1857_v24 }
 0x1df   : > { %2537 = vst [vmem:[#allocation3 + $0x14] sm:$0x1] %v2536_v10  ;;  %v2224_v9 = vshrl.u32 %v2176_v17, 16  ;;  %v1441_v37 = vpop.permute.xlu0 %1440  ;;  %v2021_v20 = vmul.f32 %v6140_v18, %v1941_v6  ;;  %v2227_v21 = vshll.u32 %v2176_v17, 16 }
 0x1e0   : > { %v1727_v1 = vsel %vm1703_vm14, %v1694_v43, %v1441_v37  ;;  %v2545_v43 = vld [vmem:[#allocation3 + $0x24] sm:$0xf] }
 0x1e1   : > { %v2226_v56 = vrot.slane %v2224_v9, 7  ;;  %v2057_v38 = vadd.f32 %v6156_v51, %v2021_v20 }
 0x1e3   : > { %v2229_v28 = vor.u32 %v2227_v21, %v2226_v56  ;;  %v2089_v41 = vmax.f32 %v2057_v38, 0.0  ;;  %v2230_v11 = vrot.slane %v2226_v56, 4  ;;  %v7473_v56 = vld [vmem:[#allocation7_spill] sm:$0xff] }
 0x1e4   : > { %v1476_v60 = vpop.permute.xlu1 %1475  ;;  %v1630_v21 = vsel %vm1604_vm11, %v4713_v50, %v7473_v56 }
 0x1e5   : > { %v2539_v49 = vsel %vm6202_vm8, %v2229_v28, %v2538_v16  ;;  %v2177_v25 = vpack.c.bf16 %v2089_v41, %v2089_v41  ;;  %v1760_v7 = vsel %vm1736_vm15, %v1727_v1, %v1476_v60  ;;  %v6283_v4 = vld [vmem:[#allocation3 + $0xc] sm:$0xff] }
 0x1e6   : > { %2540 = vst [vmem:[#allocation3 + $0x18] sm:$0xf] %v2539_v49  ;;  %v1944_v12 = vpop.f32.mrf.mxu0  ;;  %v2648_v45 = vld [vmem:[#allocation3 + $0x14] sm:$0x1]  ;;  %v1793_v34 = vsel %vm1769_vm1, %v1760_v7, %v6225_v48  ;;  %v2840_v62 = vshll.u32 %v6283_v4, 16  ;;  %v2838_v5 = vshrl.u32 %v6283_v4, 16  ;;  %v1398_v7 = vpop.permute.xlu2 %1397 }
 0x1e7   : > { %v2232_v55 = vshrl.u32 %v2177_v25, 16  ;;  %v1560_v33 = vpop.permute.xlu0 %1559  ;;  %v2022_v46 = vmul.f32 %v6140_v18, %v1944_v12  ;;  %v2794_v31 = vunpack.c.l.b16 %v2648_v45  ;;  %v2235_v19 = vshll.u32 %v2177_v25, 16  ;;  %v7474_v16 = vld [vmem:[#allocation12_spill] sm:$0xff] }
 0x1e8   : > { %v2842_v3 = vrot.slane %v2840_v62, 1  ;;  %v1826_v53 = vsel %vm1802_vm4, %v1793_v34, %v1560_v33  ;;  %v1663_v14 = vsel %vm1637_vm13, %v1630_v21, %v7474_v16  ;;  %v2552_v16 = vld [vmem:[#allocation3 + $0x30] sm:$0xf] }
 0x1e9   : > { %v2234_v54 = vrot.slane %v2232_v55, 7  ;;  %v2058_v23 = vadd.f32 %v6156_v51, %v2022_v46  ;;  %v6291_v44 = vpack.c.b16 %v2794_v31, %v2794_v31  ;;  %v1696_v28 = vsel %vm1670_vm12, %v1663_v14, %v6268_v57  ;;  %v6710_v40 = vld [vmem:[#allocation3 + $0xc] sm:$0xff] }
 0x1ea   : > { %v2843_v17 = vor.u32 %v2842_v3, %v2838_v5 }
 0x1eb   : > { %v2237_v47 = vor.u32 %v2235_v19, %v2234_v54  ;;  %v2239_v15 = vrot.slane %v2234_v54, 4  ;;  %v2090_v48 = vmax.f32 %v2058_v23, 0.0  ;;  %v2845_v35 = vshll.u32 %v6291_v44, 16  ;;  %v2549_v19 = vld [vmem:[#allocation3 + $0x2c] sm:$0x1] }
 0x1ec   : > { %v1595_v10 = vpop.permute.xlu1 %1594 }
 0x1ed   : > { %v2238_v24 = vsel %vm4942_vm6, %v2230_v11, %v2237_v47  ;;  %v2543_v6 = vsel %vm6236_vm9, %v2239_v15, %v2542_v27  ;;  %v2178_v9 = vpack.c.bf16 %v2090_v48, %v2090_v48  ;;  %v2847_v37 = vrot.slane %v2845_v35, 1 }
 0x1ee   : > { %2541 = vst.msk [vmem:[#allocation3 + $0x1c] sm:$0xf] %vm2118_vm0, %v2238_v24  ;;  %v1946_v20 = vpop.f32.mrf.mxu0  ;;  %v1859_v0 = vsel %vm1835_vm10, %v1826_v53, %v1595_v10 }
 0x1ef   : > { %2544 = vst [vmem:[#allocation3 + $0x20] sm:$0x1] %v2543_v6  ;;  %v2241_v2 = vshrl.u32 %v2178_v9, 16  ;;  %v1443_v32 = vpop.permute.xlu0 %1442  ;;  %v2023_v42 = vmul.f32 %v6140_v18, %v1946_v20  ;;  %v6305_v30 = vsel %vm1060_vm2, %v2843_v17, %v2847_v37  ;;  %4419 = vmatmul.msk.bf16.gmra.mxu3 %vm1888_vm3, %v1859_v0  ;;  %v2244_v52 = vshll.u32 %v2178_v9, 16 }
 0x1f0   : > { %3019 = vrot.lane.b32.xlu0 %v6305_v30, %s4757_s10  ;;  %v1729_v60 = vsel %vm1703_vm14, %v1696_v28, %v1443_v32  ;;  %v4714_v32 = vld [vmem:[#allocation2 + $0x9c] sm:$0xff] }
 0x1f1   : > { %v2243_v38 = vrot.slane %v2241_v2, 7  ;;  %v2059_v26 = vadd.f32 %v6156_v51, %v2023_v42  ;;  %v1517_v2 = vpop.permute.xlu2 %1516  ;;  %v7475_v42 = vld [vmem:[#allocation8_spill] sm:$0xff] }
 0x1f2   : > { %v1632_v50 = vsel %vm1604_vm11, %v4714_v32, %v7475_v42 }
 0x1f3   : > { %v2246_v41 = vor.u32 %v2244_v52, %v2243_v38  ;;  %v2091_v1 = vmax.f32 %v2059_v26, 0.0  ;;  %v2247_v54 = vrot.slane %v2243_v38, 4  ;;  %v7476_v52 = vld [vmem:[#allocation10_spill] sm:$0xff] }
 0x1f4   : > { %v1478_v13 = vpop.permute.xlu1 %1477  ;;  %v1665_v26 = vsel %vm1637_vm13, %v1632_v50, %v7476_v52  ;;  %v2559_v52 = vld [vmem:[#allocation3 + $0x3c] sm:$0xf] }
 0x1f5   : > { %v2546_v36 = vsel %vm6202_vm8, %v2246_v41, %v2545_v43  ;;  %v2179_v58 = vpack.c.bf16 %v2091_v1, %v2091_v1  ;;  %v1762_v49 = vsel %vm1736_vm15, %v1729_v60, %v1478_v13  ;;  %v6321_v25 = vld [vmem:[#allocation3 + $0x18] sm:$0xff]  ;;  %v1698_v14 = vsel %vm1670_vm12, %v1665_v26, %v1398_v7 }
 0x1f6   : > { %2547 = vst [vmem:[#allocation3 + $0x24] sm:$0xf] %v2546_v36  ;;  %v1949_v12 = vpop.f32.mrf.mxu0  ;;  %v2651_v45 = vld [vmem:[#allocation3 + $0x20] sm:$0x1]  ;;  %v1795_v33 = vsel %vm1769_vm1, %v1762_v49, %v1515_v22  ;;  %v2852_v46 = vshll.u32 %v6321_v25, 16  ;;  %v2850_v23 = vshrl.u32 %v6321_v25, 16 }
 0x1f7   : > { %v2249_v8 = vshrl.u32 %v2179_v58, 16  ;;  %v1562_v63 = vpop.permute.xlu0 %1561  ;;  %v2024_v57 = vmul.f32 %v6140_v18, %v1949_v12  ;;  %v2795_v55 = vunpack.c.l.b16 %v2651_v45  ;;  %v2252_v34 = vshll.u32 %v2179_v58, 16  ;;  %v7478_v26 = vld [vmem:[#allocation13_spill] sm:$0xff] }
 0x1f8   : > { %v2854_v11 = vrot.slane %v2852_v46, 1  ;;  %v1828_v15 = vsel %vm1802_vm4, %v1795_v33, %v1562_v63 }
 0x1f9   : > { %v2251_v31 = vrot.slane %v2249_v8, 7  ;;  %v2060_v62 = vadd.f32 %v6156_v51, %v2024_v57  ;;  %v6327_v59 = vpack.c.b16 %v2795_v55, %v2795_v55 }
 0x1fa   : > { %v2855_v35 = vor.u32 %v2854_v11, %v2850_v23 }
 0x1fb   : > { %v2254_v27 = vor.u32 %v2252_v34, %v2251_v31  ;;  %v2256_v5 = vrot.slane %v2251_v31, 4  ;;  %v2092_v3 = vmax.f32 %v2060_v62, 0.0  ;;  %v2857_v47 = vshll.u32 %v6327_v59, 16  ;;  %v1400_v62 = vpop.permute.xlu2 %1399 }
 0x1fc   : > { %v1597_v48 = vpop.permute.xlu1 %1596 }
 0x1fd   : > { %v2255_v22 = vsel %vm4942_vm6, %v2247_v54, %v2254_v27  ;;  %v2550_v53 = vsel %vm6236_vm9, %v2256_v5, %v2549_v19  ;;  %v2180_v10 = vpack.c.bf16 %v2092_v3, %v2092_v3  ;;  %v2859_v17 = vrot.slane %v2857_v47, 1  ;;  %v2556_v19 = vld [vmem:[#allocation3 + $0x38] sm:$0x1] }
 0x1fe   : > { %2548 = vst.msk [vmem:[#allocation3 + $0x28] sm:$0xf] %vm2118_vm0, %v2255_v22  ;;  %v1951_v24 = vpop.f32.mrf.mxu0  ;;  %v1861_v6 = vsel %vm1835_vm10, %v1828_v15, %v1597_v48 }
 0x1ff   : > { %2551 = vst [vmem:[#allocation3 + $0x2c] sm:$0x1] %v2550_v53  ;;  %v2258_v9 = vshrl.u32 %v2180_v10, 16  ;;  %v1445_v37 = vpop.permute.xlu0 %1444  ;;  %v2025_v20 = vmul.f32 %v6140_v18, %v1951_v24  ;;  %v6340_v0 = vsel %vm1060_vm2, %v2855_v35, %v2859_v17  ;;  %4420 = vmatmul.msk.bf16.gmra.mxu3 %vm1888_vm3, %v1861_v6  ;;  %v2261_v21 = vshll.u32 %v2180_v10, 16 }
 0x200   : > { %3021 = vrot.lane.b32.xlu1 %v6340_v0, %s4757_s10  ;;  %v1731_v41 = vsel %vm1703_vm14, %v1698_v14, %v1445_v37 }
 0x201   : > { %v2260_v56 = vrot.slane %v2258_v9, 7  ;;  %v2061_v38 = vadd.f32 %v6156_v51, %v2025_v20 }
 0x203   : > { %v2263_v43 = vor.u32 %v2261_v21, %v2260_v56  ;;  %v2093_v28 = vmax.f32 %v2061_v38, 0.0  ;;  %v2264_v54 = vrot.slane %v2260_v56, 4  ;;  %v4715_v56 = vld [vmem:[#allocation2 + $0xa8] sm:$0xff]  ;;  %v7477_v21 = vld [vmem:[#allocation6_spill] sm:$0xff] }
 0x204   : > { %v1480_v1 = vpop.permute.xlu1 %1479  ;;  %v1634_v38 = vsel %vm1604_vm11, %v4715_v56, %v7477_v21 }
 0x205   : > { %v2553_v60 = vsel %vm6202_vm8, %v2263_v43, %v2552_v16  ;;  %v2181_v13 = vpack.c.bf16 %v2093_v28, %v2093_v28  ;;  %v1764_v36 = vsel %vm1736_vm15, %v1731_v41, %v1480_v1  ;;  %v6355_v58 = vld [vmem:[#allocation3 + $0x24] sm:$0xff]  ;;  %v1667_v16 = vsel %vm1637_vm13, %v1634_v38, %v7478_v26  ;;  %v1519_v41 = vpop.permute.xlu2 %1518 }
 0x206   : > { %2554 = vst [vmem:[#allocation3 + $0x30] sm:$0xf] %v2553_v60  ;;  %v1954_v49 = vpop.f32.mrf.mxu0  ;;  %v2654_v12 = vld [vmem:[#allocation3 + $0x2c] sm:$0x1]  ;;  %v1797_v57 = vsel %vm1769_vm1, %v1764_v36, %v1517_v2  ;;  %v2864_v55 = vshll.u32 %v6355_v58, 16  ;;  %v2862_v23 = vshrl.u32 %v6355_v58, 16  ;;  %v1700_v28 = vsel %vm1670_vm12, %v1667_v16, %v1400_v62 }
 0x207   : > { %v2266_v45 = vshrl.u32 %v2181_v13, 16  ;;  %v1564_v8 = vpop.permute.xlu0 %1563  ;;  %v2026_v7 = vmul.f32 %v6140_v18, %v1954_v49  ;;  %v2796_v63 = vunpack.c.l.b16 %v2654_v12  ;;  %v2269_v46 = vshll.u32 %v2181_v13, 16 }
 0x208   : > { %v2866_v11 = vrot.slane %v2864_v55, 1  ;;  %v1830_v15 = vsel %vm1802_vm4, %v1797_v57, %v1564_v8 }
 0x209   : > { %v2268_v33 = vrot.slane %v2266_v45, 7  ;;  %v2062_v31 = vadd.f32 %v6156_v51, %v2026_v7  ;;  %v6361_v34 = vpack.c.b16 %v2796_v63, %v2796_v63 }
 0x20a   : > { %v2867_v35 = vor.u32 %v2866_v11, %v2862_v23 }
 0x20b   : > { %v2271_v27 = vor.u32 %v2269_v46, %v2268_v33  ;;  %v2273_v5 = vrot.slane %v2268_v33, 4  ;;  %v2094_v3 = vmax.f32 %v2062_v31, 0.0  ;;  %v2869_v47 = vshll.u32 %v6361_v34, 16  ;;  %v2563_v46 = vld [vmem:[#allocation3 + $0x44] sm:$0x1] }
 0x20c   : > { %v1599_v48 = vpop.permute.xlu1 %1598 }
 0x20d   : > { %v2272_v22 = vsel %vm4942_vm6, %v2264_v54, %v2271_v27  ;;  %v2557_v53 = vsel %vm6236_vm9, %v2273_v5, %v2556_v19  ;;  %v2182_v10 = vpack.c.bf16 %v2094_v3, %v2094_v3  ;;  %v2871_v17 = vrot.slane %v2869_v47, 1 }
 0x20e   : > { %2555 = vst.msk [vmem:[#allocation3 + $0x34] sm:$0xf] %vm2118_vm0, %v2272_v22  ;;  %v1956_v24 = vpop.f32.mrf.mxu0  ;;  %v1863_v6 = vsel %vm1835_vm10, %v1830_v15, %v1599_v48  ;;  %v1402_v15 = vpop.permute.xlu2 %1401 }
 0x20f   : > { %2558 = vst [vmem:[#allocation3 + $0x38] sm:$0x1] %v2557_v53  ;;  %v2275_v9 = vshrl.u32 %v2182_v10, 16  ;;  %v1447_v37 = vpop.permute.xlu0 %1446  ;;  %v2027_v20 = vmul.f32 %v6140_v18, %v1956_v24  ;;  %v6374_v2 = vsel %vm1060_vm2, %v2867_v35, %v2871_v17  ;;  %4421 = vmatmul.msk.bf16.gmra.mxu3 %vm1888_vm3, %v1863_v6  ;;  %v2278_v42 = vshll.u32 %v2182_v10, 16  ;;  %v4716_v6 = vld [vmem:[#allocation2 + $0xb4] sm:$0xff] }
 0x210   : > { %3023 = vrot.lane.b32.xlu2 %v6374_v2, %s4757_s10  ;;  %v1733_v13 = vsel %vm1703_vm14, %v1700_v28, %v1447_v37 }
 0x211   : > { %v2277_v32 = vrot.slane %v2275_v9, 7  ;;  %v2063_v50 = vadd.f32 %v6156_v51, %v2027_v20  ;;  %v7479_v9 = vld [vmem:[#allocation9_spill] sm:$0xff]  ;;  %v2566_v20 = vld [vmem:[#allocation3 + $0x48] sm:$0xf] }
 0x212   : > { %v1636_v37 = vsel %vm1604_vm11, %v4716_v6, %v7479_v9 }
 0x213   : > { %v2280_v14 = vor.u32 %v2278_v42, %v2277_v32  ;;  %v2095_v43 = vmax.f32 %v2063_v50, 0.0  ;;  %v2281_v31 = vrot.slane %v2277_v32, 4  ;;  %v7480_v32 = vld [vmem:[#allocation14_spill] sm:$0xff] }
 0x214   : > { %v1482_v1 = vpop.permute.xlu1 %1481  ;;  %v1669_v42 = vsel %vm1637_vm13, %v1636_v37, %v7480_v32  ;;  %v2577_v37 = vld [vmem:[#allocation3 + $0x5c] sm:$0x1] }
 0x215   : > { %v2560_v60 = vsel %vm6202_vm8, %v2280_v14, %v2559_v52  ;;  %v2183_v36 = vpack.c.bf16 %v2095_v43, %v2095_v43  ;;  %v1766_v49 = vsel %vm1736_vm15, %v1733_v13, %v1482_v1  ;;  %v1702_v21 = vsel %vm1670_vm12, %v1669_v42, %v1402_v15 }
 0x216   : > { %2561 = vst [vmem:[#allocation3 + $0x3c] sm:$0xf] %v2560_v60  ;;  %v1959_v12 = vpop.f32.mrf.mxu0  ;;  %v1799_v55 = vsel %vm1769_vm1, %v1766_v49, %v1519_v41  ;;  %v1521_v43 = vpop.permute.xlu2 %1520 }
 0x217   : > { %v2283_v45 = vshrl.u32 %v2183_v36, 16  ;;  %v1566_v8 = vpop.permute.xlu0 %1565  ;;  %v2028_v7 = vmul.f32 %v6140_v18, %v1959_v12  ;;  %v2286_v57 = vshll.u32 %v2183_v36, 16 }
 0x218   : > { %v1832_v23 = vsel %vm1802_vm4, %v1799_v55, %v1566_v8 }
 0x219   : > { %v2285_v63 = vrot.slane %v2283_v45, 7  ;;  %v2064_v33 = vadd.f32 %v6156_v51, %v2028_v7  ;;  %v2570_v45 = vld [vmem:[#allocation3 + $0x50] sm:$0x1] }
 0x21b   : > { %v2288_v62 = vor.u32 %v2286_v57, %v2285_v63  ;;  %v2290_v54 = vrot.slane %v2285_v63, 4  ;;  %v2096_v19 = vmax.f32 %v2064_v33, 0.0 }
 0x21c   : > { %v1601_v11 = vpop.permute.xlu1 %1600 }
 0x21d   : > { %v2289_v27 = vsel %vm4942_vm6, %v2281_v31, %v2288_v62  ;;  %v2564_v5 = vsel %vm6236_vm9, %v2290_v54, %v2563_v46  ;;  %v2184_v3 = vpack.c.bf16 %v2096_v19, %v2096_v19  ;;  %v1865_v47 = vsel %vm1835_vm10, %v1832_v23, %v1601_v11 }
 0x21e   : > { %2562 = vst.msk [vmem:[#allocation3 + $0x40] sm:$0xf] %vm2118_vm0, %v2289_v27  ;;  %v1961_v48 = vpop.f32.mrf.mxu0 }
 0x21f   : > { %2565 = vst [vmem:[#allocation3 + $0x44] sm:$0x1] %v2564_v5  ;;  %v2292_v35 = vshrl.u32 %v2184_v3, 16  ;;  %v2029_v22 = vmul.f32 %v6140_v18, %v1961_v48  ;;  %4422 = vmatmul.msk.bf16.gmra.mxu3 %vm1888_vm3, %v1865_v47  ;;  %v2295_v10 = vshll.u32 %v2184_v3, 16  ;;  %v1449_v17 = vpop.permute.xlu0 %1448  ;;  %v2573_v47 = vld [vmem:[#allocation3 + $0x54] sm:$0xf] }
 0x220   : > { %v1735_v26 = vsel %vm1703_vm14, %v1702_v21, %v1449_v17 }
 0x221   : > { %v2294_v53 = vrot.slane %v2292_v35, 7  ;;  %v2065_v24 = vadd.f32 %v6156_v51, %v2029_v22 }
 0x223   : > { %v2297_v50 = vor.u32 %v2295_v10, %v2294_v53  ;;  %v2097_v56 = vmax.f32 %v2065_v24, 0.0  ;;  %v2298_v8 = vrot.slane %v2294_v53, 4 }
 0x224   : > { %v1484_v38 = vpop.permute.xlu1 %1483 }
 0x225   : > { %v2567_v52 = vsel %vm6202_vm8, %v2297_v50, %v2566_v20  ;;  %v2185_v16 = vpack.c.bf16 %v2097_v56, %v2097_v56  ;;  %v1768_v14 = vsel %vm1736_vm15, %v1735_v26, %v1484_v38 }
 0x226   : > { %2568 = vst [vmem:[#allocation3 + $0x48] sm:$0xf] %v2567_v52  ;;  %v1964_v28 = vpop.f32.mrf.mxu0  ;;  %v1801_v36 = vsel %vm1769_vm1, %v1768_v14, %v1521_v43 }
 0x227   : > { %v2300_v41 = vshrl.u32 %v2185_v16, 16  ;;  %v2030_v1 = vmul.f32 %v6140_v18, %v1964_v28  ;;  %v2303_v13 = vshll.u32 %v2185_v16, 16  ;;  %v1568_v12 = vpop.permute.xlu0 %1567 }
 0x228   : > { %v1834_v55 = vsel %vm1802_vm4, %v1801_v36, %v1568_v12 }
 0x229   : > { %v2302_v60 = vrot.slane %v2300_v41, 7  ;;  %v2066_v49 = vadd.f32 %v6156_v51, %v2030_v1  ;;  %v2580_v41 = vld [vmem:[#allocation3 + $0x60] sm:$0xf] }
 0x22b   : > { %v2305_v7 = vor.u32 %v2303_v13, %v2302_v60  ;;  %v2307_v63 = vrot.slane %v2302_v60, 4  ;;  %v2098_v57 = vmax.f32 %v2066_v49, 0.0 }
 0x22c   : > { %v1603_v33 = vpop.permute.xlu1 %1602 }
 0x22d   : > { %v2306_v46 = vsel %vm4942_vm6, %v2298_v8, %v2305_v7  ;;  %v2571_v31 = vsel %vm6236_vm9, %v2307_v63, %v2570_v45  ;;  %v2186_v62 = vpack.c.bf16 %v2098_v57, %v2098_v57  ;;  %v1867_v54 = vsel %vm1835_vm10, %v1834_v55, %v1603_v33  ;;  %v2584_v7 = vld [vmem:[#allocation3 + $0x68] sm:$0x1] }
 0x22e   : > { %2569 = vst.msk [vmem:[#allocation3 + $0x4c] sm:$0xf] %vm2118_vm0, %v2306_v46  ;;  %v1966_v19 = vpop.f32.mrf.mxu0 }
 0x22f   : > { %2572 = vst [vmem:[#allocation3 + $0x50] sm:$0x1] %v2571_v31  ;;  %v2309_v23 = vshrl.u32 %v2186_v62, 16  ;;  %v2031_v11 = vmul.f32 %v6140_v18, %v1966_v19  ;;  %4423 = vmatmul.msk.bf16.gmra.mxu3 %vm1888_vm3, %v1867_v54  ;;  %v2312_v5 = vshll.u32 %v2186_v62, 16  ;;  %vm7481_vm3 = vcmask 1046528  }
 0x230   : > { %vm7482_vm11 = vmmov %vm7481_vm3 }
 0x231   : > { %v2311_v27 = vrot.slane %v2309_v23, 7  ;;  %v2067_v3 = vadd.f32 %v6156_v51, %v2031_v11  ;;  %vm7483_vm12 = vmmov %vm7481_vm3 }
 0x232   : > { %vm7484_vm15 = vmmov %vm7481_vm3 }
 0x233   : > { %v2314_v15 = vor.u32 %v2312_v5, %v2311_v27  ;;  %v2099_v48 = vmax.f32 %v2067_v3, 0.0  ;;  %v2315_v20 = vrot.slane %v2311_v27, 4  ;;  %vm7485_vm4 = vmmov %vm7481_vm3 }
 0x234   : > { %vm7486_vm7 = vmmov %vm7481_vm3 }
 0x235   : > { %v2574_v35 = vsel %vm6202_vm8, %v2314_v15, %v2573_v47  ;;  %v2187_v22 = vpack.c.bf16 %v2099_v48, %v2099_v48  ;;  %vm7487_vm5 = vmmov %vm7481_vm3 }
 0x236   : > { %2575 = vst [vmem:[#allocation3 + $0x54] sm:$0xf] %v2574_v35  ;;  %v1969_v53 = vpop.f32.mrf.mxu0 }
 0x237   : > { %v2317_v10 = vshrl.u32 %v2187_v22, 16  ;;  %v2032_v17 = vmul.f32 %v6140_v18, %v1969_v53  ;;  %v2320_v6 = vshll.u32 %v2187_v22, 16 }
 0x239   : > { %v2319_v24 = vrot.slane %v2317_v10, 7  ;;  %v2068_v9 = vadd.f32 %v6156_v51, %v2032_v17 }
 0x23b   : > { %v2322_v32 = vor.u32 %v2320_v6, %v2319_v24  ;;  %v2324_v42 = vrot.slane %v2319_v24, 4  ;;  %v2100_v50 = vmax.f32 %v2068_v9, 0.0  ;;  %v2594_v24 = vld [vmem:[#allocation3 + $0x78] sm:$0xf] }
 0x23d   : > { %v2323_v56 = vsel %vm4942_vm6, %v2315_v20, %v2322_v32  ;;  %v2578_v21 = vsel %vm6236_vm9, %v2324_v42, %v2577_v37  ;;  %v2188_v38 = vpack.c.bf16 %v2100_v50, %v2100_v50  ;;  %v2587_v42 = vld [vmem:[#allocation3 + $0x6c] sm:$0xf] }
 0x23e   : > { %2576 = vst.msk [vmem:[#allocation3 + $0x58] sm:$0xf] %vm2118_vm0, %v2323_v56  ;;  %v1971_v52 = vpop.f32.mrf.mxu0 }
 0x23f   : > { %2579 = vst [vmem:[#allocation3 + $0x5c] sm:$0x1] %v2578_v21  ;;  %v2326_v26 = vshrl.u32 %v2188_v38, 16  ;;  %v2033_v16 = vmul.f32 %v6140_v18, %v1971_v52  ;;  %v2329_v43 = vshll.u32 %v2188_v38, 16 }
 0x241   : > { %v2328_v14 = vrot.slane %v2326_v26, 7  ;;  %v2069_v28 = vadd.f32 %v6156_v51, %v2033_v16 }
 0x243   : > { %v2331_v1 = vor.u32 %v2329_v43, %v2328_v14  ;;  %v2101_v60 = vmax.f32 %v2069_v28, 0.0  ;;  %v2332_v57 = vrot.slane %v2328_v14, 4 }
 0x245   : > { %v2581_v13 = vsel %vm6202_vm8, %v2331_v1, %v2580_v41  ;;  %v2189_v36 = vpack.c.bf16 %v2101_v60, %v2101_v60  ;;  %v2598_v41 = vld [vmem:[#allocation3 + $0x80] sm:$0x1] }
 0x246   : > { %2582 = vst [vmem:[#allocation3 + $0x60] sm:$0xf] %v2581_v13 }
 0x247   : > { %v2334_v49 = vshrl.u32 %v2189_v36, 16  ;;  %v2337_v45 = vshll.u32 %v2189_v36, 16 }
 0x249   : > { %v2336_v12 = vrot.slane %v2334_v49, 7  ;;  %v1979_v8 = vpop.f32.mrf.mxu3 }
 0x24a   : > { %v2036_v63 = vmul.f32 %v6140_v18, %v1979_v8 }
 0x24b   : > { %v2339_v55 = vor.u32 %v2337_v45, %v2336_v12  ;;  %v2341_v33 = vrot.slane %v2336_v12, 4  ;;  %v1974_v46 = vpop.f32.mrf.mxu0 }
 0x24c   : > { %v2072_v31 = vadd.f32 %v6156_v51, %v2036_v63  ;;  %v2034_v62 = vmul.f32 %v6140_v18, %v1974_v46 }
 0x24d   : > { %v2340_v54 = vsel %vm4942_vm6, %v2332_v57, %v2339_v55  ;;  %v2585_v19 = vsel %vm6236_vm9, %v2341_v33, %v2584_v7  ;;  %v2591_v7 = vld [vmem:[#allocation3 + $0x74] sm:$0x1] }
 0x24e   : > { %2583 = vst.msk [vmem:[#allocation3 + $0x64] sm:$0xf] %vm2118_vm0, %v2340_v54  ;;  %v2104_v23 = vmax.f32 %v2072_v31, 0.0  ;;  %v2070_v11 = vadd.f32 %v6156_v51, %v2034_v62 }
 0x24f   : > { %2586 = vst [vmem:[#allocation3 + $0x68] sm:$0x1] %v2585_v19 }
 0x250   : > { %v2192_v27 = vpack.c.bf16 %v2104_v23, %v2104_v23  ;;  %v2102_v5 = vmax.f32 %v2070_v11, 0.0  ;;  %v2657_v23 = vld [vmem:[#allocation3 + $0x38] sm:$0x1] }
 0x251   : > { %v1981_v3 = vpop.f32.mrf.mxu3 }
 0x252   : > { %v2360_v47 = vshrl.u32 %v2192_v27, 16  ;;  %v2190_v15 = vpack.c.bf16 %v2102_v5, %v2102_v5  ;;  %v2037_v48 = vmul.f32 %v6140_v18, %v1981_v3  ;;  %v2363_v53 = vshll.u32 %v2192_v27, 16 }
 0x253   : > { %v1976_v35 = vpop.f32.mrf.mxu0 }
 0x254   : > { %v2362_v22 = vrot.slane %v2360_v47, 7  ;;  %v2343_v10 = vshrl.u32 %v2190_v15, 16  ;;  %v2073_v17 = vadd.f32 %v6156_v51, %v2037_v48  ;;  %v2035_v6 = vmul.f32 %v6140_v18, %v1976_v35  ;;  %v6468_v47 = vld [vmem:[#allocation3 + $0x30] sm:$0xff] }
 0x255   : > { %v2346_v20 = vshll.u32 %v2190_v15, 16 }
 0x256   : > { %v2365_v9 = vor.u32 %v2363_v53, %v2362_v22  ;;  %v2345_v37 = vrot.slane %v2343_v10, 7  ;;  %v2105_v32 = vmax.f32 %v2073_v17, 0.0  ;;  %v2071_v50 = vadd.f32 %v6156_v51, %v2035_v6 }
 0x257   : > { %v2366_v60 = vrot.slane %v2362_v22, 4  ;;  %v2797_v22 = vunpack.c.l.b16 %v2657_v23 }
 0x258   : > { %v2595_v56 = vsel %vm6202_vm8, %v2365_v9, %v2594_v24  ;;  %v2348_v21 = vor.u32 %v2346_v20, %v2345_v37  ;;  %v2193_v38 = vpack.c.bf16 %v2105_v32, %v2105_v32  ;;  %v2103_v52 = vmax.f32 %v2071_v50, 0.0  ;;  %v2601_v9 = vld [vmem:[#allocation3 + $0x84] sm:$0xf] }
 0x259   : > { %2596 = vst [vmem:[#allocation3 + $0x78] sm:$0xf] %v2595_v56  ;;  %v2349_v63 = vrot.slane %v2345_v37, 4  ;;  %v2876_v32 = vshll.u32 %v6468_v47, 16 }
 0x25a   : > { %v2588_v26 = vsel %vm6202_vm8, %v2348_v21, %v2587_v42  ;;  %v2368_v16 = vshrl.u32 %v2193_v38, 16  ;;  %v2191_v14 = vpack.c.bf16 %v2103_v52, %v2103_v52  ;;  %v2371_v28 = vshll.u32 %v2193_v38, 16 }
 0x25b   : > { %2589 = vst [vmem:[#allocation3 + $0x6c] sm:$0xf] %v2588_v26  ;;  %v6478_v21 = vpack.c.b16 %v2797_v22, %v2797_v22 }
 0x25c   : > { %v2370_v43 = vrot.slane %v2368_v16, 7  ;;  %v2351_v1 = vshrl.u32 %v2191_v14, 16  ;;  %v2354_v12 = vshll.u32 %v2191_v14, 16  ;;  %v2878_v14 = vrot.slane %v2876_v32, 1 }
 0x25e   : > { %v2373_v13 = vor.u32 %v2371_v28, %v2370_v43  ;;  %v2375_v36 = vrot.slane %v2370_v43, 4  ;;  %v2353_v49 = vrot.slane %v2351_v1, 7  ;;  %v2881_v1 = vshll.u32 %v6478_v21, 16 }
 0x260   : > { %v2374_v45 = vsel %vm4942_vm6, %v2366_v60, %v2373_v13  ;;  %v2599_v8 = vsel %vm6236_vm9, %v2375_v36, %v2598_v41  ;;  %v2356_v57 = vor.u32 %v2354_v12, %v2353_v49  ;;  %v2358_v55 = vrot.slane %v2353_v49, 4  ;;  %v2605_v12 = vld [vmem:[#allocation3 + $0x8c] sm:$0x1] }
 0x261   : > { %2597 = vst.msk [vmem:[#allocation3 + $0x7c] sm:$0xf] %vm2118_vm0, %v2374_v45  ;;  %v1984_v33 = vpop.f32.mrf.mxu3  ;;  %v2874_v13 = vshrl.u32 %v6468_v47, 16 }
 0x262   : > { %2600 = vst [vmem:[#allocation3 + $0x80] sm:$0x1] %v2599_v8  ;;  %v2038_v46 = vmul.f32 %v6140_v18, %v1984_v33  ;;  %v2357_v31 = vsel %vm4942_vm6, %v2349_v63, %v2356_v57  ;;  %v2592_v62 = vsel %vm6236_vm9, %v2358_v55, %v2591_v7  ;;  %v2883_v55 = vrot.slane %v2881_v1, 1 }
 0x263   : > { %2590 = vst.msk [vmem:[#allocation3 + $0x70] sm:$0xf] %vm2118_vm0, %v2357_v31  ;;  %v2879_v8 = vor.u32 %v2878_v14, %v2874_v13  ;;  %v2612_v14 = vld [vmem:[#allocation3 + $0x98] sm:$0x1] }
 0x264   : > { %v2074_v54 = vadd.f32 %v6156_v51, %v2038_v46  ;;  %2593 = vst [vmem:[#allocation3 + $0x74] sm:$0x1] %v2592_v62 }
 0x266   : > { %v2106_v19 = vmax.f32 %v2074_v54, 0.0  ;;  %v6497_v54 = vsel %vm1060_vm2, %v2879_v8, %v2883_v55 }
 0x268   : > { %v2194_v11 = vpack.c.bf16 %v2106_v19, %v2106_v19  ;;  %v6466_v27 = vld [vmem:[#allocation3 + $0x78] sm:$0xff]  ;;  %v6502_v19 = vld [vmem:[%s7439_s2] ss:$0 sm:$0xff] }
 0x269   : > { %v1986_v5 = vpop.f32.mrf.mxu3  ;;  %v2675_v3 = vld [vmem:[#allocation3 + $0x80] sm:$0x1]  ;;  %v2948_v53 = vshll.u32 %v6466_v27, 16  ;;  %v2946_v37 = vshrl.u32 %v6466_v27, 16 }
 0x26a   : > { %v2377_v15 = vshrl.u32 %v2194_v11, 16  ;;  %v2039_v48 = vmul.f32 %v6140_v18, %v1986_v5  ;;  %v2803_v35 = vunpack.c.l.b16 %v2675_v3  ;;  %v2380_v17 = vshll.u32 %v2194_v11, 16  ;;  %v6510_v3 = vld [vmem:[%s7440_s3] ss:$0 sm:$0xff] }
 0x26b   : > { %v2950_v20 = vrot.slane %v2948_v53, 1 }
 0x26c   : > { %v2379_v10 = vrot.slane %v2377_v15, 7  ;;  %v2075_v24 = vadd.f32 %v6156_v51, %v2039_v48  ;;  %v6473_v6 = vpack.c.b16 %v2803_v35, %v2803_v35  ;;  %v2608_v48 = vld [vmem:[#allocation3 + $0x90] sm:$0xf] }
 0x26d   : > { %v2951_v38 = vor.u32 %v2950_v20, %v2946_v37 }
 0x26e   : > { %v2382_v42 = vor.u32 %v2380_v17, %v2379_v10  ;;  %v2107_v50 = vmax.f32 %v2075_v24, 0.0  ;;  %v2953_v56 = vshll.u32 %v6473_v6, 16  ;;  %v2383_v7 = vrot.slane %v2379_v10, 4 }
 0x270   : > { %v2602_v52 = vsel %vm6202_vm8, %v2382_v42, %v2601_v9  ;;  %v2195_v26 = vpack.c.bf16 %v2107_v50, %v2107_v50  ;;  %v2955_v16 = vrot.slane %v2953_v56, 1 }
 0x271   : > { %2603 = vst [vmem:[#allocation3 + $0x84] sm:$0xf] %v2602_v52 }
 0x272   : > { %v2385_v43 = vshrl.u32 %v2195_v26, 16  ;;  %v1989_v28 = vpop.f32.mrf.mxu3  ;;  %v6483_v41 = vsel %vm1060_vm2, %v2951_v38, %v2955_v16  ;;  %v2388_v49 = vshll.u32 %v2195_v26, 16 }
 0x273   : > { %v2040_v60 = vmul.f32 %v6140_v18, %v1989_v28  ;;  %3037 = vrot.lane.b32.xlu0 %v6483_v41, %s4757_s10 }
 0x274   : > { %v2387_v36 = vrot.slane %v2385_v43, 7 }
 0x275   : > { %v2076_v45 = vadd.f32 %v6156_v51, %v2040_v60 }
 0x276   : > { %v2390_v63 = vor.u32 %v2388_v49, %v2387_v36  ;;  %v2392_v57 = vrot.slane %v2387_v36, 4 }
 0x277   : > { %v2108_v33 = vmax.f32 %v2076_v45, 0.0 }
 0x278   : > { %v2391_v46 = vsel %vm4942_vm6, %v2383_v7, %v2390_v63  ;;  %v2606_v18 = vsel %vm6236_vm9, %v2392_v57, %v2605_v12 }
 0x279   : > { %2604 = vst.msk [vmem:[#allocation3 + $0x88] sm:$0xf] %vm2118_vm0, %v2391_v46  ;;  %v2196_v31 = vpack.c.bf16 %v2108_v33, %v2108_v33 }
 0x27a   : > { %2607 = vst [vmem:[#allocation3 + $0x8c] sm:$0x1] %v2606_v18  ;;  %v1991_v62 = vpop.f32.mrf.mxu3 }
 0x27b   : > { %v2394_v51 = vshrl.u32 %v2196_v31, 16  ;;  %v2041_v23 = vmul.f32 %v6502_v19, %v1991_v62  ;;  %3025 = vrot.lane.b32.xlu0 %v6497_v54, %s4757_s10  ;;  %v2397_v5 = vshll.u32 %v2196_v31, 16  ;;  %v2615_v31 = vld [vmem:[#allocation3 + $0x9c] sm:$0xf]  ;;  %v3053_v62 = vrot.slane %v6291_v44, 1 }
 0x27d   : > { %v2396_v11 = vrot.slane %v2394_v51, 7  ;;  %v2077_v15 = vadd.f32 %v6510_v3, %v2041_v23 }
 0x27f   : > { %v2399_v35 = vor.u32 %v2397_v5, %v2396_v11  ;;  %v2109_v22 = vmax.f32 %v2077_v15, 0.0  ;;  %v2400_v1 = vrot.slane %v2396_v11, 4  ;;  %v2660_v11 = vld [vmem:[#allocation3 + $0x44] sm:$0x1]  ;;  %v3052_v5 = vrot.slane %v6283_v4, 1  ;;  %v6538_v15 = vld [vmem:[#allocation3 + $0x3c] sm:$0xff] }
 0x280   : > { %v6513_v53 = vld [vmem:[#allocation3 + $0x84] sm:$0xff]  ;;  %v2798_v44 = vunpack.c.l.b16 %v2660_v11 }
 0x281   : > { %v2609_v10 = vsel %vm6202_vm8, %v2399_v35, %v2608_v48  ;;  %v2197_v17 = vpack.c.bf16 %v2109_v22, %v2109_v22  ;;  %v2678_v24 = vld [vmem:[#allocation3 + $0x8c] sm:$0x1]  ;;  %v2960_v20 = vshll.u32 %v6513_v53, 16  ;;  %v2958_v56 = vshrl.u32 %v6513_v53, 16 }
 0x282   : > { %2610 = vst [vmem:[#allocation3 + $0x90] sm:$0xf] %v2609_v10  ;;  %v1994_v9 = vpop.f32.mrf.mxu3  ;;  %v2804_v37 = vunpack.c.l.b16 %v2678_v24 }
 0x283   : > { %v2402_v32 = vshrl.u32 %v2197_v17, 16  ;;  %v2042_v42 = vmul.f32 %v6502_v19, %v1994_v9  ;;  %v2962_v38 = vrot.slane %v2960_v20, 1  ;;  %v2405_v26 = vshll.u32 %v2197_v17, 16 }
 0x284   : > { %v6519_v50 = vpack.c.b16 %v2804_v37, %v2804_v37  ;;  %v6545_v17 = vsel %vm7481_vm3, %v3052_v5, %v3053_v62  ;;  %v3062_v20 = vrot.slane %v6478_v21, 1 }
 0x285   : > { %v2404_v52 = vrot.slane %v2402_v32, 7  ;;  %v2078_v16 = vadd.f32 %v6510_v3, %v2042_v42  ;;  %v2963_v43 = vor.u32 %v2962_v38, %v2958_v56  ;;  %v2888_v42 = vshll.u32 %v6538_v15, 16 }
 0x286   : > { %v2965_v28 = vshll.u32 %v6519_v50, 16 }
 0x287   : > { %v2407_v60 = vor.u32 %v2405_v26, %v2404_v52  ;;  %v2409_v13 = vrot.slane %v2404_v52, 4  ;;  %v2110_v36 = vmax.f32 %v2078_v16, 0.0 }
 0x288   : > { %v2967_v49 = vrot.slane %v2965_v28, 1 }
 0x289   : > { %v2408_v12 = vsel %vm4942_vm6, %v2400_v1, %v2407_v60  ;;  %v2613_v45 = vsel %vm6236_vm9, %v2409_v13, %v2612_v14  ;;  %v2198_v8 = vpack.c.bf16 %v2110_v36, %v2110_v36  ;;  %v2619_v14 = vld [vmem:[#allocation3 + $0xa4] sm:$0x1]  ;;  %v6557_v1 = vpack.c.b16 %v2798_v44, %v2798_v44 }
 0x28a   : > { %2611 = vst.msk [vmem:[#allocation3 + $0x94] sm:$0xf] %vm2118_vm0, %v2408_v12  ;;  %v1996_v7 = vpop.f32.mrf.mxu3  ;;  %v6530_v63 = vsel %vm1060_vm2, %v2963_v43, %v2967_v49  ;;  %v3061_v49 = vrot.slane %v6468_v47, 1 }
 0x28b   : > { %2614 = vst [vmem:[#allocation3 + $0x98] sm:$0x1] %v2613_v45  ;;  %v2411_v57 = vshrl.u32 %v2198_v8, 16  ;;  %v2043_v55 = vmul.f32 %v6502_v19, %v1996_v7  ;;  %3039 = vrot.lane.b32.xlu1 %v6530_v63, %s4757_s10  ;;  %v2414_v46 = vshll.u32 %v2198_v8, 16 }
 0x28d   : > { %v2413_v33 = vrot.slane %v2411_v57, 7  ;;  %v2079_v18 = vadd.f32 %v6510_v3, %v2043_v55 }
 0x28f   : > { %v2416_v51 = vor.u32 %v2414_v46, %v2413_v33  ;;  %v2111_v23 = vmax.f32 %v2079_v18, 0.0  ;;  %v2417_v16 = vrot.slane %v2413_v33, 4  ;;  %v6567_v33 = vsel %vm7482_vm11, %v3061_v49, %v3062_v20  ;;  %v2626_v49 = vld [vmem:[#allocation3 + $0xb0] sm:$0x1] }
 0x290   : > { %v2890_v46 = vrot.slane %v2888_v42, 1  ;;  %v2893_v18 = vshll.u32 %v6557_v1, 16 }
 0x291   : > { %v2616_v48 = vsel %vm6202_vm8, %v2416_v51, %v2615_v31  ;;  %v2199_v35 = vpack.c.bf16 %v2111_v23, %v2111_v23  ;;  %v6542_v22 = vld [vmem:[#allocation3 + $0x90] sm:$0xff]  ;;  %v2886_v23 = vshrl.u32 %v6538_v15, 16 }
 0x292   : > { %2617 = vst [vmem:[#allocation3 + $0x9c] sm:$0xf] %v2616_v48  ;;  %v1999_v10 = vpop.f32.mrf.mxu3  ;;  %v2681_v24 = vld [vmem:[#allocation3 + $0x98] sm:$0x1]  ;;  %v2972_v32 = vshll.u32 %v6542_v22, 16  ;;  %v2970_v43 = vshrl.u32 %v6542_v22, 16 }
 0x293   : > { %v2419_v9 = vshrl.u32 %v2199_v35, 16  ;;  %v2044_v37 = vmul.f32 %v6502_v19, %v1999_v10  ;;  %3099 = vrot.lane.b32.xlu1 %v6545_v17, %s4759_s12  ;;  %v2805_v4 = vunpack.c.l.b16 %v2681_v24  ;;  %v2422_v38 = vshll.u32 %v2199_v35, 16  ;;  %v2622_v35 = vld [vmem:[#allocation3 + $0xa8] sm:$0xf] }
 0x294   : > { %v2974_v28 = vrot.slane %v2972_v32, 1  ;;  %v2891_v10 = vor.u32 %v2890_v46, %v2886_v23  ;;  %v2895_v24 = vrot.slane %v2893_v18, 1  ;;  %v3055_v32 = vrot.slane %v6321_v25, 1 }
 0x295   : > { %v2421_v56 = vrot.slane %v2419_v9, 7  ;;  %v2080_v52 = vadd.f32 %v6510_v3, %v2044_v37  ;;  %v6554_v26 = vpack.c.b16 %v2805_v4, %v2805_v4  ;;  %v3056_v37 = vrot.slane %v6327_v59, 1 }
 0x296   : > { %v2975_v12 = vor.u32 %v2974_v28, %v2970_v43  ;;  %v3064_v18 = vrot.slane %v6538_v15, 1 }
 0x297   : > { %v2424_v60 = vor.u32 %v2422_v38, %v2421_v56  ;;  %v2426_v13 = vrot.slane %v2421_v56, 4  ;;  %v2112_v21 = vmax.f32 %v2080_v52, 0.0  ;;  %v2977_v36 = vshll.u32 %v6554_v26, 16 }
 0x298   : > { %v6587_v38 = vsel %vm1060_vm2, %v2891_v10, %v2895_v24  ;;  %v6593_v59 = vsel %vm7483_vm12, %v3055_v32, %v3056_v37  ;;  %v3050_v32 = vrot.slane %v6270_v61, 1  ;;  %vm3495_vm12 = vcmask 326656  }
 0x299   : > { %v2425_v45 = vsel %vm4942_vm6, %v2417_v16, %v2424_v60  ;;  %v2620_v8 = vsel %vm6236_vm9, %v2426_v13, %v2619_v14  ;;  %v2200_v7 = vpack.c.bf16 %v2112_v21, %v2112_v21  ;;  %v2979_v57 = vrot.slane %v2977_v36, 1 }
 0x29a   : > { %2618 = vst.msk [vmem:[#allocation3 + $0xa0] sm:$0xf] %vm2118_vm0, %v2425_v45  ;;  %v2001_v55 = vpop.f32.mrf.mxu3 }
 0x29b   : > { %2621 = vst [vmem:[#allocation3 + $0xa4] sm:$0x1] %v2620_v8  ;;  %v2428_v31 = vshrl.u32 %v2200_v7, 16  ;;  %v2045_v62 = vmul.f32 %v6502_v19, %v2001_v55  ;;  %3105 = vrot.lane.b32.xlu1 %v6567_v33, %s4759_s12  ;;  %v6574_v51 = vsel %vm1060_vm2, %v2975_v12, %v2979_v57  ;;  %v2431_v5 = vshll.u32 %v2200_v7, 16 }
 0x29c   : > { %3041 = vrot.lane.b32.xlu2 %v6574_v51, %s4757_s10  ;;  %v3065_v12 = vrot.slane %v6557_v1, 1 }
 0x29d   : > { %v2430_v11 = vrot.slane %v2428_v31, 7  ;;  %v2081_v48 = vadd.f32 %v6510_v3, %v2045_v62 }
 0x29e   : > { %v6612_v10 = vsel %vm7484_vm15, %v3064_v18, %v3065_v12  ;;  %vm3528_vm15 = vcmask 392192  }
 0x29f   : > { %v2433_v44 = vor.u32 %v2431_v5, %v2430_v11  ;;  %v2113_v9 = vmax.f32 %v2081_v48, 0.0  ;;  %v2434_v36 = vrot.slane %v2430_v11, 4 }
 0x2a1   : > { %v2623_v4 = vsel %vm6202_vm8, %v2433_v44, %v2622_v35  ;;  %v2201_v20 = vpack.c.bf16 %v2113_v9, %v2113_v9  ;;  %v6584_v42 = vld [vmem:[#allocation3 + $0x9c] sm:$0xff] }
 0x2a2   : > { %2624 = vst [vmem:[#allocation3 + $0xa8] sm:$0xf] %v2623_v4  ;;  %v2004_v56 = vpop.f32.mrf.mxu3  ;;  %v2684_v52 = vld [vmem:[#allocation3 + $0xa4] sm:$0x1]  ;;  %v2984_v25 = vshll.u32 %v6584_v42, 16  ;;  %v2982_v45 = vshrl.u32 %v6584_v42, 16 }
 0x2a3   : > { %v2436_v16 = vshrl.u32 %v2201_v20, 16  ;;  %v2046_v14 = vmul.f32 %v6502_v19, %v2004_v56  ;;  %3027 = vrot.lane.b32.xlu1 %v6587_v38, %s4757_s10  ;;  %v2806_v43 = vunpack.c.l.b16 %v2684_v52  ;;  %v2439_v60 = vshll.u32 %v2201_v20, 16  ;;  %v6621_v44 = vld [vmem:[#allocation3] sm:$0xff]  ;;  %v2629_v56 = vld [vmem:[#allocation3 + $0xb4] sm:$0xf] }
 0x2a4   : > { %3101 = vrot.lane.b32.xlu2 %v6593_v59, %s4759_s12  ;;  %v2986_v8 = vrot.slane %v2984_v25, 1  ;;  %v3049_v9 = vrot.slane %v6621_v44, 1 }
 0x2a5   : > { %v2438_v28 = vrot.slane %v2436_v16, 7  ;;  %v2082_v13 = vadd.f32 %v6510_v3, %v2046_v14  ;;  %v6599_v21 = vpack.c.b16 %v2806_v43, %v2806_v43  ;;  %v2663_v14 = vld [vmem:[#allocation3 + $0x50] sm:$0x1]  ;;  %v6626_v43 = vld [vmem:[#allocation3 + $0x48] sm:$0xff] }
 0x2a6   : > { %v2987_v31 = vor.u32 %v2986_v8, %v2982_v45  ;;  %v2799_v12 = vunpack.c.l.b16 %v2663_v14 }
 0x2a7   : > { %v2441_v7 = vor.u32 %v2439_v60, %v2438_v28  ;;  %v2443_v57 = vrot.slane %v2438_v28, 4  ;;  %v2114_v55 = vmax.f32 %v2082_v13, 0.0  ;;  %v2989_v46 = vshll.u32 %v6599_v21, 16 }
 0x2a8   : > { %v3051_v60 = vsel %vm7485_vm4, %v3049_v9, %v3050_v32  ;;  %vm3561_vm4 = vcmask 457728  }
 0x2a9   : > { %v2442_v62 = vsel %vm4942_vm6, %v2434_v36, %v2441_v7  ;;  %v2627_v23 = vsel %vm6236_vm9, %v2443_v57, %v2626_v49  ;;  %v2202_v11 = vpack.c.bf16 %v2114_v55, %v2114_v55  ;;  %v2991_v5 = vrot.slane %v2989_v46, 1 }
 0x2aa   : > { %2625 = vst.msk [vmem:[#allocation3 + $0xac] sm:$0xf] %vm2118_vm0, %v2442_v62  ;;  %v2006_v1 = vpop.f32.mrf.mxu3  ;;  %v3059_v7 = vrot.slane %v6361_v34, 1  ;;  %v2900_v55 = vshll.u32 %v6626_v43, 16 }
 0x2ab   : > { %2628 = vst [vmem:[#allocation3 + $0xb0] sm:$0x1] %v2627_v23  ;;  %v2445_v48 = vshrl.u32 %v2202_v11, 16  ;;  %v2047_v35 = vmul.f32 %v6502_v19, %v2006_v1  ;;  %v6615_v24 = vsel %vm1060_vm2, %v2987_v31, %v2991_v5  ;;  %v2448_v4 = vshll.u32 %v2202_v11, 16  ;;  %v2633_v11 = vld [vmem:[#allocation3 + $0xbc] sm:$0x1] }
 0x2ac   : > { %3107 = vrot.lane.b32.xlu2 %v6612_v10, %s4759_s12  ;;  %3043 = vrot.lane.b32.xlu0 %v6615_v24, %s4757_s10 }
 0x2ad   : > { %v2447_v37 = vrot.slane %v2445_v48, 7  ;;  %v2083_v20 = vadd.f32 %v6510_v3, %v2047_v35  ;;  %v6644_v48 = vpack.c.b16 %v2799_v12, %v2799_v12  ;;  %v2898_v12 = vshrl.u32 %v6626_v43, 16 }
 0x2af   : > { %v2450_v52 = vor.u32 %v2448_v4, %v2447_v37  ;;  %v2115_v16 = vmax.f32 %v2083_v20, 0.0  ;;  %v2451_v23 = vrot.slane %v2447_v37, 4  ;;  %v3058_v20 = vrot.slane %v6355_v58, 1 }
 0x2b1   : > { %v2630_v25 = vsel %vm6202_vm8, %v2450_v52, %v2629_v56  ;;  %v2203_v28 = vpack.c.bf16 %v2115_v16, %v2115_v16  ;;  %v6631_v13 = vld [vmem:[#allocation3 + $0xa8] sm:$0xff] }
 0x2b2   : > { %2631 = vst [vmem:[#allocation3 + $0xb4] sm:$0xf] %v2630_v25  ;;  %v2009_v36 = vpop.f32.mrf.mxu3  ;;  %v2687_v49 = vld [vmem:[#allocation3 + $0xb0] sm:$0x1]  ;;  %v2996_v57 = vshll.u32 %v6631_v13, 16  ;;  %v2994_v5 = vshrl.u32 %v6631_v13, 16  ;;  %v6654_v25 = vsel %vm7486_vm7, %v3058_v20, %v3059_v7 }
 0x2b3   : > { %v2453_v45 = vshrl.u32 %v2203_v28, 16  ;;  %v2048_v61 = vmul.f32 %v6502_v19, %v2009_v36  ;;  %v2807_v8 = vunpack.c.l.b16 %v2687_v49  ;;  %v2456_v18 = vshll.u32 %v2203_v28, 16 }
 0x2b4   : > { %3316 = vrot.lane.b32.xlu2 %v6483_v41, %s4764_s14  ;;  %3097 = vrot.lane.b32.xlu0 %v3051_v60, %s4759_s12  ;;  %v2998_v1 = vrot.slane %v2996_v57, 1  ;;  %v2902_v28 = vrot.slane %v2900_v55, 1  ;;  %v2905_v49 = vshll.u32 %v6644_v48, 16  ;;  %vm3594_vm7 = vcmask 523264  }
 0x2b5   : > { %v2455_v46 = vrot.slane %v2453_v45, 7  ;;  %v2084_v31 = vadd.f32 %v6510_v3, %v2048_v61  ;;  %v6641_v62 = vpack.c.b16 %v2807_v8, %v2807_v8 }
 0x2b6   : > { %v2999_v32 = vor.u32 %v2998_v1, %v2994_v5  ;;  %v2903_v7 = vor.u32 %v2902_v28, %v2898_v12  ;;  %v6675_v1 = vld [vmem:[#allocation3 + $0x54] sm:$0xff] }
 0x2b7   : > { %v2458_v35 = vor.u32 %v2456_v18, %v2455_v46  ;;  %v2460_v9 = vrot.slane %v2455_v46, 4  ;;  %v2116_v34 = vmax.f32 %v2084_v31, 0.0  ;;  %v3001_v4 = vshll.u32 %v6641_v62, 16 }
 0x2b8   : > { %v2907_v46 = vrot.slane %v2905_v49, 1  ;;  %v3080_v18 = vrot.slane %v6473_v6, 1  ;;  %v2912_v28 = vshll.u32 %v6675_v1, 16  ;;  %v2910_v39 = vshrl.u32 %v6675_v1, 16 }
 0x2b9   : > { %v2459_v56 = vsel %vm4942_vm6, %v2451_v23, %v2458_v35  ;;  %v2634_v37 = vsel %vm6236_vm9, %v2460_v9, %v2633_v11  ;;  %v2204_v52 = vpack.c.bf16 %v2116_v34, %v2116_v34  ;;  %v3003_v16 = vrot.slane %v3001_v4, 1 }
 0x2ba   : > { %2632 = vst.msk [vmem:[#allocation3 + $0xb8] sm:$0xf] %vm2118_vm0, %v2459_v56  ;;  %v2011_v14 = vpop.f32.mrf.mxu3  ;;  %v3079_v11 = vrot.slane %v6466_v27, 1  ;;  %v6678_v34 = vsel %vm1060_vm2, %v2903_v7, %v2907_v46 }
 0x2bb   : > { %2635 = vst [vmem:[#allocation3 + $0xbc] sm:$0x1] %v2634_v37  ;;  %v2462_v60 = vshrl.u32 %v2204_v52, 16  ;;  %v2049_v58 = vmul.f32 %v6502_v19, %v2011_v14  ;;  %v6658_v36 = vsel %vm1060_vm2, %v2999_v32, %v3003_v16  ;;  %v2465_v61 = vshll.u32 %v2204_v52, 16  ;;  %v2636_v19 = vld [vmem:[#allocation3 + $0xc0] sm:$0xf] }
 0x2bc   : > { %3181 = vrot.lane.b32.xlu2 %v6305_v30, %s4763_s16  ;;  %3103 = vrot.lane.b32.xlu0 %v6654_v25, %s4759_s12  ;;  %v2666_v30 = vld [vmem:[#allocation3 + $0x5c] sm:$0x1]  ;;  %v6681_v6 = vsel %vm7487_vm5, %v3079_v11, %v3080_v18  ;;  %v2640_v37 = vld [vmem:[#allocation3 + $0xc8] sm:$0x1]  ;;  %vm3739_vm5 = vcmask 584704  }
 0x2bd   : > { %v2464_v45 = vrot.slane %v2462_v60, 7  ;;  %v2085_v8 = vadd.f32 %v6510_v3, %v2049_v58  ;;  %3045 = vrot.lane.b32.xlu1 %v6658_v36, %s4757_s10  ;;  %v2800_v35 = vunpack.c.l.b16 %v2666_v30  ;;  %v2669_v30 = vld [vmem:[#allocation3 + $0x68] sm:$0x1]  ;;  %v6724_v11 = vld [vmem:[#allocation3 + $0x18] sm:$0xff] }
 0x2bf   : > { %v2467_v57 = vor.u32 %v2465_v61, %v2464_v45  ;;  %v2117_v55 = vmax.f32 %v2085_v8, 0.0  ;;  %v6693_v14 = vpack.c.b16 %v2800_v35, %v2800_v35  ;;  %v2468_v60 = vrot.slane %v2464_v45, 4 }
 0x2c1   : > { %v2637_v31 = vsel %vm6202_vm8, %v2467_v57, %v2636_v19  ;;  %v2205_v23 = vpack.c.bf16 %v2117_v55, %v2117_v55  ;;  %v6673_v5 = vld [vmem:[#allocation3 + $0xb4] sm:$0xff]  ;;  %v2914_v55 = vrot.slane %v2912_v28, 1  ;;  %v2917_v45 = vshll.u32 %v6693_v14, 16 }
 0x2c2   : > { %2638 = vst [vmem:[#allocation3 + $0xc0] sm:$0xf] %v2637_v31  ;;  %v2690_v3 = vld [vmem:[#allocation3 + $0xbc] sm:$0x1]  ;;  %v3008_v29 = vshll.u32 %v6673_v5, 16  ;;  %v3006_v52 = vshrl.u32 %v6673_v5, 16 }
 0x2c3   : > { %v2470_v9 = vshrl.u32 %v2205_v23, 16  ;;  %v2808_v4 = vunpack.c.l.b16 %v2690_v3  ;;  %v2473_v32 = vshll.u32 %v2205_v23, 16  ;;  %v2915_v46 = vor.u32 %v2914_v55, %v2910_v39 }
 0x2c4   : > { %3029 = vrot.lane.b32.xlu2 %v6678_v34, %s4757_s10  ;;  %3351 = vrot.lane.b32.xlu0 %v6681_v6, %s4765_s17  ;;  %v3010_v16 = vrot.slane %v3008_v29, 1  ;;  %v2919_v18 = vrot.slane %v2917_v45, 1  ;;  %v2801_v23 = vunpack.c.l.b16 %v2669_v30 }
 0x2c5   : > { %v2472_v20 = vrot.slane %v2470_v9, 7  ;;  %3269 = vrot.lane.b32.xlu1 %v6466_v27, %s4766_s18  ;;  %v6690_v56 = vpack.c.b16 %v2808_v4, %v2808_v4  ;;  %v2672_v9 = vld [vmem:[#allocation3 + $0x74] sm:$0x1]  ;;  %v6729_v4 = vld [vmem:[#allocation3 + $0x6c] sm:$0xff] }
 0x2c6   : > { %v3011_v61 = vor.u32 %v3010_v16, %v3006_v52  ;;  %v6716_v31 = vsel %vm1060_vm2, %v2915_v46, %v2919_v18  ;;  %v2817_v3 = vpack.c.b16 %v2801_v23, %v2801_v23  ;;  %v2802_v29 = vunpack.c.l.b16 %v2672_v9 }
 0x2c7   : > { %v2475_v58 = vor.u32 %v2473_v32, %v2472_v20  ;;  %v2477_v49 = vrot.slane %v2472_v20, 4  ;;  %v3013_v12 = vshll.u32 %v6690_v56, 16  ;;  %v2936_v28 = vshll.u32 %v6729_v4, 16 }
 0x2c8   : > { %v2929_v32 = vshll.u32 %v2817_v3, 16  ;;  %v3074_v52 = vrot.slane %v2817_v3, 1  ;;  %v2818_v16 = vpack.c.b16 %v2802_v29, %v2802_v29  ;;  %v3076_v30 = vrot.slane %v6729_v4, 1 }
 0x2c9   : > { %v2476_v8 = vsel %vm4942_vm6, %v2468_v60, %v2475_v58  ;;  %v2641_v19 = vsel %vm6236_vm9, %v2477_v49, %v2640_v37  ;;  %v3015_v7 = vrot.slane %v3013_v12, 1  ;;  %vm7488_vm6 = vmmov %vm7481_vm3  ;;  %v3083_v9 = vrot.slane %v6519_v50, 1  ;;  %v6798_v50 = vld [vmem:[#allocation3 + $0x24] sm:$0xff] }
 0x2ca   : > { %2639 = vst.msk [vmem:[#allocation3 + $0xc4] sm:$0xf] %vm2118_vm0, %v2476_v8  ;;  %v2931_v58 = vrot.slane %v2929_v32, 1  ;;  %v6743_v8 = vpop.permute.xlu2 %3017  ;;  %v3077_v18 = vrot.slane %v2818_v16, 1  ;;  %vm7489_vm9 = vmmov %vm7481_vm3  ;;  %v3082_v29 = vrot.slane %v6513_v53, 1 }
 0x2cb   : > { %2642 = vst [vmem:[#allocation3 + $0xc8] sm:$0x1] %v2641_v19  ;;  %v6703_v57 = vsel %vm1060_vm2, %v3011_v61, %v3015_v7  ;;  %v2938_v61 = vrot.slane %v2936_v28, 1  ;;  %v2934_v7 = vshrl.u32 %v6729_v4, 16  ;;  %vm7490_vm0 = vmmov %vm7481_vm3  ;;  %vm3969_vm3 = vcmask 1043456  }
 0x2cc   : > { %3216 = vrot.lane.b32.xlu0 %v6545_v17, %s4767_s19  ;;  %3047 = vrot.lane.b32.xlu2 %v6703_v57, %s4757_s10  ;;  %v6722_v17 = vld [vmem:[#allocation3 + $0x60] sm:$0xff]  ;;  %v6768_v23 = vsel %vm7489_vm9, %v3076_v30, %v3077_v18  ;;  %vm7491_vm8 = vmmov %vm7490_vm0 }
 0x2cd   : > { %3134 = vrot.lane.b32.xlu1 %v6710_v40, %s4762_s15  ;;  %v2924_v35 = vshll.u32 %v6722_v17, 16  ;;  %v2922_v37 = vshrl.u32 %v6722_v17, 16  ;;  %v3073_v49 = vrot.slane %v6722_v17, 1  ;;  %v2939_v55 = vor.u32 %v2938_v61, %v2934_v7  ;;  %vm7493_vm11 = vmmov %vm7490_vm0 }
 0x2ce   : > { %v3086_v7 = vrot.slane %v6554_v26, 1  ;;  %vm7494_vm9 = vmmov %vm7490_vm0 }
 0x2cf   : > { %v2926_v20 = vrot.slane %v2924_v35, 1  ;;  %v6741_v12 = vsel %vm7488_vm6, %v3073_v49, %v3074_v52  ;;  %v6780_v35 = vpop.permute.xlu0 %3019  ;;  %vm3920_vm6 = vcmask 588800  }
 0x2d1   : > { %v2927_v60 = vor.u32 %v2926_v20, %v2922_v37  ;;  %v3084_v20 = vsel %vm7490_vm0, %v3082_v29, %v3083_v9  ;;  %v3812_v9 = vld [vmem:[%s7441_s4 + $0x20] sm:$0xf] }
 0x2d2   : > { %v6764_v46 = vpop.permute.xlu2 %3023  ;;  %v3910_v29 = vunpack.c.l.b16 %v3812_v9 }
 0x2d3   : > { %v6748_v19 = vsel %vm1060_vm2, %v2927_v60, %v2931_v58 }
 0x2d4   : > { %3031 = vrot.lane.b32.xlu0 %v6716_v31, %s4757_s10  ;;  %3300 = vrot.lane.b32.xlu2 %v6340_v0, %s4764_s14 }
 0x2d5   : > { %3253 = vrot.lane.b32.xlu1 %v6724_v11, %s4766_s18 }
 0x2dc   : > { %3335 = vrot.lane.b32.xlu0 %v6593_v59, %s4765_s17  ;;  %3152 = vrot.lane.b32.xlu2 %v6466_v27, %s4762_s15  ;;  %v2941_v27 = vshll.u32 %v2818_v16, 16 }
 0x2dd   : > { %3234 = vrot.lane.b32.xlu1 %v6681_v6, %s4767_s19 }
 0x2de   : > { %v2943_v45 = vrot.slane %v2941_v27, 1 }
 0x2e0   : > { %v6756_v39 = vsel %vm1060_vm2, %v2939_v55, %v2943_v45  ;;  %v3085_v45 = vrot.slane %v6542_v22, 1 }
 0x2e4   : > { %3113 = vrot.lane.b32.xlu0 %v6741_v12, %s4759_s12  ;;  %3271 = vrot.lane.b32.xlu2 %v6513_v53, %s4766_s18 }
 0x2e5   : > { %3033 = vrot.lane.b32.xlu1 %v6748_v19, %s4757_s10  ;;  %v6794_v52 = vpop.permute.xlu0 %3037 }
 0x2ec   : > { %3199 = vrot.lane.b32.xlu0 %v6483_v41, %s4763_s16  ;;  %3035 = vrot.lane.b32.xlu2 %v6756_v39, %s4757_s10  ;;  %v6774_v41 = vpop.permute.xlu1 %3021  ;;  %s7219_s10 = scalar_lea.vmem %s7444_s7, %s4595_s13 }
 0x2ed   : > { %3150 = vrot.lane.b32.xlu1 %v6729_v4, %s4762_s15  ;;  %v3026_v60 = vpop.permute.xlu0 %3025 }
 0x2f4   : > { %3232 = vrot.lane.b32.xlu0 %v6768_v23, %s4767_s19  ;;  %3197 = vrot.lane.b32.xlu2 %v6756_v39, %s4763_s16 }
 0x2f5   : > { %3115 = vrot.lane.b32.xlu1 %v6768_v23, %s4759_s12 }
 0x2f6   : > { %v6778_v3 = vpop.permute.xlu2 %3041 }
 0x2fc   : > { %3318 = vrot.lane.b32.xlu0 %v6530_v63, %s4764_s14  ;;  %3136 = vrot.lane.b32.xlu2 %v6724_v11, %s4762_s15 }
 0x2fd   : > { %3353 = vrot.lane.b32.xlu1 %v3084_v20, %s4765_s17  ;;  %v6790_v32 = vpop.permute.xlu1 %3039 }
 0x2fe   : > { %v6792_v37 = vpop.permute.xlu2 %3101 }
 0x304   : > { %3183 = vrot.lane.b32.xlu0 %v6340_v0, %s4763_s16  ;;  %3255 = vrot.lane.b32.xlu2 %v6798_v50, %s4766_s18  ;;  %v3376_v0 = vsel %vm1637_vm13, %v6468_v47, %v3026_v60 }
 0x305   : > { %3218 = vrot.lane.b32.xlu1 %v6593_v59, %s4767_s19  ;;  %v6804_v16 = vpop.permute.xlu1 %3099 }
 0x306   : > { %v3108_v28 = vpop.permute.xlu2 %3107 }
 0x30c   : > { %3302 = vrot.lane.b32.xlu0 %v6374_v2, %s4764_s14  ;;  %3117 = vrot.lane.b32.xlu2 %v6681_v6, %s4759_s12 }
 0x30d   : > { %3337 = vrot.lane.b32.xlu1 %v6654_v25, %s4765_s17  ;;  %v3106_v58 = vpop.permute.xlu1 %3105 }
 0x30e   : > { %v6815_v49 = vsel %vm1703_vm14, %v3376_v0, %v3106_v58  ;;  %v6817_v59 = vpop.permute.xlu2 %3316  ;;  %v4653_v0 = vld [vmem:[%s7441_s4 + $0x18] sm:$0xff] }
 0x314   : > { %3154 = vrot.lane.b32.xlu0 %v6513_v53, %s4762_s15  ;;  %3236 = vrot.lane.b32.xlu2 %v3084_v20, %s4767_s19  ;;  %v6834_v53 = vsel %vm7491_vm8, %v3085_v45, %v3086_v7  ;;  %v4651_v45 = vld [vmem:[%s7441_s4 + $0x8] sm:$0xff]  ;;  %vm7495_vm8 = vmmov %vm7490_vm0 }
 0x315   : > { %3201 = vrot.lane.b32.xlu1 %v6530_v63, %s4763_s16  ;;  %v3028_v6 = vpop.permute.xlu1 %3027 }
 0x316   : > { %v3378_v61 = vsel %vm1637_vm13, %v6538_v15, %v3028_v6  ;;  %v6826_v27 = vpop.permute.xlu2 %3181  ;;  %v4652_v6 = vld [vmem:[%s7441_s4 + $0x10] sm:$0xff] }
 0x317   : > { %v6830_v55 = vsel %vm1703_vm14, %v3378_v61, %v3108_v28  ;;  %v3915_v28 = vpack.c.b16 %v3910_v29, %v3910_v29 }
 0x319   : > { %v3971_v60 = vsel %vm3969_vm3, %v3915_v28, 0  ;;  %v3089_v28 = vrot.slane %v6599_v21, 1  ;;  %vm7496_vm3 = vmmov %vm7490_vm0 }
 0x31a   : > { %3976 = vmatpush.bf16.msra.mxu1 %v3971_v60  ;;  %4657 = vmatpush.bf16.msra.mxu2 %v3971_v60  ;;  %v3088_v60 = vrot.slane %v6584_v42, 1 }
 0x31c   : > { %3273 = vrot.lane.b32.xlu0 %v6542_v22, %s4766_s18  ;;  %3355 = vrot.lane.b32.xlu2 %v6834_v53, %s4765_s17 }
 0x31d   : > { %3320 = vrot.lane.b32.xlu1 %v6574_v51, %s4764_s14 }
 0x31e   : > { %v6842_v63 = vpop.permute.xlu2 %3029  ;;  %v6844_v26 = vpop.permute.xlu0 %3043  ;;  %3977 = vmatpush.bf16.msra.mxu1 %v4653_v0  ;;  %4658 = vmatpush.bf16.msra.mxu2 %v4653_v0  ;;  %v3368_v0 = vsel %vm1637_vm13, %v6621_v44, %v6743_v8 }
 0x322   : > { %3978 = vmatpush.bf16.msra.mxu1 %v4652_v6  ;;  %4659 = vmatpush.bf16.msra.mxu2 %v4652_v6 }
 0x324   : > { %3138 = vrot.lane.b32.xlu0 %v6798_v50, %s4762_s15  ;;  %3220 = vrot.lane.b32.xlu2 %v6654_v25, %s4767_s19 }
 0x325   : > { %3185 = vrot.lane.b32.xlu1 %v6374_v2, %s4763_s16 }
 0x326   : > { %v6852_v18 = vpop.permute.xlu2 %3047  ;;  %v3098_v30 = vpop.permute.xlu0 %3097  ;;  %3979 = vmatpush.bf16.msra.mxu1 %v4651_v45  ;;  %4660 = vmatpush.bf16.msra.mxu2 %v4651_v45  ;;  %v6905_v45 = vsel %vm7493_vm11, %v3088_v60, %v3089_v28  ;;  %vm7497_vm11 = vmmov %vm7490_vm0 }
 0x327   : > { %7492 = vst [vmem:[#allocation5_spill] sm:$0xff] %v6852_v18  ;;  %v3400_v6 = vsel %vm1703_vm14, %v3368_v0, %v3098_v30 }
 0x32c   : > { %3257 = vrot.lane.b32.xlu0 %v6468_v47, %s4766_s18  ;;  %3339 = vrot.lane.b32.xlu2 %v6567_v33, %s4765_s17 }
 0x32d   : > { %3304 = vrot.lane.b32.xlu1 %v6497_v54, %s4764_s14 }
 0x32e   : > { %v3301_v2 = vpop.permute.xlu2 %3300  ;;  %v6863_v25 = vpop.permute.xlu0 %3103 }
 0x32f   : > { %v6868_v58 = vpop.permute.xlu1 %3045 }
 0x334   : > { %3119 = vrot.lane.b32.xlu0 %v3084_v20, %s4759_s12  ;;  %3203 = vrot.lane.b32.xlu2 %v6574_v51, %s4763_s16  ;;  %v4650_v51 = vld [vmem:[%s7441_s4] sm:$0xff] }
 0x335   : > { %3156 = vrot.lane.b32.xlu1 %v6542_v22, %s4762_s15  ;;  %3980 = vmatpush.bf16.msra.mxu1 %v4650_v51 }
 0x336   : > { %v6878_v61 = vpop.permute.xlu2 %3152  ;;  %v6880_v7 = vpop.permute.xlu0 %3351  ;;  %4661 = vmatpush.bf16.msra.mxu2 %v4650_v51 }
 0x337   : > { %v6885_v9 = vpop.permute.xlu1 %3269 }
 0x33c   : > { %3238 = vrot.lane.b32.xlu0 %v6834_v53, %s4767_s19  ;;  %3322 = vrot.lane.b32.xlu2 %v6615_v24, %s4764_s14 }
 0x33d   : > { %3275 = vrot.lane.b32.xlu1 %v6584_v42, %s4766_s18 }
 0x33e   : > { %v6896_v22 = vpop.permute.xlu2 %3271  ;;  %v3217_v20 = vpop.permute.xlu0 %3216 }
 0x33f   : > { %v3135_v29 = vpop.permute.xlu1 %3134 }
 0x340   : > { %v3432_v18 = vsel %vm1769_vm1, %v3400_v6, %v3135_v29 }
 0x341   : > { %v3464_v44 = vsel %vm1835_vm10, %v3432_v18, %v6826_v27 }
 0x342   : > { %v3497_v30 = vsel %vm3495_vm12, %v3464_v44, %v3217_v20 }
 0x344   : > { %3357 = vrot.lane.b32.xlu0 %v6905_v45, %s4765_s17  ;;  %3187 = vrot.lane.b32.xlu2 %v6497_v54, %s4763_s16 }
 0x345   : > { %3140 = vrot.lane.b32.xlu1 %v6468_v47, %s4762_s15 }
 0x346   : > { %v3036_v21 = vpop.permute.xlu2 %3035  ;;  %v6914_v51 = vpop.permute.xlu0 %3031 }
 0x347   : > { %v3254_v8 = vpop.permute.xlu1 %3253 }
 0x348   : > { %v3530_v29 = vsel %vm3528_vm15, %v3497_v30, %v3254_v8 }
 0x349   : > { %v3563_v54 = vsel %vm3561_vm4, %v3530_v29, %v3301_v2 }
 0x34c   : > { %3222 = vrot.lane.b32.xlu0 %v6567_v33, %s4767_s19  ;;  %3306 = vrot.lane.b32.xlu2 %v6587_v38, %s4764_s14 }
 0x34d   : > { %3259 = vrot.lane.b32.xlu1 %v6538_v15, %s4766_s18 }
 0x34e   : > { %v3198_v47 = vpop.permute.xlu2 %3197  ;;  %v3336_v27 = vpop.permute.xlu0 %3335 }
 0x34f   : > { %v3235_v18 = vpop.permute.xlu1 %3234  ;;  %v3596_v20 = vsel %vm3594_vm7, %v3563_v54, %v3336_v27  ;;  %v3092_v54 = vrot.slane %v6641_v62, 1  ;;  %v3091_v27 = vrot.slane %v6631_v13, 1 }
 0x350   : > { %v3643_v28 = vunpack.c.l.b16 %v3596_v20  ;;  %v3644_v60 = vunpack.c.h.b16 %v3596_v20 }
 0x352   : > { %v3675_v0 = vpack.c.b16 %v3643_v28, %v3643_v28  ;;  %v3676_v6 = vpack.c.b16 %v3644_v60, %v3644_v60  ;;  %v6956_v28 = vsel %vm7494_vm9, %v3091_v27, %v3092_v54 }
 0x354   : > { %3740 = vst.msk [vmem:[#allocation4] sm:$0xf] %vm3739_vm5, %v3675_v0  ;;  %3341 = vrot.lane.b32.xlu0 %v6612_v10, %s4765_s17  ;;  %3158 = vrot.lane.b32.xlu2 %v6584_v42, %s4762_s15 }
 0x355   : > { %3741 = vst.msk [vmem:[#allocation4 + $0x4] sm:$0xf] %vm3739_vm5, %v3676_v6  ;;  %3121 = vrot.lane.b32.xlu1 %v6834_v53, %s4759_s12  ;;  %v3386_v6 = vsel %vm1637_vm13, %v6729_v4, %v3036_v21 }
 0x356   : > { %v6936_v33 = vpop.permute.xlu2 %3136  ;;  %v3114_v2 = vpop.permute.xlu0 %3113 }
 0x357   : > { %v3034_v44 = vpop.permute.xlu1 %3033 }
 0x358   : > { %v3384_v30 = vsel %vm1637_vm13, %v6722_v17, %v3034_v44 }
 0x35c   : > { %3205 = vrot.lane.b32.xlu0 %v6615_v24, %s4763_s16  ;;  %3277 = vrot.lane.b32.xlu2 %v6631_v13, %s4766_s18  ;;  %v4634_v8 = vld [vmem:[#allocation4] sm:$0xff]  ;;  %v3416_v24 = vsel %vm1703_vm14, %v3384_v30, %v3114_v2 }
 0x35d   : > { %3240 = vrot.lane.b32.xlu1 %v6905_v45, %s4767_s19  ;;  %4576 = vmatmul.msk.bf16.vlgmr.msra.gmra.mxu1 %vm3920_vm6, %v4634_v8 }
 0x35e   : > { %v6944_v42 = vpop.permute.xlu2 %3255  ;;  %v3200_v53 = vpop.permute.xlu0 %3199 }
 0x35f   : > { %v3151_v29 = vpop.permute.xlu1 %3150 }
 0x360   : > { %v3448_v20 = vsel %vm1769_vm1, %v3416_v24, %v3151_v29 }
 0x361   : > { %v3480_v62 = vsel %vm1835_vm10, %v3448_v20, %v3198_v47 }
 0x364   : > { %3324 = vrot.lane.b32.xlu0 %v6658_v36, %s4764_s14  ;;  %3142 = vrot.lane.b32.xlu2 %v6538_v15, %s4762_s15 }
 0x365   : > { %3359 = vrot.lane.b32.xlu1 %v6956_v28, %s4765_s17 }
 0x366   : > { %v6962_v60 = vpop.permute.xlu2 %3117  ;;  %v3233_v0 = vpop.permute.xlu0 %3232 }
 0x367   : > { %v3116_v2 = vpop.permute.xlu1 %3115  ;;  %v3513_v44 = vsel %vm3495_vm12, %v3480_v62, %v3233_v0  ;;  %v3068_v62 = vrot.slane %v6644_v48, 1 }
 0x368   : > { %v3418_v8 = vsel %vm1703_vm14, %v3386_v6, %v3116_v2  ;;  %v3546_v30 = vsel %vm3528_vm15, %v3513_v44, %v6885_v9 }
 0x369   : > { %v3450_v15 = vsel %vm1769_vm1, %v3418_v8, %v6878_v61  ;;  %v3579_v29 = vsel %vm3561_vm4, %v3546_v30, %v6817_v59  ;;  %v3370_v8 = vsel %vm1637_vm13, %v6710_v40, %v6780_v35 }
 0x36a   : > { %v3482_v47 = vsel %vm1835_vm10, %v3450_v15, %v3200_v53  ;;  %v3612_v54 = vsel %vm3594_vm7, %v3579_v29, %v6880_v7  ;;  %v3402_v48 = vsel %vm1703_vm14, %v3370_v8, %v6804_v16 }
 0x36b   : > { %v3659_v21 = vunpack.c.l.b16 %v3612_v54  ;;  %v3660_v24 = vunpack.c.h.b16 %v3612_v54  ;;  %v3515_v27 = vsel %vm3495_vm12, %v3482_v47, %v3235_v18  ;;  %v3434_v29 = vsel %vm1769_vm1, %v3402_v48, %v6936_v33 }
 0x36c   : > { %3189 = vrot.lane.b32.xlu0 %v6587_v38, %s4763_s16  ;;  %3261 = vrot.lane.b32.xlu2 %v6626_v43, %s4766_s18  ;;  %v3548_v7 = vsel %vm3528_vm15, %v3515_v27, %v6896_v22  ;;  %v3095_v27 = vrot.slane %v6690_v56, 1  ;;  %v4723_v56 = vld [vmem:[#allocation3 + $0x78] sm:$0xff] }
 0x36d   : > { %v3691_v9 = vpack.c.b16 %v3659_v21, %v3659_v21  ;;  %v3692_v61 = vpack.c.b16 %v3660_v24, %v3660_v24  ;;  %3224 = vrot.lane.b32.xlu1 %v6612_v10, %s4767_s19  ;;  %v3067_v10 = vrot.slane %v6626_v43, 1 }
 0x36e   : > { %v6985_v59 = vpop.permute.xlu2 %3236  ;;  %v3319_v53 = vpop.permute.xlu0 %3318 }
 0x36f   : > { %3756 = vst.msk [vmem:[#allocation4 + $0x40] sm:$0xf] %vm3739_vm5, %v3691_v9  ;;  %v3354_v18 = vpop.permute.xlu1 %3353  ;;  %v3581_v20 = vsel %vm3561_vm4, %v3548_v7, %v3319_v53  ;;  %v6998_v22 = vsel %vm7490_vm0, %v3067_v10, %v3068_v62  ;;  %v3094_v7 = vrot.slane %v6673_v5, 1 }
 0x370   : > { %3757 = vst.msk [vmem:[#allocation4 + $0x44] sm:$0xf] %vm3739_vm5, %v3692_v61  ;;  %v3614_v38 = vsel %vm3594_vm7, %v3581_v20, %v3354_v18 }
 0x371   : > { %v3661_v0 = vunpack.c.l.b16 %v3614_v38  ;;  %v3662_v6 = vunpack.c.h.b16 %v3614_v38 }
 0x373   : > { %v3693_v2 = vpack.c.b16 %v3661_v0, %v3661_v0  ;;  %v3694_v44 = vpack.c.b16 %v3662_v6, %v3662_v6 }
 0x374   : > { %3308 = vrot.lane.b32.xlu0 %v6678_v34, %s4764_s14  ;;  %3123 = vrot.lane.b32.xlu2 %v6905_v45, %s4759_s12 }
 0x375   : > { %3758 = vst.msk [vmem:[#allocation4 + $0x48] sm:$0xf] %vm3739_vm5, %v3693_v2  ;;  %3343 = vrot.lane.b32.xlu1 %v6998_v22, %s4765_s17 }
 0x376   : > { %3759 = vst.msk [vmem:[#allocation4 + $0x4c] sm:$0xf] %vm3739_vm5, %v3694_v44  ;;  %v3356_v30 = vpop.permute.xlu2 %3355  ;;  %v3184_v15 = vpop.permute.xlu0 %3183 }
 0x377   : > { %v3219_v45 = vpop.permute.xlu1 %3218  ;;  %v4642_v47 = vld [vmem:[#allocation4 + $0x40] sm:$0xff]  ;;  %v3466_v54 = vsel %vm1835_vm10, %v3434_v29, %v3184_v15 }
 0x378   : > { %4584 = vmatmul.msk.bf16.vlgmr.msra.gmra.mxu2 %vm3920_vm6, %v4642_v47  ;;  %v3499_v40 = vsel %vm3495_vm12, %v3466_v54, %v3219_v45  ;;  %v2693_v45 = vld [vmem:[#allocation3 + $0xc8] sm:$0x1] }
 0x379   : > { %v3532_v16 = vsel %vm3528_vm15, %v3499_v40, %v6944_v42  ;;  %v3388_v42 = vsel %vm1637_vm13, %v4723_v56, %v6794_v52 }
 0x37a   : > { %v3420_v62 = vsel %vm1703_vm14, %v3388_v42, %v6962_v60 }
 0x37c   : > { %3160 = vrot.lane.b32.xlu0 %v6631_v13, %s4762_s15  ;;  %3242 = vrot.lane.b32.xlu2 %v6956_v28, %s4767_s19 }
 0x37d   : > { %3207 = vrot.lane.b32.xlu1 %v6658_v36, %s4763_s16  ;;  %v7031_v36 = vsel %vm7495_vm8, %v3094_v7, %v3095_v27  ;;  %v4643_v6 = vld [vmem:[#allocation4 + $0x48] sm:$0xff] }
 0x37e   : > { %v7022_v35 = vpop.permute.xlu2 %3220  ;;  %v3303_v33 = vpop.permute.xlu0 %3302 }
 0x37f   : > { %v3338_v21 = vpop.permute.xlu1 %3337  ;;  %v3565_v24 = vsel %vm3561_vm4, %v3532_v16, %v3303_v33  ;;  %v3167_v33 = vunpack.c.l.b16 %v2693_v45 }
 0x380   : > { %v3598_v9 = vsel %vm3594_vm7, %v3565_v24, %v3338_v21 }
 0x381   : > { %v3645_v13 = vunpack.c.l.b16 %v3598_v9  ;;  %v3646_v61 = vunpack.c.h.b16 %v3598_v9 }
 0x383   : > { %v3677_v53 = vpack.c.b16 %v3645_v13, %v3645_v13  ;;  %v3678_v18 = vpack.c.b16 %v3646_v61, %v3646_v61  ;;  %v3168_v61 = vpack.c.b16 %v3167_v33, %v3167_v33 }
 0x384   : > { %3279 = vrot.lane.b32.xlu0 %v6673_v5, %s4766_s18  ;;  %3361 = vrot.lane.b32.xlu2 %v7031_v36, %s4765_s17 }
 0x385   : > { %3742 = vst.msk [vmem:[#allocation4 + $0x8] sm:$0xf] %vm3739_vm5, %v3677_v53  ;;  %3326 = vrot.lane.b32.xlu1 %v6703_v57, %s4764_s14  ;;  %v3177_v42 = vshll.u32 %v3168_v61, 16  ;;  %v3214_v45 = vrot.slane %v3168_v61, 1 }
 0x386   : > { %3743 = vst.msk [vmem:[#allocation4 + $0xc] sm:$0xf] %vm3739_vm5, %v3678_v18  ;;  %v3340_v20 = vpop.permute.xlu2 %3339  ;;  %v3155_v38 = vpop.permute.xlu0 %3154 }
 0x387   : > { %v3202_v0 = vpop.permute.xlu1 %3201  ;;  %v3452_v10 = vsel %vm1769_vm1, %v3420_v62, %v3155_v38 }
 0x388   : > { %4585 = vmatmul.msk.bf16.gmra.mxu2 %vm3920_vm6, %v4643_v6  ;;  %v3484_v2 = vsel %vm1835_vm10, %v3452_v10, %v3202_v0 }
 0x389   : > { %v3517_v60 = vsel %vm3495_vm12, %v3484_v2, %v6985_v59  ;;  %v7067_v59 = vld [vmem:[#allocation3 + $0xc0] sm:$0xff] }
 0x38a   : > { %v3172_v7 = vshll.u32 %v7067_v59, 16 }
 0x38c   : > { %3144 = vrot.lane.b32.xlu0 %v6626_v43, %s4762_s15  ;;  %3226 = vrot.lane.b32.xlu2 %v6998_v22, %s4767_s19  ;;  %v3071_v43 = vrot.slane %v6693_v14, 1  ;;  %v3372_v14 = vsel %vm1637_vm13, %v6724_v11, %v6774_v41  ;;  %v3174_v56 = vrot.slane %v3172_v7, 1  ;;  %v3170_v11 = vshrl.u32 %v7067_v59, 16  ;;  %v2696_v7 = vld [vmem:[#allocation3 + $0xd4] sm:$0x1] }
 0x38d   : > { %3191 = vrot.lane.b32.xlu1 %v6678_v34, %s4763_s16  ;;  %v4635_v52 = vld [vmem:[#allocation4 + $0x8] sm:$0xff]  ;;  %v3070_v34 = vrot.slane %v6675_v1, 1  ;;  %v3404_v9 = vsel %vm1703_vm14, %v3372_v14, %v6792_v37 }
 0x38e   : > { %v7054_v44 = vpop.permute.xlu2 %3203  ;;  %v3274_v8 = vpop.permute.xlu0 %3273  ;;  %4577 = vmatmul.msk.bf16.gmra.mxu1 %vm3920_vm6, %v4635_v52  ;;  %v3175_v10 = vor.u32 %v3174_v56, %v3170_v11  ;;  %v4633_v11 = vld [vmem:[#allocation3 + $0xcc] sm:$0xff] }
 0x38f   : > { %v3321_v48 = vpop.permute.xlu1 %3320  ;;  %v3550_v15 = vsel %vm3528_vm15, %v3517_v60, %v3274_v8  ;;  %v7065_v16 = vsel %vm7496_vm3, %v3070_v34, %v3071_v43  ;;  %v4724_v43 = vld [vmem:[#allocation3 + $0x84] sm:$0xff]  ;;  %v3213_v34 = vrot.slane %v7067_v59, 1 }
 0x390   : > { %v3583_v29 = vsel %vm3561_vm4, %v3550_v15, %v3321_v48 }
 0x391   : > { %v3616_v47 = vsel %vm3594_vm7, %v3583_v29, %v3356_v30  ;;  %v3390_v29 = vsel %vm1637_vm13, %v4724_v43, %v6790_v32 }
 0x392   : > { %v3663_v54 = vunpack.c.l.b16 %v3616_v47  ;;  %v3664_v40 = vunpack.c.h.b16 %v3616_v47 }
 0x394   : > { %v3695_v21 = vpack.c.b16 %v3663_v54, %v3663_v54  ;;  %v3696_v24 = vpack.c.b16 %v3664_v40, %v3664_v40  ;;  %3263 = vrot.lane.b32.xlu0 %v6675_v1, %s4766_s18  ;;  %3345 = vrot.lane.b32.xlu2 %v7065_v16, %s4765_s17  ;;  %v3215_v40 = vsel %vm7497_vm11, %v3213_v34, %v3214_v45 }
 0x395   : > { %3310 = vrot.lane.b32.xlu1 %v6716_v31, %s4764_s14 }
 0x396   : > { %3760 = vst.msk [vmem:[#allocation4 + $0x50] sm:$0xf] %vm3739_vm5, %v3695_v21  ;;  %v3323_v30 = vpop.permute.xlu2 %3322  ;;  %v3139_v27 = vpop.permute.xlu0 %3138 }
 0x397   : > { %3761 = vst.msk [vmem:[#allocation4 + $0x54] sm:$0xf] %vm3739_vm5, %v3696_v24  ;;  %v3186_v13 = vpop.permute.xlu1 %3185  ;;  %v3436_v53 = vsel %vm1769_vm1, %v3404_v9, %v3139_v27 }
 0x398   : > { %v3468_v18 = vsel %vm1835_vm10, %v3436_v53, %v3186_v13 }
 0x399   : > { %v3501_v37 = vsel %vm3495_vm12, %v3468_v18, %v7022_v35 }
 0x39c   : > { %3125 = vrot.lane.b32.xlu0 %v6956_v28, %s4759_s12  ;;  %3209 = vrot.lane.b32.xlu2 %v6703_v57, %s4763_s16  ;;  %v3179_v28 = vrot.slane %v3177_v42, 1 }
 0x39d   : > { %3162 = vrot.lane.b32.xlu1 %v6673_v5, %s4762_s15 }
 0x39e   : > { %v7092_v41 = vpop.permute.xlu2 %3187  ;;  %v3258_v38 = vpop.permute.xlu0 %3257  ;;  %v4644_v62 = vld [vmem:[#allocation4 + $0x50] sm:$0xff]  ;;  %v7101_v60 = vsel %vm1060_vm2, %v3175_v10, %v3179_v28  ;;  %v3289_v28 = vshrl.u32 %v4633_v11, 16 }
 0x39f   : > { %v3305_v0 = vpop.permute.xlu1 %3304  ;;  %v3534_v6 = vsel %vm3528_vm15, %v3501_v37, %v3258_v38  ;;  %4586 = vmatmul.msk.bf16.gmra.mxu2 %vm3920_vm6, %v4644_v62  ;;  %v3286_v37 = vunpack.c.l.b16 %v2696_v7  ;;  %v3291_v62 = vshll.u32 %v4633_v11, 16 }
 0x3a0   : > { %v3567_v2 = vsel %vm3561_vm4, %v3534_v6, %v3305_v0 }
 0x3a1   : > { %v3600_v5 = vsel %vm3594_vm7, %v3567_v2, %v3340_v20  ;;  %v3293_v2 = vrot.slane %v3291_v62, 1 }
 0x3a2   : > { %v3647_v57 = vunpack.c.l.b16 %v3600_v5  ;;  %v3648_v52 = vunpack.c.h.b16 %v3600_v5 }
 0x3a4   : > { %v3679_v8 = vpack.c.b16 %v3647_v57, %v3647_v57  ;;  %v3680_v35 = vpack.c.b16 %v3648_v52, %v3648_v52  ;;  %3244 = vrot.lane.b32.xlu0 %v7031_v36, %s4767_s19  ;;  %3328 = vrot.lane.b32.xlu2 %v7101_v60, %s4764_s14 }
 0x3a5   : > { %3281 = vrot.lane.b32.xlu1 %v7067_v59, %s4766_s18 }
 0x3a6   : > { %3744 = vst.msk [vmem:[#allocation4 + $0x10] sm:$0xf] %vm3739_vm5, %v3679_v8  ;;  %v3307_v48 = vpop.permute.xlu2 %3306  ;;  %v3120_v20 = vpop.permute.xlu0 %3119  ;;  %v3294_v8 = vor.u32 %v3293_v2, %v3289_v28 }
 0x3a7   : > { %3745 = vst.msk [vmem:[#allocation4 + $0x14] sm:$0xf] %vm3739_vm5, %v3680_v35  ;;  %v3157_v15 = vpop.permute.xlu1 %3156  ;;  %v3422_v47 = vsel %vm1703_vm14, %v3390_v29, %v3120_v20 }
 0x3a8   : > { %v3454_v54 = vsel %vm1769_vm1, %v3422_v47, %v3157_v15 }
 0x3a9   : > { %v3486_v14 = vsel %vm1835_vm10, %v3454_v54, %v7054_v44  ;;  %v4725_v54 = vld [vmem:[#allocation3 + $0x90] sm:$0xff] }
 0x3ac   : > { %3109 = vrot.lane.b32.xlu0 %v6998_v22, %s4759_s12  ;;  %3146 = vrot.lane.b32.xlu2 %v6675_v1, %s4762_s15 }
 0x3ad   : > { %3363 = vrot.lane.b32.xlu1 %v3215_v40, %s4765_s17 }
 0x3ae   : > { %v7122_v33 = vpop.permute.xlu2 %3158  ;;  %v3239_v32 = vpop.permute.xlu0 %3238  ;;  %v4636_v21 = vld [vmem:[#allocation4 + $0x10] sm:$0xff] }
 0x3af   : > { %v3276_v24 = vpop.permute.xlu1 %3275  ;;  %v3519_v27 = vsel %vm3495_vm12, %v3486_v14, %v3239_v32  ;;  %4578 = vmatmul.msk.bf16.gmra.mxu1 %vm3920_vm6, %v4636_v21 }
 0x3b0   : > { %v3552_v22 = vsel %vm3528_vm15, %v3519_v27, %v3276_v24 }
 0x3b1   : > { %v3585_v9 = vsel %vm3561_vm4, %v3552_v22, %v3323_v30 }
 0x3b4   : > { %3193 = vrot.lane.b32.xlu0 %v6716_v31, %s4763_s16  ;;  %3265 = vrot.lane.b32.xlu2 %v6722_v17, %s4766_s18  ;;  %v3374_v31 = vsel %vm1637_vm13, %v6798_v50, %v6764_v46  ;;  %v3287_v50 = vpack.c.b16 %v3286_v37, %v3286_v37 }
 0x3b5   : > { %3228 = vrot.lane.b32.xlu1 %v7065_v16, %s4767_s19  ;;  %v3406_v38 = vsel %vm1703_vm14, %v3374_v31, %v6863_v25 }
 0x3b6   : > { %v7135_v1 = vpop.permute.xlu2 %3277  ;;  %v3358_v44 = vpop.permute.xlu0 %3357  ;;  %v3296_v5 = vshll.u32 %v3287_v50, 16  ;;  %v3333_v32 = vrot.slane %v3287_v50, 1 }
 0x3b7   : > { %v3141_v13 = vpop.permute.xlu1 %3140  ;;  %v3618_v61 = vsel %vm3594_vm7, %v3585_v9, %v3358_v44 }
 0x3b8   : > { %v3665_v53 = vunpack.c.l.b16 %v3618_v61  ;;  %v3666_v18 = vunpack.c.h.b16 %v3618_v61  ;;  %v3438_v30 = vsel %vm1769_vm1, %v3406_v38, %v3141_v13  ;;  %v3298_v35 = vrot.slane %v3296_v5, 1 }
 0x3b9   : > { %v3470_v6 = vsel %vm1835_vm10, %v3438_v30, %v7092_v41 }
 0x3ba   : > { %v3697_v56 = vpack.c.b16 %v3665_v53, %v3665_v53  ;;  %v3698_v42 = vpack.c.b16 %v3666_v18, %v3666_v18  ;;  %v3299_v34 = vsel %vm1060_vm2, %v3294_v8, %v3298_v35  ;;  %vm7498_vm2 = vmmov %vm7490_vm0  ;;  %v4726_v8 = vld [vmem:[#allocation3 + $0x9c] sm:$0xff] }
 0x3bb   : > { %v3394_v35 = vsel %vm1637_vm13, %v4726_v8, %v6844_v26 }
 0x3bc   : > { %3762 = vst.msk [vmem:[#allocation4 + $0x58] sm:$0xf] %vm3739_vm5, %v3697_v56  ;;  %3312 = vrot.lane.b32.xlu0 %v6748_v19, %s4764_s14  ;;  %3127 = vrot.lane.b32.xlu2 %v7031_v36, %s4759_s12 }
 0x3bd   : > { %3763 = vst.msk [vmem:[#allocation4 + $0x5c] sm:$0xf] %vm3739_vm5, %v3698_v42  ;;  %3347 = vrot.lane.b32.xlu1 %v6741_v12, %s4765_s17 }
 0x3be   : > { %v3223_v46 = vpop.permute.xlu0 %3222  ;;  %v7153_v25 = vpop.permute.xlu2 %3142 }
 0x3bf   : > { %v3260_v0 = vpop.permute.xlu1 %3259  ;;  %v3503_v10 = vsel %vm3495_vm12, %v3470_v6, %v3223_v46  ;;  %v3440_v30 = vsel %vm1769_vm1, %v6815_v49, %v7153_v25 }
 0x3c0   : > { %v3536_v36 = vsel %vm3528_vm15, %v3503_v10, %v3260_v0 }
 0x3c1   : > { %v3569_v41 = vsel %vm3561_vm4, %v3536_v36, %v3307_v48  ;;  %v3332_v48 = vrot.slane %v4633_v11, 1 }
 0x3c3   : > { %v3334_v27 = vsel %vm7498_vm2, %v3332_v48, %v3333_v32 }
 0x3c4   : > { %3164 = vrot.lane.b32.xlu0 %v7067_v59, %s4762_s15  ;;  %3246 = vrot.lane.b32.xlu2 %v3215_v40, %s4767_s19  ;;  %v4645_v57 = vld [vmem:[#allocation4 + $0x58] sm:$0xff] }
 0x3c5   : > { %3211 = vrot.lane.b32.xlu1 %v7101_v60, %s4763_s16  ;;  %4587 = vmatmul.msk.bf16.gmra.mxu2 %vm3920_vm6, %v4645_v57  ;;  %v3392_v60 = vsel %vm1637_vm13, %v4725_v54, %v6778_v3 }
 0x3c6   : > { %v3342_v52 = vpop.permute.xlu0 %3341  ;;  %v3262_v45 = vpop.permute.xlu2 %3261 }
 0x3c7   : > { %v3122_v20 = vpop.permute.xlu1 %3121  ;;  %v3602_v15 = vsel %vm3594_vm7, %v3569_v41, %v3342_v52 }
 0x3c8   : > { %v3649_v43 = vunpack.c.l.b16 %v3602_v15  ;;  %v3650_v29 = vunpack.c.h.b16 %v3602_v15  ;;  %v3424_v40 = vsel %vm1703_vm14, %v3392_v60, %v3122_v20 }
 0x3c9   : > { %v3456_v3 = vsel %vm1769_vm1, %v3424_v40, %v7122_v33 }
 0x3ca   : > { %v3681_v59 = vpack.c.b16 %v3649_v43, %v3649_v43  ;;  %v3682_v47 = vpack.c.b16 %v3650_v29, %v3650_v29 }
 0x3cc   : > { %3746 = vst.msk [vmem:[#allocation4 + $0x18] sm:$0xf] %vm3739_vm5, %v3681_v59  ;;  %3283 = vrot.lane.b32.xlu0 %v4633_v11, %s4766_s18  ;;  %3111 = vrot.lane.b32.xlu2 %v7065_v16, %s4759_s12 }
 0x3cd   : > { %3747 = vst.msk [vmem:[#allocation4 + $0x1c] sm:$0xf] %vm3739_vm5, %v3682_v47  ;;  %3330 = vrot.lane.b32.xlu1 %v3299_v34, %s4764_s14 }
 0x3ce   : > { %v3206_v21 = vpop.permute.xlu0 %3205  ;;  %v3124_v22 = vpop.permute.xlu2 %3123 }
 0x3cf   : > { %v3241_v24 = vpop.permute.xlu1 %3240  ;;  %v3488_v14 = vsel %vm1835_vm10, %v3456_v3, %v3206_v21  ;;  %v3426_v15 = vsel %vm1703_vm14, %v3394_v35, %v3124_v22 }
 0x3d0   : > { %v3521_v9 = vsel %vm3495_vm12, %v3488_v14, %v3241_v24 }
 0x3d1   : > { %v3554_v33 = vsel %vm3528_vm15, %v3521_v9, %v7135_v1 }
 0x3d4   : > { %3365 = vrot.lane.b32.xlu0 %v3334_v27, %s4765_s17  ;;  %3195 = vrot.lane.b32.xlu2 %v6748_v19, %s4763_s16  ;;  %v4637_v16 = vld [vmem:[#allocation4 + $0x18] sm:$0xff]  ;;  %v7195_v19 = vld [vmem:[%s7442_s5] ss:$0 sm:$0xff] }
 0x3d5   : > { %3148 = vrot.lane.b32.xlu1 %v6722_v17, %s4762_s15  ;;  %4579 = vmatmul.msk.bf16.gmra.mxu1 %vm3920_vm6, %v4637_v16  ;;  %v7200_v17 = vld [vmem:[%s7443_s6] ss:$0 sm:$0xff] }
 0x3d6   : > { %v3325_v44 = vpop.permute.xlu0 %3324  ;;  %v3243_v11 = vpop.permute.xlu2 %3242 }
 0x3d7   : > { %v3360_v13 = vpop.permute.xlu1 %3359  ;;  %v3587_v61 = vsel %vm3561_vm4, %v3554_v33, %v3325_v44 }
 0x3d8   : > { %v3620_v7 = vsel %vm3594_vm7, %v3587_v61, %v3360_v13 }
 0x3d9   : > { %v3667_v53 = vunpack.c.l.b16 %v3620_v7  ;;  %v3668_v18 = vunpack.c.h.b16 %v3620_v7 }
 0x3da   : > { %v3982_v56 = vpop.f32.mrf.mxu1 }
 0x3db   : > { %v3699_v31 = vpack.c.b16 %v3667_v53, %v3667_v53  ;;  %v3700_v1 = vpack.c.b16 %v3668_v18, %v3668_v18  ;;  %v4066_v42 = vmul.f32 %v7195_v19, %v3982_v56 }
 0x3dc   : > { %3230 = vrot.lane.b32.xlu0 %v6741_v12, %s4767_s19  ;;  %3314 = vrot.lane.b32.xlu2 %v6756_v39, %s4764_s14 }
 0x3dd   : > { %3764 = vst.msk [vmem:[#allocation4 + $0x60] sm:$0xf] %vm3739_vm5, %v3699_v31  ;;  %3267 = vrot.lane.b32.xlu1 %v6729_v4, %s4766_s18  ;;  %v4102_v37 = vadd.f32 %v7200_v17, %v4066_v42 }
 0x3de   : > { %3765 = vst.msk [vmem:[#allocation4 + $0x64] sm:$0xf] %vm3739_vm5, %v3700_v1  ;;  %v3190_v38 = vpop.permute.xlu0 %3189  ;;  %v3362_v10 = vpop.permute.xlu2 %3361 }
 0x3df   : > { %v3225_v12 = vpop.permute.xlu1 %3224  ;;  %v4134_v39 = vmax.f32 %v4102_v37, 0.0  ;;  %v3472_v46 = vsel %vm1835_vm10, %v3440_v30, %v3190_v38 }
 0x3e0   : > { %v3505_v4 = vsel %vm3495_vm12, %v3472_v46, %v3225_v12 }
 0x3e1   : > { %4167 = vst.msk [vmem:[%s7219_s10] sm:$0xff] %vm1637_vm13, %v4134_v39  ;;  %v3538_v25 = vsel %vm3528_vm15, %v3505_v4, %v3262_v45 }
 0x3e2   : > { %v3984_v50 = vpop.f32.mrf.mxu1 }
 0x3e3   : > { %v4067_v62 = vmul.f32 %v7195_v19, %v3984_v50 }
 0x3e4   : > { %3349 = vrot.lane.b32.xlu0 %v6768_v23, %s4765_s17 }
 0x3e5   : > { %v4646_v49 = vld [vmem:[#allocation4 + $0x60] sm:$0xff]  ;;  %v4103_v0 = vadd.f32 %v7200_v17, %v4067_v62 }
 0x3e6   : > { %v3309_v6 = vpop.permute.xlu0 %3308  ;;  %4588 = vmatmul.msk.bf16.gmra.mxu2 %vm3920_vm6, %v4646_v49  ;;  %v3227_v45 = vpop.permute.xlu2 %3226 }
 0x3e7   : > { %v3344_v28 = vpop.permute.xlu1 %3343  ;;  %v3571_v2 = vsel %vm3561_vm4, %v3538_v25, %v3309_v6  ;;  %v4135_v5 = vmax.f32 %v4103_v0, 0.0 }
 0x3e8   : > { %v3604_v36 = vsel %vm3594_vm7, %v3571_v2, %v3344_v28 }
 0x3e9   : > { %v3651_v57 = vunpack.c.l.b16 %v3604_v36  ;;  %v3652_v41 = vunpack.c.h.b16 %v3604_v36  ;;  %4168 = vst.msk [vmem:[%s7219_s10 + $0x8] sm:$0xff] %vm1637_vm13, %v4135_v5  ;;  %v4727_v5 = vld [vmem:[#allocation3 + $0xa8] sm:$0xff] }
 0x3ea   : > { %v3396_v36 = vsel %vm1637_vm13, %v4727_v5, %v6868_v58 }
 0x3eb   : > { %v3683_v23 = vpack.c.b16 %v3651_v57, %v3651_v57  ;;  %v3684_v52 = vpack.c.b16 %v3652_v41, %v3652_v41 }
 0x3ed   : > { %3748 = vst.msk [vmem:[#allocation4 + $0x20] sm:$0xf] %vm3739_vm5, %v3683_v23 }
 0x3ee   : > { %3749 = vst.msk [vmem:[#allocation4 + $0x24] sm:$0xf] %vm3739_vm5, %v3684_v52  ;;  %v3161_v20 = vpop.permute.xlu0 %3160  ;;  %v3346_v24 = vpop.permute.xlu2 %3345 }
 0x3ef   : > { %v3208_v43 = vpop.permute.xlu1 %3207  ;;  %v3458_v29 = vsel %vm1769_vm1, %v3426_v15, %v3161_v20 }
 0x3f0   : > { %v3490_v59 = vsel %vm1835_vm10, %v3458_v29, %v3208_v43 }
 0x3f1   : > { %v3523_v34 = vsel %vm3495_vm12, %v3490_v59, %v3243_v11 }
 0x3f5   : > { %v4638_v47 = vld [vmem:[#allocation4 + $0x20] sm:$0xff] }
 0x3f6   : > { %v3280_v54 = vpop.permute.xlu0 %3279  ;;  %4580 = vmatmul.msk.bf16.gmra.mxu1 %vm3920_vm6, %v4638_v47  ;;  %v3210_v53 = vpop.permute.xlu2 %3209 }
 0x3f7   : > { %v3327_v60 = vpop.permute.xlu1 %3326  ;;  %v3556_v40 = vsel %vm3528_vm15, %v3523_v34, %v3280_v54 }
 0x3f8   : > { %v3589_v26 = vsel %vm3561_vm4, %v3556_v40, %v3327_v60 }
 0x3f9   : > { %v3622_v48 = vsel %vm3594_vm7, %v3589_v26, %v3362_v10 }
 0x3fa   : > { %v3669_v32 = vunpack.c.l.b16 %v3622_v48  ;;  %v3670_v21 = vunpack.c.h.b16 %v3622_v48 }
 0x3fb   : > { %v4022_v27 = vpop.f32.mrf.mxu2 }
 0x3fc   : > { %v3701_v3 = vpack.c.b16 %v3669_v32, %v3669_v32  ;;  %v3702_v14 = vpack.c.b16 %v3670_v21, %v3670_v21  ;;  %v4082_v22 = vmul.f32 %v7195_v19, %v4022_v27  ;;  %v4728_v27 = vld [vmem:[#allocation3 + $0x48] sm:$0xff] }
 0x3fe   : > { %3766 = vst.msk [vmem:[#allocation4 + $0x68] sm:$0xf] %vm3739_vm5, %v3701_v3  ;;  %v3145_v9 = vpop.permute.xlu0 %3144  ;;  %v4118_v16 = vadd.f32 %v7200_v17, %v4082_v22  ;;  %v3329_v6 = vpop.permute.xlu2 %3328  ;;  %v3380_v22 = vsel %vm1637_vm13, %v4728_v27, %v6842_v63 }
 0x3ff   : > { %3767 = vst.msk [vmem:[#allocation4 + $0x6c] sm:$0xf] %vm3739_vm5, %v3702_v14  ;;  %v3192_v33 = vpop.permute.xlu1 %3191  ;;  %v3442_v44 = vsel %vm1769_vm1, %v6830_v55, %v3145_v9 }
 0x400   : > { %v4150_v13 = vmax.f32 %v4118_v16, 0.0  ;;  %v3474_v61 = vsel %vm1835_vm10, %v3442_v44, %v3192_v33 }
 0x401   : > { %v3507_v31 = vsel %vm3495_vm12, %v3474_v61, %v3227_v45 }
 0x402   : > { %4183 = vst.msk [vmem:[%s7219_s10 + $0x80] sm:$0xff] %vm1637_vm13, %v4150_v13 }
 0x403   : > { %v4024_v7 = vpop.f32.mrf.mxu2 }
 0x404   : > { %v4083_v18 = vmul.f32 %v7195_v19, %v4024_v7 }
 0x406   : > { %v3264_v1 = vpop.permute.xlu0 %3263  ;;  %v4647_v56 = vld [vmem:[#allocation4 + $0x68] sm:$0xff]  ;;  %v4119_v42 = vadd.f32 %v7200_v17, %v4083_v18  ;;  %v3147_v34 = vpop.permute.xlu2 %3146 }
 0x407   : > { %v3311_v11 = vpop.permute.xlu1 %3310  ;;  %v3540_v37 = vsel %vm3528_vm15, %v3507_v31, %v3264_v1  ;;  %4589 = vmatmul.msk.bf16.gmra.mxu2 %vm3920_vm6, %v4647_v56 }
 0x408   : > { %v3573_v55 = vsel %vm3561_vm4, %v3540_v37, %v3311_v11  ;;  %v4151_v38 = vmax.f32 %v4119_v42, 0.0 }
 0x409   : > { %v3606_v30 = vsel %vm3594_vm7, %v3573_v55, %v3346_v24 }
 0x40a   : > { %v3653_v12 = vunpack.c.l.b16 %v3606_v30  ;;  %v3654_v39 = vunpack.c.h.b16 %v3606_v30  ;;  %4184 = vst.msk [vmem:[%s7219_s10 + $0x88] sm:$0xff] %vm1637_vm13, %v4151_v38 }
 0x40b   : > { %v3987_v50 = vpop.f32.mrf.mxu1  ;;  %v4027_v62 = vpop.f32.mrf.mxu2 }
 0x40c   : > { %v3685_v46 = vpack.c.b16 %v3653_v12, %v3653_v12  ;;  %v3686_v4 = vpack.c.b16 %v3654_v39, %v3654_v39  ;;  %v4068_v49 = vmul.f32 %v7195_v19, %v3987_v50  ;;  %v4084_v0 = vmul.f32 %v7195_v19, %v4027_v62 }
 0x40e   : > { %3750 = vst.msk [vmem:[#allocation4 + $0x28] sm:$0xf] %vm3739_vm5, %v3685_v46  ;;  %v3126_v25 = vpop.permute.xlu0 %3125  ;;  %v4104_v10 = vadd.f32 %v7200_v17, %v4068_v49  ;;  %v4120_v28 = vadd.f32 %v7200_v17, %v4084_v0  ;;  %v3266_v9 = vpop.permute.xlu2 %3265 }
 0x40f   : > { %3751 = vst.msk [vmem:[#allocation4 + $0x2c] sm:$0xf] %vm3739_vm5, %v3686_v4  ;;  %v3163_v2 = vpop.permute.xlu1 %3162  ;;  %v3428_v23 = vsel %vm1703_vm14, %v3396_v36, %v3126_v25 }
 0x410   : > { %v4136_v57 = vmax.f32 %v4104_v10, 0.0  ;;  %v4152_v41 = vmax.f32 %v4120_v28, 0.0  ;;  %v3460_v35 = vsel %vm1769_vm1, %v3428_v23, %v3163_v2 }
 0x411   : > { %v3492_v47 = vsel %vm1835_vm10, %v3460_v35, %v3210_v53  ;;  %v7499_v35 = vld [vmem:[#allocation5_spill] sm:$0xff] }
 0x412   : > { %4169 = vst.msk [vmem:[%s7219_s10 + $0x10] sm:$0xff] %vm1637_vm13, %v4136_v57 }
 0x413   : > { %4185 = vst.msk [vmem:[%s7219_s10 + $0x90] sm:$0xff] %vm1637_vm13, %v4152_v41  ;;  %v3989_v52 = vpop.f32.mrf.mxu1  ;;  %v4029_v8 = vpop.f32.mrf.mxu2 }
 0x414   : > { %v4069_v20 = vmul.f32 %v7195_v19, %v3989_v52  ;;  %v4085_v15 = vmul.f32 %v7195_v19, %v4029_v8  ;;  %v4729_v8 = vld [vmem:[#allocation3 + $0xb4] sm:$0xff] }
 0x416   : > { %v3245_v43 = vpop.permute.xlu0 %3244  ;;  %v4639_v58 = vld [vmem:[#allocation4 + $0x28] sm:$0xff]  ;;  %v4105_v29 = vadd.f32 %v7200_v17, %v4069_v20  ;;  %v4121_v45 = vadd.f32 %v7200_v17, %v4085_v15  ;;  %v3128_v37 = vpop.permute.xlu2 %3127  ;;  %v3398_v20 = vsel %vm1637_vm13, %v4729_v8, %v7499_v35 }
 0x417   : > { %v3282_v59 = vpop.permute.xlu1 %3281  ;;  %4581 = vmatmul.msk.bf16.gmra.mxu1 %vm3920_vm6, %v4639_v58  ;;  %v3525_v40 = vsel %vm3495_vm12, %v3492_v47, %v3245_v43  ;;  %v3430_v43 = vsel %vm1703_vm14, %v3398_v20, %v3128_v37 }
 0x418   : > { %v4137_v54 = vmax.f32 %v4105_v29, 0.0  ;;  %v4153_v60 = vmax.f32 %v4121_v45, 0.0  ;;  %v3558_v26 = vsel %vm3528_vm15, %v3525_v40, %v3282_v59 }
 0x419   : > { %v3591_v21 = vsel %vm3561_vm4, %v3558_v26, %v3329_v6 }
 0x41a   : > { %4170 = vst.msk [vmem:[%s7219_s10 + $0x18] sm:$0xff] %vm1637_vm13, %v4137_v54 }
 0x41b   : > { %4186 = vst.msk [vmem:[%s7219_s10 + $0x98] sm:$0xff] %vm1637_vm13, %v4153_v60 }
 0x41e   : > { %v3110_v48 = vpop.permute.xlu0 %3109  ;;  %v3247_v41 = vpop.permute.xlu2 %3246 }
 0x41f   : > { %v3364_v32 = vpop.permute.xlu1 %3363  ;;  %v3412_v13 = vsel %vm1703_vm14, %v3380_v22, %v3110_v48 }
 0x420   : > { %v3624_v24 = vsel %vm3594_vm7, %v3591_v21, %v3364_v32  ;;  %v3444_v31 = vsel %vm1769_vm1, %v3412_v13, %v3147_v34 }
 0x421   : > { %v3671_v3 = vunpack.c.l.b16 %v3624_v24  ;;  %v3672_v14 = vunpack.c.h.b16 %v3624_v24 }
 0x422   : > { %v4032_v44 = vpop.f32.mrf.mxu2 }
 0x423   : > { %v3703_v16 = vpack.c.b16 %v3671_v3, %v3671_v3  ;;  %v3704_v33 = vpack.c.b16 %v3672_v14, %v3672_v14  ;;  %v4086_v61 = vmul.f32 %v7195_v19, %v4032_v44  ;;  %v4730_v14 = vld [vmem:[#allocation3 + $0x54] sm:$0xff] }
 0x424   : > { %v3382_v27 = vsel %vm1637_vm13, %v4730_v14, %v6914_v51 }
 0x425   : > { %3768 = vst.msk [vmem:[#allocation4 + $0x70] sm:$0xf] %vm3739_vm5, %v3703_v16  ;;  %v4122_v7 = vadd.f32 %v7200_v17, %v4086_v61 }
 0x426   : > { %3769 = vst.msk [vmem:[#allocation4 + $0x74] sm:$0xf] %vm3739_vm5, %v3704_v33  ;;  %v3194_v53 = vpop.permute.xlu0 %3193  ;;  %v3112_v34 = vpop.permute.xlu2 %3111 }
 0x427   : > { %v3229_v18 = vpop.permute.xlu1 %3228  ;;  %v4154_v1 = vmax.f32 %v4122_v7, 0.0  ;;  %v3476_v63 = vsel %vm1835_vm10, %v3444_v31, %v3194_v53  ;;  %v3414_v33 = vsel %vm1703_vm14, %v3382_v27, %v3112_v34 }
 0x428   : > { %v3509_v56 = vsel %vm3495_vm12, %v3476_v63, %v3229_v18 }
 0x429   : > { %4187 = vst.msk [vmem:[%s7219_s10 + $0xa0] sm:$0xff] %vm1637_vm13, %v4154_v1  ;;  %v3542_v39 = vsel %vm3528_vm15, %v3509_v56, %v3266_v9 }
 0x42a   : > { %v4034_v42 = vpop.f32.mrf.mxu2 }
 0x42b   : > { %v4087_v11 = vmul.f32 %v7195_v19, %v4034_v42 }
 0x42c   : > { %v3992_v55 = vpop.f32.mrf.mxu1 }
 0x42d   : > { %v4648_v38 = vld [vmem:[#allocation4 + $0x70] sm:$0xff]  ;;  %v4123_v30 = vadd.f32 %v7200_v17, %v4087_v11  ;;  %v4070_v12 = vmul.f32 %v7195_v19, %v3992_v55 }
 0x42e   : > { %v3313_v46 = vpop.permute.xlu0 %3312  ;;  %4590 = vmatmul.msk.bf16.gmra.mxu2 %vm3920_vm6, %v4648_v38  ;;  %v3196_v44 = vpop.permute.xlu2 %3195 }
 0x42f   : > { %v3348_v4 = vpop.permute.xlu1 %3347  ;;  %v3575_v50 = vsel %vm3561_vm4, %v3542_v39, %v3313_v46  ;;  %v4155_v62 = vmax.f32 %v4123_v30, 0.0  ;;  %v4106_v49 = vadd.f32 %v7200_v17, %v4070_v12 }
 0x430   : > { %v3608_v0 = vsel %vm3594_vm7, %v3575_v50, %v3348_v4 }
 0x431   : > { %v3655_v25 = vunpack.c.l.b16 %v3608_v0  ;;  %v3656_v6 = vunpack.c.h.b16 %v3608_v0  ;;  %4188 = vst.msk [vmem:[%s7219_s10 + $0xa8] sm:$0xff] %vm1637_vm13, %v4155_v62  ;;  %v4138_v10 = vmax.f32 %v4106_v49, 0.0 }
 0x433   : > { %v3687_v28 = vpack.c.b16 %v3655_v25, %v3655_v25  ;;  %v3688_v2 = vpack.c.b16 %v3656_v6, %v3656_v6  ;;  %4171 = vst.msk [vmem:[%s7219_s10 + $0x20] sm:$0xff] %vm1637_vm13, %v4138_v10 }
 0x434   : > { %v3994_v5 = vpop.f32.mrf.mxu1 }
 0x435   : > { %3752 = vst.msk [vmem:[#allocation4 + $0x30] sm:$0xf] %vm3739_vm5, %v3687_v28  ;;  %v4071_v36 = vmul.f32 %v7195_v19, %v3994_v5 }
 0x436   : > { %3753 = vst.msk [vmem:[#allocation4 + $0x34] sm:$0xf] %vm3739_vm5, %v3688_v2  ;;  %v3165_v57 = vpop.permute.xlu0 %3164  ;;  %v3315_v38 = vpop.permute.xlu2 %3314 }
 0x437   : > { %v3212_v23 = vpop.permute.xlu1 %3211  ;;  %v4107_v52 = vadd.f32 %v7200_v17, %v4071_v36  ;;  %v3462_v58 = vsel %vm1769_vm1, %v3430_v43, %v3165_v57 }
 0x438   : > { %v3494_v59 = vsel %vm1835_vm10, %v3462_v58, %v3212_v23 }
 0x439   : > { %v4139_v15 = vmax.f32 %v4107_v52, 0.0  ;;  %v3527_v54 = vsel %vm3495_vm12, %v3494_v59, %v3247_v41 }
 0x43b   : > { %4172 = vst.msk [vmem:[%s7219_s10 + $0x28] sm:$0xff] %vm1637_vm13, %v4139_v15 }
 0x43d   : > { %v4640_v29 = vld [vmem:[#allocation4 + $0x30] sm:$0xff] }
 0x43e   : > { %v3284_v45 = vpop.permute.xlu0 %3283  ;;  %4582 = vmatmul.msk.bf16.gmra.mxu1 %vm3920_vm6, %v4640_v29 }
 0x43f   : > { %v3331_v47 = vpop.permute.xlu1 %3330  ;;  %v3560_v60 = vsel %vm3528_vm15, %v3527_v54, %v3284_v45 }
 0x440   : > { %v3593_v40 = vsel %vm3561_vm4, %v3560_v60, %v3331_v47 }
 0x446   : > { %v3366_v26 = vpop.permute.xlu0 %3365 }
 0x447   : > { %v3149_v48 = vpop.permute.xlu1 %3148  ;;  %v3626_v32 = vsel %vm3594_vm7, %v3593_v40, %v3366_v26 }
 0x448   : > { %v3673_v21 = vunpack.c.l.b16 %v3626_v32  ;;  %v3674_v24 = vunpack.c.h.b16 %v3626_v32  ;;  %v4037_v3 = vpop.f32.mrf.mxu2  ;;  %v3446_v13 = vsel %vm1769_vm1, %v3414_v33, %v3149_v48 }
 0x449   : > { %v4088_v16 = vmul.f32 %v7195_v19, %v4037_v3  ;;  %v3478_v18 = vsel %vm1835_vm10, %v3446_v13, %v3196_v44 }
 0x44a   : > { %v3705_v22 = vpack.c.b16 %v3673_v21, %v3673_v21  ;;  %v3706_v9 = vpack.c.b16 %v3674_v24, %v3674_v24 }
 0x44b   : > { %v4124_v61 = vadd.f32 %v7200_v17, %v4088_v16 }
 0x44c   : > { %3770 = vst.msk [vmem:[#allocation4 + $0x78] sm:$0xf] %vm3739_vm5, %v3705_v22 }
 0x44d   : > { %3771 = vst.msk [vmem:[#allocation4 + $0x7c] sm:$0xf] %vm3739_vm5, %v3706_v9  ;;  %v4156_v7 = vmax.f32 %v4124_v61, 0.0 }
 0x44e   : > { %v3231_v53 = vpop.permute.xlu0 %3230 }
 0x44f   : > { %4189 = vst.msk [vmem:[%s7219_s10 + $0xb0] sm:$0xff] %vm1637_vm13, %v4156_v7  ;;  %v3268_v51 = vpop.permute.xlu1 %3267  ;;  %v3511_v31 = vsel %vm3495_vm12, %v3478_v18, %v3231_v53 }
 0x450   : > { %v4039_v1 = vpop.f32.mrf.mxu2  ;;  %v3544_v56 = vsel %vm3528_vm15, %v3511_v31, %v3268_v51 }
 0x451   : > { %v4089_v63 = vmul.f32 %v7195_v19, %v4039_v1  ;;  %v3577_v39 = vsel %vm3561_vm4, %v3544_v56, %v3315_v38 }
 0x452   : > { %v3997_v42 = vpop.f32.mrf.mxu1 }
 0x453   : > { %v4125_v11 = vadd.f32 %v7200_v17, %v4089_v63  ;;  %v4072_v37 = vmul.f32 %v7195_v19, %v3997_v42 }
 0x454   : > { %v4649_v55 = vld [vmem:[#allocation4 + $0x78] sm:$0xff] }
 0x455   : > { %v4157_v30 = vmax.f32 %v4125_v11, 0.0  ;;  %v4108_v12 = vadd.f32 %v7200_v17, %v4072_v37  ;;  %4591 = vmatmul.msk.bf16.gmra.mxu2 %vm3920_vm6, %v4649_v55 }
 0x456   : > { %v3350_v46 = vpop.permute.xlu0 %3349 }
 0x457   : > { %v3610_v4 = vsel %vm3594_vm7, %v3577_v39, %v3350_v46  ;;  %4190 = vst.msk [vmem:[%s7219_s10 + $0xb8] sm:$0xff] %vm1637_vm13, %v4157_v30  ;;  %v4140_v50 = vmax.f32 %v4108_v12, 0.0 }
 0x458   : > { %v3657_v62 = vunpack.c.l.b16 %v3610_v4  ;;  %v3658_v49 = vunpack.c.h.b16 %v3610_v4 }
 0x459   : > { %4173 = vst.msk [vmem:[%s7219_s10 + $0x30] sm:$0xff] %vm1637_vm13, %v4140_v50 }
 0x45a   : > { %v3689_v0 = vpack.c.b16 %v3657_v62, %v3657_v62  ;;  %v3690_v25 = vpack.c.b16 %v3658_v49, %v3658_v49  ;;  %v3999_v6 = vpop.f32.mrf.mxu1 }
 0x45b   : > { %v4073_v10 = vmul.f32 %v7195_v19, %v3999_v6 }
 0x45c   : > { %3754 = vst.msk [vmem:[#allocation4 + $0x38] sm:$0xf] %vm3739_vm5, %v3689_v0 }
 0x45d   : > { %3755 = vst.msk [vmem:[#allocation4 + $0x3c] sm:$0xf] %vm3739_vm5, %v3690_v25  ;;  %v4109_v28 = vadd.f32 %v7200_v17, %v4073_v10 }
 0x45f   : > { %v4141_v2 = vmax.f32 %v4109_v28, 0.0 }
 0x461   : > { %4174 = vst.msk [vmem:[%s7219_s10 + $0x38] sm:$0xff] %vm1637_vm13, %v4141_v2 }
 0x464   : > { %v4641_v5 = vld [vmem:[#allocation4 + $0x38] sm:$0xff] }
 0x465   : > { %4583 = vmatmul.msk.bf16.gmra.mxu1 %vm3920_vm6, %v4641_v5 }
 0x469   : > { %v4042_v36 = vpop.f32.mrf.mxu2 }
 0x46a   : > { %v4090_v57 = vmul.f32 %v7195_v19, %v4042_v36 }
 0x46c   : > { %v4126_v41 = vadd.f32 %v7200_v17, %v4090_v57 }
 0x46e   : > { %v4158_v23 = vmax.f32 %v4126_v41, 0.0 }
 0x470   : > { %4191 = vst.msk [vmem:[%s7219_s10 + $0xc0] sm:$0xff] %vm1637_vm13, %v4158_v23 }
 0x471   : > { %v4044_v52 = vpop.f32.mrf.mxu2 }
 0x472   : > { %v4091_v8 = vmul.f32 %v7195_v19, %v4044_v52 }
 0x473   : > { %v4002_v35 = vpop.f32.mrf.mxu1 }
 0x474   : > { %v4127_v20 = vadd.f32 %v7200_v17, %v4091_v8  ;;  %v4074_v15 = vmul.f32 %v7195_v19, %v4002_v35 }
 0x476   : > { %v4159_v43 = vmax.f32 %v4127_v20, 0.0  ;;  %v4110_v58 = vadd.f32 %v7200_v17, %v4074_v15 }
 0x478   : > { %4192 = vst.msk [vmem:[%s7219_s10 + $0xc8] sm:$0xff] %vm1637_vm13, %v4159_v43  ;;  %v4142_v29 = vmax.f32 %v4110_v58, 0.0 }
 0x47a   : > { %4175 = vst.msk [vmem:[%s7219_s10 + $0x40] sm:$0xff] %vm1637_vm13, %v4142_v29 }
 0x47b   : > { %v4004_v45 = vpop.f32.mrf.mxu1 }
 0x47c   : > { %v4075_v59 = vmul.f32 %v7195_v19, %v4004_v45 }
 0x47e   : > { %v4111_v47 = vadd.f32 %v7200_v17, %v4075_v59 }
 0x480   : > { %v4143_v34 = vmax.f32 %v4111_v47, 0.0 }
 0x482   : > { %4176 = vst.msk [vmem:[%s7219_s10 + $0x48] sm:$0xff] %vm1637_vm13, %v4143_v34 }
 0x48a   : > { %v4047_v54 = vpop.f32.mrf.mxu2 }
 0x48b   : > { %v4092_v60 = vmul.f32 %v7195_v19, %v4047_v54 }
 0x48d   : > { %v4128_v40 = vadd.f32 %v7200_v17, %v4092_v60 }
 0x48f   : > { %v4160_v26 = vmax.f32 %v4128_v40, 0.0 }
 0x491   : > { %4193 = vst.msk [vmem:[%s7219_s10 + $0xd0] sm:$0xff] %vm1637_vm13, %v4160_v26 }
 0x492   : > { %v4049_v48 = vpop.f32.mrf.mxu2 }
 0x493   : > { %v4093_v32 = vmul.f32 %v7195_v19, %v4049_v48 }
 0x494   : > { %v4007_v21 = vpop.f32.mrf.mxu1 }
 0x495   : > { %v4129_v24 = vadd.f32 %v7200_v17, %v4093_v32  ;;  %v4076_v3 = vmul.f32 %v7195_v19, %v4007_v21 }
 0x497   : > { %v4161_v14 = vmax.f32 %v4129_v24, 0.0  ;;  %v4112_v27 = vadd.f32 %v7200_v17, %v4076_v3 }
 0x499   : > { %4194 = vst.msk [vmem:[%s7219_s10 + $0xd8] sm:$0xff] %vm1637_vm13, %v4161_v14  ;;  %v4144_v22 = vmax.f32 %v4112_v27, 0.0 }
 0x49b   : > { %4177 = vst.msk [vmem:[%s7219_s10 + $0x50] sm:$0xff] %vm1637_vm13, %v4144_v22 }
 0x49c   : > { %v4009_v9 = vpop.f32.mrf.mxu1 }
 0x49d   : > { %v4077_v16 = vmul.f32 %v7195_v19, %v4009_v9 }
 0x49f   : > { %v4113_v33 = vadd.f32 %v7200_v17, %v4077_v16 }
 0x4a1   : > { %v4145_v44 = vmax.f32 %v4113_v33, 0.0 }
 0x4a3   : > { %4178 = vst.msk [vmem:[%s7219_s10 + $0x58] sm:$0xff] %vm1637_vm13, %v4145_v44 }
 0x4b1   : > { %v4052_v13 = vpop.f32.mrf.mxu2 }
 0x4b2   : > { %v4094_v61 = vmul.f32 %v7195_v19, %v4052_v13 }
 0x4b4   : > { %v4130_v7 = vadd.f32 %v7200_v17, %v4094_v61 }
 0x4b6   : > { %v4162_v53 = vmax.f32 %v4130_v7, 0.0 }
 0x4b8   : > { %4195 = vst.msk [vmem:[%s7219_s10 + $0xe0] sm:$0xff] %vm1637_vm13, %v4162_v53 }
 0x4b9   : > { %v4054_v18 = vpop.f32.mrf.mxu2 }
 0x4ba   : > { %v4095_v51 = vmul.f32 %v7195_v19, %v4054_v18 }
 0x4bb   : > { %v4012_v31 = vpop.f32.mrf.mxu1 }
 0x4bc   : > { %v4131_v1 = vadd.f32 %v7200_v17, %v4095_v51  ;;  %v4078_v63 = vmul.f32 %v7195_v19, %v4012_v31 }
 0x4be   : > { %v4163_v56 = vmax.f32 %v4131_v1, 0.0  ;;  %v4114_v42 = vadd.f32 %v7200_v17, %v4078_v63 }
 0x4c0   : > { %4196 = vst.msk [vmem:[%s7219_s10 + $0xe8] sm:$0xff] %vm1637_vm13, %v4163_v56  ;;  %v4146_v11 = vmax.f32 %v4114_v42, 0.0 }
 0x4c2   : > { %4179 = vst.msk [vmem:[%s7219_s10 + $0x60] sm:$0xff] %vm1637_vm13, %v4146_v11 }
 0x4c3   : > { %v4014_v37 = vpop.f32.mrf.mxu1 }
 0x4c4   : > { %v4079_v55 = vmul.f32 %v7195_v19, %v4014_v37 }
 0x4c6   : > { %v4115_v38 = vadd.f32 %v7200_v17, %v4079_v55 }
 0x4c8   : > { %v4147_v30 = vmax.f32 %v4115_v38, 0.0 }
 0x4ca   : > { %4180 = vst.msk [vmem:[%s7219_s10 + $0x68] sm:$0xff] %vm1637_vm13, %v4147_v30 }
 0x4d8   : > { %v4057_v12 = vpop.f32.mrf.mxu2 }
 0x4d9   : > { %v4096_v39 = vmul.f32 %v7195_v19, %v4057_v12 }
 0x4db   : > { %v4132_v46 = vadd.f32 %v7200_v17, %v4096_v39 }
 0x4dd   : > { %v4164_v4 = vmax.f32 %v4132_v46, 0.0 }
 0x4df   : > { %4197 = vst.msk [vmem:[%s7219_s10 + $0xf0] sm:$0xff] %vm1637_vm13, %v4164_v4 }
 0x4e0   : > { %v4059_v50 = vpop.f32.mrf.mxu2 }
 0x4e1   : > { %v4097_v62 = vmul.f32 %v7195_v19, %v4059_v50 }
 0x4e2   : > { %v4017_v49 = vpop.f32.mrf.mxu1 }
 0x4e3   : > { %v4133_v0 = vadd.f32 %v7200_v17, %v4097_v62  ;;  %v4080_v25 = vmul.f32 %v7195_v19, %v4017_v49 }
 0x4e5   : > { %v4165_v6 = vmax.f32 %v4133_v0, 0.0  ;;  %v4116_v10 = vadd.f32 %v7200_v17, %v4080_v25 }
 0x4e7   : > { %4198 = vst.msk [vmem:[%s7219_s10 + $0xf8] sm:$0xff] %vm1637_vm13, %v4165_v6  ;;  %v4148_v28 = vmax.f32 %v4116_v10, 0.0 }
 0x4e9   : > { %4181 = vst.msk [vmem:[%s7219_s10 + $0x70] sm:$0xff] %vm1637_vm13, %v4148_v28 }
 0x4ea   : > { %v4019_v2 = vpop.f32.mrf.mxu1 }
 0x4eb   : > { %v4081_v5 = vmul.f32 %v7195_v19, %v4019_v2 }
 0x4ed   : > { %v4117_v36 = vadd.f32 %v7200_v17, %v4081_v5 }
 0x4ef   : > { %v4149_v57 = vmax.f32 %v4117_v36, 0.0 }
 0x4f1   : > { %4182 = vst.msk [vmem:[%s7219_s10 + $0x78] sm:$0xff] %vm1637_vm13, %v4149_v57 }
 0x4f2 PF: > { %s17_s26 = sadd.s32 1, %s4753_s26   ;;  %s7500_s24 = smov %s4749_s25 }
 0x4f3   : > { %p14_p5 = scmp.ge.s32.totalorder %s17_s26, 4   ;;  %s7501_s25 = smov %s7503_s27 }
 0x4f5   :  { %16 = sbr.rel (!%p14_p5) target bundleno = 2 (0x2), region = 93 }

</bundles_post_ra>
